<compile_context>
chip_gen: v6e
topology: v6e:2x2x1
jax: 0.10.0
libtpu: 0.0.40
codegen_flags: <defaults>
</compile_context>

<pallas_src>
import functools

import jax
import jax.numpy as jnp
import numpy as np
from jax import lax
from jax.experimental import pallas as pl
from jax.experimental.pallas import tpu as pltpu

_MSE_LANES = 128  # lane-dense width for the per-batch MSE partial-sum outputs


# ----------------------------------------------------------------------------
# Fused conv kernels: packed (teacher|student) 3x3 SAME conv + in-kernel
# feature-MSE partial sum (+ teacher GAP for the last layer).
# One batch element per grid step; channels [0:C]=teacher, [C:2C]=student.
# ----------------------------------------------------------------------------
def _conv_body(x_ref, w_ref, b_ref, pad_ref, slab_ref, *, H, W):
    """Returns the f32 (H*W, Cout) packed conv output for this batch element.

    x_ref:    (1, H, W, Cin)  input activation block (f32 or bf16).
    w_ref:    (9*Cin, Cout)   bf16 packed weights, row = (dy*3+dx)*Cin + ci.
    b_ref:    (1, Cout)       f32 packed bias.
    pad_ref:  (H+2, W+2, Cin) f32 VMEM scratch: SAME padding done on-chip.
    slab_ref: (H*W, 9*Cin)    bf16 VMEM im2col slab -> ONE K=9*Cin MXU matmul.
    """
    Cin = x_ref.shape[-1]
    # SAME padding inside VMEM: zero border + interior copy (no HBM pad pass).
    pad_ref[...] = jnp.zeros_like(pad_ref)
    pad_ref[1:H + 1, 1:W + 1, :] = x_ref[0].astype(jnp.float32)
    # Build the im2col slab: tap k = dy*3+dx occupies lanes [k*Cin, (k+1)*Cin).
    for k in range(9):
        dy, dx = divmod(k, 3)
        patch = pad_ref[dy:dy + H, dx:dx + W, :].reshape(H * W, Cin)
        slab_ref[:, k * Cin:(k + 1) * Cin] = patch.astype(jnp.bfloat16)
    acc = jnp.dot(slab_ref[...], w_ref[...],
                  preferred_element_type=jnp.float32)
    return acc + b_ref[...]                                   # (H*W, Cout) f32


def _conv_mse_kernel(x_ref, w_ref, b_ref, act_ref, mse_ref,
                     pad_ref, slab_ref, *, H, W, C):
    out = _conv_body(x_ref, w_ref, b_ref, pad_ref, slab_ref, H=H, W=W)
    # Next-layer activation stored in bf16 (halves inter-layer HBM traffic).
    act_ref[...] = out.reshape(1, H, W, out.shape[-1]).astype(act_ref.dtype)
    # Feature-distillation partial: sum of (teacher - student)^2 for this
    # image, computed from the f32 accumulator while it is still in VMEM.
    d = out[:, :C] - out[:, C:]
    mse_ref[...] = jnp.full((1, 1, _MSE_LANES), jnp.sum(d * d), jnp.float32)


def _conv_mse_gap_kernel(x_ref, w_ref, b_ref, mse_ref, pooled_ref,
                         pad_ref, slab_ref, *, H, W, C):
    out = _conv_body(x_ref, w_ref, b_ref, pad_ref, slab_ref, H=H, W=W)
    d = out[:, :C] - out[:, C:]
    mse_ref[...] = jnp.full((1, 1, _MSE_LANES), jnp.sum(d * d), jnp.float32)
    # Teacher GAP for the logit-distillation head (a3 never hits HBM).
    pooled = jnp.mean(out[:, :C], axis=0, keepdims=True)       # (1, C) f32
    pooled_ref[...] = pooled.reshape(1, 1, C)


def conv3x3_packed_fused(x, w_flat, b, *, C, last_layer):
    """x: (N, H, W, Cin); w_flat: (9*Cin, Cout) bf16; b: (1, Cout) f32.
       last_layer=False -> (act (N,H,W,Cout) bf16, mse (N,1,128) f32)
       last_layer=True  -> (mse (N,1,128) f32, pooled_teacher (N,1,C) f32)."""
    N, H, W, Cin = x.shape
    K9, Cout = w_flat.shape
    assert K9 == 9 * Cin

    in_specs = [
        pl.BlockSpec((1, H, W, Cin), lambda n: (n, 0, 0, 0)),
        pl.BlockSpec((K9, Cout), lambda n: (0, 0)),
        pl.BlockSpec((1, Cout), lambda n: (0, 0)),
    ]
    scratch_shapes = [
        pltpu.VMEM((H + 2, W + 2, Cin), jnp.float32),     # padded input
        pltpu.VMEM((H * W, 9 * Cin), jnp.bfloat16),       # im2col slab
    ]

    mse_shape = jax.ShapeDtypeStruct((N, 1, _MSE_LANES), jnp.float32)
    mse_spec = pl.BlockSpec((1, 1, _MSE_LANES), lambda n: (n, 0, 0))
    if not last_layer:
        kernel = functools.partial(_conv_mse_kernel, H=H, W=W, C=C)
        out_shape = (jax.ShapeDtypeStruct((N, H, W, Cout), jnp.bfloat16),
                     mse_shape)
        out_specs = (pl.BlockSpec((1, H, W, Cout), lambda n: (n, 0, 0, 0)),
                     mse_spec)
    else:
        kernel = functools.partial(_conv_mse_gap_kernel, H=H, W=W, C=C)
        out_shape = (mse_shape, jax.ShapeDtypeStruct((N, 1, C), jnp.float32))
        out_specs = (mse_spec, pl.BlockSpec((1, 1, C), lambda n: (n, 0, 0)))

    # Per-step VMEM budget: double-buffered in/out blocks + weights + scratch.
    per_step = (2 * (H * W * Cin * x.dtype.itemsize
                     + H * W * Cout * 2
                     + _MSE_LANES * 4 + C * 4)
                + K9 * Cout * 2 + Cout * 4
                + (H + 2) * (W + 2) * Cin * 4
                + H * W * 9 * Cin * 2)
    vmem_limit = int(min(max(2 * per_step, 4 * 2**20), 64 * 2**20))

    return pl.pallas_call(
        kernel,
        out_shape=out_shape,
        grid=(N,),
        in_specs=in_specs,
        out_specs=out_specs,
        scratch_shapes=scratch_shapes,
        compiler_params=pltpu.CompilerParams(
            dimension_semantics=("parallel",),
            vmem_limit_bytes=vmem_limit),
    )(x, w_flat, b)


# ----------------------------------------------------------------------------
# Tiny fused loss kernel: weighted MSEs + teacher head + CE + soft-KL -> scalar
# ----------------------------------------------------------------------------
def _loss_kernel(labels_ref, m1_ref, m2_ref, m3_ref, pooled_ref,
                 hw_ref, hb_ref, cls_ref, kd_ref, o_ref, *,
                 feat_scales, alpha_logit, tau, lam):
    # -- feature distillation: weighted MSEs from the in-conv partial sums --
    fkd = (jnp.sum(m1_ref[...]) * feat_scales[0]
           + jnp.sum(m2_ref[...]) * feat_scales[1]
           + jnp.sum(m3_ref[...]) * feat_scales[2])

    # -- teacher logits: GAP (done in the conv kernel) @ linear head --
    t_logits = (jnp.dot(pooled_ref[...], hw_ref[...],
                        preferred_element_type=jnp.float32) + hb_ref[...])

    # -- base criterion: vectorised mean cross-entropy with integer labels --
    x = cls_ref[...]                                           # (B, NC) f32
    B, NC = x.shape
    m = jnp.max(x, axis=1, keepdims=True)
    lse = m + jnp.log(jnp.sum(jnp.exp(x - m), axis=1, keepdims=True))
    lane = lax.broadcasted_iota(jnp.int32, (B, NC), 1)
    picked = jnp.sum(jnp.where(lane == labels_ref[...], x, 0.0),
                     axis=1, keepdims=True)
    ce = jnp.sum(lse - picked) / float(B)

    # -- soft distillation: KL(log_softmax(kd/T) || log_softmax(teacher/T)),
    #    reduction='sum', log_target=True, scaled by T^2 / numel --
    def log_softmax(z):
        zm = jnp.max(z, axis=1, keepdims=True)
        return z - (zm + jnp.log(jnp.sum(jnp.exp(z - zm), axis=1, keepdims=True)))

    inv_tau = 1.0 / tau
    log_s = log_softmax(kd_ref[...] * inv_tau)
    log_t = log_softmax(t_logits * inv_tau)
    kl = jnp.sum(jnp.exp(log_t) * (log_t - log_s))
    distill = kl * (tau * tau) / float(B * NC)

    lkd = ce * (1.0 - alpha_logit) + distill * alpha_logit
    o_ref[0, 0] = lkd + lam * fkd


def fused_loss(labels, mse1, mse2, mse3, pooled, head_w, head_b,
               outputs_cls, outputs_kd, *, feat_scales, alpha_logit, tau, lam):
    B, NC = outputs_cls.shape
    N, C = pooled.shape
    kernel = functools.partial(
        _loss_kernel, feat_scales=tuple(float(s) for s in feat_scales),
        alpha_logit=float(alpha_logit), tau=float(tau), lam=float(lam))
    mspec = pl.BlockSpec((N, 1, _MSE_LANES), lambda: (0, 0, 0))
    out = pl.pallas_call(
        kernel,
        out_shape=jax.ShapeDtypeStruct((1, 1), jnp.float32),
        in_specs=[
            pl.BlockSpec((B, 1), lambda: (0, 0)),              # labels int32
            mspec, mspec, mspec,                               # MSE partials
            pl.BlockSpec((N, C), lambda: (0, 0)),              # pooled teacher
            pl.BlockSpec((C, NC), lambda: (0, 0)),             # head weight
            pl.BlockSpec((1, NC), lambda: (0, 0)),             # head bias
            pl.BlockSpec((B, NC), lambda: (0, 0)),             # outputs_cls
            pl.BlockSpec((B, NC), lambda: (0, 0)),             # outputs_kd
        ],
        out_specs=pl.BlockSpec((1, 1), lambda: (0, 0)),
    )(labels.reshape(B, 1).astype(jnp.int32), mse1, mse2, mse3, pooled,
      head_w.astype(jnp.float32), head_b.reshape(1, NC).astype(jnp.float32),
      outputs_cls.astype(jnp.float32), outputs_kd.astype(jnp.float32))
    return out[0, 0]


# ----------------------------------------------------------------------------
# Weight packing glue (plain JAX on tiny parameter arrays)
# ----------------------------------------------------------------------------
def _pack_first_layer(wt, ws, bt, bs):
    w = jnp.concatenate([wt, ws], axis=-1)             # (3,3,Cin, Ct+Cs)
    b = jnp.concatenate([bt, bs], axis=-1)
    return w, b


def _pack_block_diag(wt, ws, bt, bs):
    z = jnp.zeros_like(wt)
    top = jnp.concatenate([wt, z], axis=-1)            # teacher-input rows
    bot = jnp.concatenate([z, ws], axis=-1)            # student-input rows
    w = jnp.concatenate([top, bot], axis=-2)           # (3,3,2C,2C) block-diag
    b = jnp.concatenate([bt, bs], axis=-1)
    return w, b


def _prep_w(w):
    kh, kw, cin, cout = w.shape
    return w.reshape(kh * kw * cin, cout).astype(jnp.bfloat16)


def _prep_b(b):
    return b.reshape(1, -1).astype(jnp.float32)


def total_distillation_loss(x, outputs, labels, params, *, alpha_logit, tau,
                            alpha_feat, lam, t_layers, s_layers):
    # Packed-channel pipeline implements the default [1,2,3]/[1,2,3] prefixes.
    assert list(t_layers) == list(s_layers) == [1, 2, 3]
    outputs_cls, outputs_kd = outputs
    N, H, W_, C = x.shape

    # Teacher runs under torch.no_grad in the reference -> stop_gradient here.
    t_convs = [(lax.stop_gradient(w), lax.stop_gradient(b))
               for (w, b) in params["t_convs"]]
    s_convs = params["s_convs"]
    head_w = lax.stop_gradient(params["head_w"])
    head_b = lax.stop_gradient(params["head_b"])

    w1, b1 = _pack_first_layer(t_convs[0][0], s_convs[0][0],
                               t_convs[0][1], s_convs[0][1])
    w2, b2 = _pack_block_diag(t_convs[1][0], s_convs[1][0],
                              t_convs[1][1], s_convs[1][1])
    w3, b3 = _pack_block_diag(t_convs[2][0], s_convs[2][0],
                              t_convs[2][1], s_convs[2][1])

    # Three fused (teacher|student) conv layers; MSE / GAP reductions in-kernel.
    a1, mse1 = conv3x3_packed_fused(x, _prep_w(w1), _prep_b(b1),
                                    C=C, last_layer=False)
    a2, mse2 = conv3x3_packed_fused(a1, _prep_w(w2), _prep_b(b2),
                                    C=C, last_layer=False)
    mse3, pooled = conv3x3_packed_fused(a2, _prep_w(w3), _prep_b(b3),
                                        C=C, last_layer=True)

    feat_denom = float(N * H * W_ * C) * float(_MSE_LANES)
    feat_scales = [float((i + 1) ** alpha_feat) / feat_denom for i in range(3)]
    return fused_loss(labels, mse1, mse2, mse3, pooled.reshape(N, C),
                      head_w, head_b, outputs_cls, outputs_kd,
                      feat_scales=feat_scales,
                      alpha_logit=alpha_logit, tau=tau, lam=lam)


# ----------------------------------------------------------------------------
# Pure-JAX reference (sanity check only)
# ----------------------------------------------------------------------------
def _ref_total(x, outputs, labels, params, alpha_logit, tau, alpha_feat, lam,
               t_layers, s_layers):
    def conv_ref(h, w, b):
        return jax.lax.conv_general_dilated(
            h, w, (1, 1), "SAME", dimension_numbers=("NHWC", "HWIO", "NHWC")
        ) + b

    def prefix(h, convs, k):
        for (w, b) in convs[:k]:
            h = conv_ref(h, w, b)
        return h

    t_convs, s_convs = params["t_convs"], params["s_convs"]
    t_logits = (jnp.mean(prefix(x, t_convs, 3), axis=(1, 2)) @ params["head_w"]
                + params["head_b"])
    outputs_cls, outputs_kd = outputs
    lse = jax.nn.logsumexp(outputs_cls, axis=1)
    ce = jnp.mean(lse - outputs_cls[jnp.arange(outputs_cls.shape[0]), labels])
    log_s = jax.nn.log_softmax(outputs_kd / tau, axis=1)
    log_t = jax.nn.log_softmax(t_logits / tau, axis=1)
    distill = jnp.sum(jnp.exp(log_t) * (log_t - log_s)) * tau * tau / outputs_kd.size
    lkd = ce * (1 - alpha_logit) + distill * alpha_logit
    fkd = 0.0
    for i, (tl, sl) in enumerate(zip(t_layers, s_layers)):
        a = prefix(x, t_convs, tl)
        s = prefix(x, s_convs, sl)
        fkd = fkd + jnp.mean((a - s) ** 2) * ((i + 1) ** alpha_feat)
    return lkd + lam * fkd


# ----------------------------------------------------------------------------
if __name__ == "__main__":
    key = jax.random.PRNGKey(0)
    ks = jax.random.split(key, 12)

    N, H, W_, C, NC = 2, 16, 16, 4, 10
    T_LAYERS = [1, 2, 3]
    S_LAYERS = [1, 2, 3]
    ALPHA_LOGIT, TAU, ALPHA_FEAT, LAMBDA = 0.5, 2.0, 1.0, 10.0

    x = jax.random.normal(ks[0], (N, H, W_, C), jnp.float32)

    def init_conv(k):
        kw, kb = jax.random.split(k)
        w = 0.1 * jax.random.normal(kw, (3, 3, C, C), jnp.float32)
        b = 0.01 * jax.random.normal(kb, (C,), jnp.float32)
        return (w, b)

    params = {
        "t_convs": [init_conv(ks[1]), init_conv(ks[2]), init_conv(ks[3])],
        "s_convs": [init_conv(ks[4]), init_conv(ks[5]), init_conv(ks[6])],
        "head_w": 0.1 * jax.random.normal(ks[7], (C, NC), jnp.float32),
        "head_b": jnp.zeros((NC,), jnp.float32),
    }

    outputs_cls = jax.random.normal(ks[8], (N, NC), jnp.float32)
    outputs_kd = jax.random.normal(ks[9], (N, NC), jnp.float32)
    labels = jnp.array([1, 7], dtype=jnp.int32)

    loss = total_distillation_loss(
        x, (outputs_cls, outputs_kd), labels, params,
        alpha_logit=ALPHA_LOGIT, tau=TAU, alpha_feat=ALPHA_FEAT, lam=LAMBDA,
        t_layers=T_LAYERS, s_layers=S_LAYERS,
    )
    loss = jax.block_until_ready(loss)

    ref = jax.block_until_ready(_ref_total(
        x, (outputs_cls, outputs_kd), labels, params,
        ALPHA_LOGIT, TAU, ALPHA_FEAT, LAMBDA, T_LAYERS, S_LAYERS,
    ))

    assert np.isfinite(float(loss))
    np.testing.assert_allclose(float(loss), float(ref), rtol=5e-2, atol=1e-3)
    print("KERNEL_OK")
</pallas_src>

<mosaic_0001>
module attributes {stable_mosaic.version = 11 : i64} {
  func.func @_conv_mse_kernel(%arg0: i32, %arg1: memref<1x16x16x4xf32, #tpu.memory_space<vmem>>, %arg2: memref<36x8xbf16, #tpu.memory_space<vmem>>, %arg3: memref<1x8xf32, #tpu.memory_space<vmem>>, %arg4: memref<1x16x16x8xbf16, #tpu.memory_space<vmem>>, %arg5: memref<1x1x128xf32, #tpu.memory_space<vmem>>, %arg6: memref<18x18x4xf32, #tpu.memory_space<vmem>>, %arg7: memref<256x36xbf16, #tpu.memory_space<vmem>>) attributes {dimension_semantics = [#tpu.dimension_semantics<parallel>], iteration_bounds = array<i64: 2>, scalar_prefetch = 0 : i64, scratch_operands = 2 : i64, tpu.core_type = #tpu.core_type<tc>, window_params = [{transform_indices = @transform_0, window_bounds = array<i64: 1, 16, 16, 4>}, {pipeline_mode = #tpu.pipeline_mode<synchronous>, transform_indices = @transform_1, window_bounds = array<i64: 36, 8>}, {pipeline_mode = #tpu.pipeline_mode<synchronous>, transform_indices = @transform_2, window_bounds = array<i64: 1, 8>}, {transform_indices = @transform_3, window_bounds = array<i64: 1, 16, 16, 8>}, {transform_indices = @transform_4, window_bounds = array<i64: 1, 1, 128>}]} {
    %cst = arith.constant 0.000000e+00 : f32
    %0 = vector.broadcast %cst : f32 to vector<18x18x4xf32>
    %c0 = arith.constant 0 : index
    %c0_0 = arith.constant 0 : index
    %c0_1 = arith.constant 0 : index
    %1 = vector.load %arg6[%c0, %c0_0, %c0_1] : memref<18x18x4xf32, #tpu.memory_space<vmem>>, vector<18x18x4xf32>
    tpu.vector_store %arg6[%c0, %c0_0, %c0_1], %0 {strides = array<i32>} : memref<18x18x4xf32, #tpu.memory_space<vmem>>, vector<18x18x4xf32>,
    %c0_2 = arith.constant 0 : index
    %c0_3 = arith.constant 0 : index
    %c0_4 = arith.constant 0 : index
    %c0_5 = arith.constant 0 : index
    %2 = vector.load %arg1[%c0_2, %c0_3, %c0_4, %c0_5] : memref<1x16x16x4xf32, #tpu.memory_space<vmem>>, vector<1x16x16x4xf32>
    %3 = vector.shape_cast %2 : vector<1x16x16x4xf32> to vector<16x16x4xf32>
    %c1 = arith.constant 1 : index
    %c1_6 = arith.constant 1 : index
    %c0_7 = arith.constant 0 : index
    %4 = vector.load %arg6[%c1, %c1_6, %c0_7] : memref<18x18x4xf32, #tpu.memory_space<vmem>>, vector<16x16x4xf32>
    tpu.vector_store %arg6[%c1, %c1_6, %c0_7], %3 {strides = array<i32>} : memref<18x18x4xf32, #tpu.memory_space<vmem>>, vector<16x16x4xf32>,
    %c0_8 = arith.constant 0 : index
    %c0_9 = arith.constant 0 : index
    %c0_10 = arith.constant 0 : index
    %5 = vector.load %arg6[%c0_8, %c0_9, %c0_10] : memref<18x18x4xf32, #tpu.memory_space<vmem>>, vector<16x16x4xf32>
    %6 = vector.shape_cast %5 : vector<16x16x4xf32> to vector<256x4xf32>
    %7 = arith.truncf %6 : vector<256x4xf32> to vector<256x4xbf16>
    %c0_11 = arith.constant 0 : index
    %c0_12 = arith.constant 0 : index
    %8 = vector.load %arg7[%c0_11, %c0_12] : memref<256x36xbf16, #tpu.memory_space<vmem>>, vector<256x4xbf16>
    tpu.vector_store %arg7[%c0_11, %c0_12], %7 {strides = array<i32>} : memref<256x36xbf16, #tpu.memory_space<vmem>>, vector<256x4xbf16>,
    %c0_13 = arith.constant 0 : index
    %c1_14 = arith.constant 1 : index
    %c0_15 = arith.constant 0 : index
    %9 = vector.load %arg6[%c0_13, %c1_14, %c0_15] : memref<18x18x4xf32, #tpu.memory_space<vmem>>, vector<16x16x4xf32>
    %10 = vector.shape_cast %9 : vector<16x16x4xf32> to vector<256x4xf32>
    %11 = arith.truncf %10 : vector<256x4xf32> to vector<256x4xbf16>
    %c0_16 = arith.constant 0 : index
    %c4 = arith.constant 4 : index
    %12 = vector.load %arg7[%c0_16, %c4] : memref<256x36xbf16, #tpu.memory_space<vmem>>, vector<256x4xbf16>
    tpu.vector_store %arg7[%c0_16, %c4], %11 {strides = array<i32>} : memref<256x36xbf16, #tpu.memory_space<vmem>>, vector<256x4xbf16>,
    %c0_17 = arith.constant 0 : index
    %c2 = arith.constant 2 : index
    %c0_18 = arith.constant 0 : index
    %13 = vector.load %arg6[%c0_17, %c2, %c0_18] : memref<18x18x4xf32, #tpu.memory_space<vmem>>, vector<16x16x4xf32>
    %14 = vector.shape_cast %13 : vector<16x16x4xf32> to vector<256x4xf32>
    %15 = arith.truncf %14 : vector<256x4xf32> to vector<256x4xbf16>
    %c0_19 = arith.constant 0 : index
    %c8 = arith.constant 8 : index
    %16 = vector.load %arg7[%c0_19, %c8] : memref<256x36xbf16, #tpu.memory_space<vmem>>, vector<256x4xbf16>
    tpu.vector_store %arg7[%c0_19, %c8], %15 {strides = array<i32>} : memref<256x36xbf16, #tpu.memory_space<vmem>>, vector<256x4xbf16>,
    %c1_20 = arith.constant 1 : index
    %c0_21 = arith.constant 0 : index
    %c0_22 = arith.constant 0 : index
    %17 = vector.load %arg6[%c1_20, %c0_21, %c0_22] : memref<18x18x4xf32, #tpu.memory_space<vmem>>, vector<16x16x4xf32>
    %18 = vector.shape_cast %17 : vector<16x16x4xf32> to vector<256x4xf32>
    %19 = arith.truncf %18 : vector<256x4xf32> to vector<256x4xbf16>
    %c0_23 = arith.constant 0 : index
    %c12 = arith.constant 12 : index
    %20 = vector.load %arg7[%c0_23, %c12] : memref<256x36xbf16, #tpu.memory_space<vmem>>, vector<256x4xbf16>
    tpu.vector_store %arg7[%c0_23, %c12], %19 {strides = array<i32>} : memref<256x36xbf16, #tpu.memory_space<vmem>>, vector<256x4xbf16>,
    %c1_24 = arith.constant 1 : index
    %c1_25 = arith.constant 1 : index
    %c0_26 = arith.constant 0 : index
    %21 = vector.load %arg6[%c1_24, %c1_25, %c0_26] : memref<18x18x4xf32, #tpu.memory_space<vmem>>, vector<16x16x4xf32>
    %22 = vector.shape_cast %21 : vector<16x16x4xf32> to vector<256x4xf32>
    %23 = arith.truncf %22 : vector<256x4xf32> to vector<256x4xbf16>
    %c0_27 = arith.constant 0 : index
    %c16 = arith.constant 16 : index
    %24 = vector.load %arg7[%c0_27, %c16] : memref<256x36xbf16, #tpu.memory_space<vmem>>, vector<256x4xbf16>
    tpu.vector_store %arg7[%c0_27, %c16], %23 {strides = array<i32>} : memref<256x36xbf16, #tpu.memory_space<vmem>>, vector<256x4xbf16>,
    %c1_28 = arith.constant 1 : index
    %c2_29 = arith.constant 2 : index
    %c0_30 = arith.constant 0 : index
    %25 = vector.load %arg6[%c1_28, %c2_29, %c0_30] : memref<18x18x4xf32, #tpu.memory_space<vmem>>, vector<16x16x4xf32>
    %26 = vector.shape_cast %25 : vector<16x16x4xf32> to vector<256x4xf32>
    %27 = arith.truncf %26 : vector<256x4xf32> to vector<256x4xbf16>
    %c0_31 = arith.constant 0 : index
    %c20 = arith.constant 20 : index
    %28 = vector.load %arg7[%c0_31, %c20] : memref<256x36xbf16, #tpu.memory_space<vmem>>, vector<256x4xbf16>
    tpu.vector_store %arg7[%c0_31, %c20], %27 {strides = array<i32>} : memref<256x36xbf16, #tpu.memory_space<vmem>>, vector<256x4xbf16>,
    %c2_32 = arith.constant 2 : index
    %c0_33 = arith.constant 0 : index
    %c0_34 = arith.constant 0 : index
    %29 = vector.load %arg6[%c2_32, %c0_33, %c0_34] : memref<18x18x4xf32, #tpu.memory_space<vmem>>, vector<16x16x4xf32>
    %30 = vector.shape_cast %29 : vector<16x16x4xf32> to vector<256x4xf32>
    %31 = arith.truncf %30 : vector<256x4xf32> to vector<256x4xbf16>
    %c0_35 = arith.constant 0 : index
    %c24 = arith.constant 24 : index
    %32 = vector.load %arg7[%c0_35, %c24] : memref<256x36xbf16, #tpu.memory_space<vmem>>, vector<256x4xbf16>
    tpu.vector_store %arg7[%c0_35, %c24], %31 {strides = array<i32>} : memref<256x36xbf16, #tpu.memory_space<vmem>>, vector<256x4xbf16>,
    %c2_36 = arith.constant 2 : index
    %c1_37 = arith.constant 1 : index
    %c0_38 = arith.constant 0 : index
    %33 = vector.load %arg6[%c2_36, %c1_37, %c0_38] : memref<18x18x4xf32, #tpu.memory_space<vmem>>, vector<16x16x4xf32>
    %34 = vector.shape_cast %33 : vector<16x16x4xf32> to vector<256x4xf32>
    %35 = arith.truncf %34 : vector<256x4xf32> to vector<256x4xbf16>
    %c0_39 = arith.constant 0 : index
    %c28 = arith.constant 28 : index
    %36 = vector.load %arg7[%c0_39, %c28] : memref<256x36xbf16, #tpu.memory_space<vmem>>, vector<256x4xbf16>
    tpu.vector_store %arg7[%c0_39, %c28], %35 {strides = array<i32>} : memref<256x36xbf16, #tpu.memory_space<vmem>>, vector<256x4xbf16>,
    %c2_40 = arith.constant 2 : index
    %c2_41 = arith.constant 2 : index
    %c0_42 = arith.constant 0 : index
    %37 = vector.load %arg6[%c2_40, %c2_41, %c0_42] : memref<18x18x4xf32, #tpu.memory_space<vmem>>, vector<16x16x4xf32>
    %38 = vector.shape_cast %37 : vector<16x16x4xf32> to vector<256x4xf32>
    %39 = arith.truncf %38 : vector<256x4xf32> to vector<256x4xbf16>
    %c0_43 = arith.constant 0 : index
    %c32 = arith.constant 32 : index
    %40 = vector.load %arg7[%c0_43, %c32] : memref<256x36xbf16, #tpu.memory_space<vmem>>, vector<256x4xbf16>
    tpu.vector_store %arg7[%c0_43, %c32], %39 {strides = array<i32>} : memref<256x36xbf16, #tpu.memory_space<vmem>>, vector<256x4xbf16>,
    %c0_44 = arith.constant 0 : index
    %c0_45 = arith.constant 0 : index
    %41 = vector.load %arg7[%c0_44, %c0_45] : memref<256x36xbf16, #tpu.memory_space<vmem>>, vector<256x36xbf16>
    %c0_46 = arith.constant 0 : index
    %c0_47 = arith.constant 0 : index
    %42 = vector.load %arg2[%c0_46, %c0_47] : memref<36x8xbf16, #tpu.memory_space<vmem>>, vector<36x8xbf16>
    %cst_48 = arith.constant dense<0.000000e+00> : vector<256x8xf32>
    %43 = tpu.matmul %41, %42, %cst_48 {dimension_numbers = #tpu.dot_dimension_numbers<[1], [0], [0], [1], [0, 0, 1, 1], [], []>} : vector<256x36xbf16>, vector<36x8xbf16>, vector<256x8xf32> -> vector<256x8xf32>
    %c0_49 = arith.constant 0 : index
    %c0_50 = arith.constant 0 : index
    %44 = vector.load %arg3[%c0_49, %c0_50] : memref<1x8xf32, #tpu.memory_space<vmem>>, vector<1x8xf32>
    %45 = vector.broadcast %44 : vector<1x8xf32> to vector<256x8xf32>
    %46 = arith.addf %43, %45 : vector<256x8xf32>
    %47 = vector.shape_cast %46 : vector<256x8xf32> to vector<1x16x16x8xf32>
    %48 = arith.truncf %47 : vector<1x16x16x8xf32> to vector<1x16x16x8xbf16>
    %c0_51 = arith.constant 0 : index
    %c0_52 = arith.constant 0 : index
    %c0_53 = arith.constant 0 : index
    %c0_54 = arith.constant 0 : index
    %49 = vector.load %arg4[%c0_51, %c0_52, %c0_53, %c0_54] : memref<1x16x16x8xbf16, #tpu.memory_space<vmem>>, vector<1x16x16x8xbf16>
    tpu.vector_store %arg4[%c0_51, %c0_52, %c0_53, %c0_54], %48 {strides = array<i32>} : memref<1x16x16x8xbf16, #tpu.memory_space<vmem>>, vector<1x16x16x8xbf16>,
    %50 = vector.extract_strided_slice %46 {offsets = [0, 0], sizes = [256, 4], strides = [1, 1]} : vector<256x8xf32> to vector<256x4xf32>
    %51 = vector.extract_strided_slice %46 {offsets = [0, 4], sizes = [256, 4], strides = [1, 1]} : vector<256x8xf32> to vector<256x4xf32>
    %52 = arith.subf %50, %51 : vector<256x4xf32>
    %53 = arith.mulf %52, %52 : vector<256x4xf32>
    %54 = vector.shape_cast %53 : vector<256x4xf32> to vector<1x256x4xf32>
    %cst_55 = arith.constant dense<0.000000e+00> : vector<1xf32>
    %55 = vector.multi_reduction <add>, %54, %cst_55 [1, 2] : vector<1x256x4xf32> to vector<1xf32>
    %56 = vector.shape_cast %55 : vector<1xf32> to vector<1x1x1xf32>
    %57 = vector.extract %56[0, 0, 0] : f32 from vector<1x1x1xf32>
    %58 = vector.broadcast %57 : f32 to vector<1x1x128xf32>
    %c0_56 = arith.constant 0 : index
    %c0_57 = arith.constant 0 : index
    %c0_58 = arith.constant 0 : index
    %59 = vector.load %arg5[%c0_56, %c0_57, %c0_58] : memref<1x1x128xf32, #tpu.memory_space<vmem>>, vector<1x1x128xf32>
    tpu.vector_store %arg5[%c0_56, %c0_57, %c0_58], %58 {strides = array<i32>} : memref<1x1x128xf32, #tpu.memory_space<vmem>>, vector<1x1x128xf32>,
    return
  }
  func.func @transform_0(%arg0: i32) -> (i32, i32, i32, i32) {
    %c0_i32 = arith.constant 0 : i32
    %c0_i32_0 = arith.constant 0 : i32
    %c0_i32_1 = arith.constant 0 : i32
    %c0_i32_2 = arith.constant 0 : i32
    return %arg0, %c0_i32, %c0_i32_0, %c0_i32_1 : i32, i32, i32, i32
  }
  func.func @transform_1(%arg0: i32) -> (i32, i32) {
    %c0_i32 = arith.constant 0 : i32
    %c0_i32_0 = arith.constant 0 : i32
    %c0_i32_1 = arith.constant 0 : i32
    return %c0_i32, %c0_i32_0 : i32, i32
  }
  func.func @transform_2(%arg0: i32) -> (i32, i32) {
    %c0_i32 = arith.constant 0 : i32
    %c0_i32_0 = arith.constant 0 : i32
    %c0_i32_1 = arith.constant 0 : i32
    return %c0_i32, %c0_i32_0 : i32, i32
  }
  func.func @transform_3(%arg0: i32) -> (i32, i32, i32, i32) {
    %c0_i32 = arith.constant 0 : i32
    %c0_i32_0 = arith.constant 0 : i32
    %c0_i32_1 = arith.constant 0 : i32
    %c0_i32_2 = arith.constant 0 : i32
    return %arg0, %c0_i32, %c0_i32_0, %c0_i32_1 : i32, i32, i32, i32
  }
  func.func @transform_4(%arg0: i32) -> (i32, i32, i32) {
    %c0_i32 = arith.constant 0 : i32
    %c0_i32_0 = arith.constant 0 : i32
    %c0_i32_1 = arith.constant 0 : i32
    return %arg0, %c0_i32, %c0_i32_0 : i32, i32, i32
  }
}

</mosaic_0001>

<bundles_post_ra>
// kernel: tpu_custom_call.1
= control target key start
LH: loop header
LB: loop body
LE: loop exit
PB: predicated region body
PF: predicated region fallthrough
CT: control target
= control target key end

     0   :  { %10 = vsyncpa [#allocation5], 0  ;;  %s5786_s0 = inlined_call_operand.vmem [shape: f32[2,16,16,4], index: 0, kind: input, shape index: {}]   ;;  %s5787_s1 = inlined_call_operand.vmem [shape: bf16[36,8], index: 1, kind: input, shape index: {}]   ;;  %s5788_s2 = inlined_call_operand.vmem [shape: f32[1,8], index: 2, kind: input, shape index: {}]   ;;  %s5789_s3 = inlined_call_operand.vmem [shape: bf16[2,16,16,8], index: 3, kind: output, shape index: {0}]   ;;  %s5790_s4 = inlined_call_operand.hbm [shape: f32[2,1,128], index: 4, kind: output, shape index: {1}]  }
   0x1   :  { %12 = vsyncpa [#allocation5 + $0x1], 0  ;;  %s4383_s15 = smov 0   ;;  %s4385_s16 = smov 0  }
   0x2   :  { %s4387_s17 = smov 0   ;;  %s4389_s18 = smov 0  }
   0x3 LB: > { %s4404_s19 = sadd.s32 4294967295, %s4345_s18   ;;  %s3461_s20 = sadd.s32 4294967294, %s4345_s18   ;;  %s4345_s18 = sphi %s4389_s18, %s5796_s18   ;;  %s4341_s17 = sphi %s4387_s17, %s5795_s17   ;;  %s4337_s16 = sphi %s4385_s16, %s5794_s16   ;;  %s4333_s15 = sphi %s4383_s15, %s5793_s15  }
   0x4   : > { %s4408_s21 = sadd.s32 1, %s4345_s18   ;;  %s119_s22 = sadd.s32 1, %s4341_s17 }
   0x5   : > { %s116_s23 = ssub.s32 %s4345_s18, %s4408_s21  ;;  %p129_p0 = scmp.ne.s32.totalorder %s4341_s17, %s4337_s16 }
   0x6   : > { %p117_p1 = scmp.eq.s32.totalorder %s116_s23, 0  ;;  %p130_p2 = scmp.eq.s32.totalorder %s4404_s19, 1 }
   0x7   : > { %p135_p3 = scmp.ne.s32.totalorder %s4337_s16, %s4333_s15  ;;  %p136_p4 = scmp.eq.s32.totalorder %s3461_s20, 1 }
   0x8   : > { %s4419_s24 = scalar_select %p117_p1, %s4341_s17, %s119_s22  }
   0x9   : > { %p4421_p5 = por %p130_p2, %p129_p0  ;;  %p4425_p6 = por %p136_p4, %p135_p3 }
   0xa   : > { %p3464_p7 = scmp.ge.s32.totalorder %s4345_s18, 1  ;;  %p168_p8 = scmp.lt.s32.totalorder %s4345_s18, 3 }
   0xc   : > { %p169_p9 = pnand %p3464_p7, %p168_p8 }
   0xd   : > { %p198_p10 = scmp.lt.s32.totalorder (!%p169_p9), %s4404_s19, 1  ;;  %s4348_s6 = smov (!%p169_p9), 4  }
   0xe   : > { %172 = sbr.rel (%p169_p9) target bundleno = 1229 (0x4cd), region = 32  ;;  %s4349_s7 = smov (!%p169_p9), 8  }
   0xf   : > { %s4350_s8 = smov (!%p169_p9), 12   ;;  %s4351_s9 = smov (!%p169_p9), 16  }
  0x10   : > { %s4352_s10 = smov (!%p169_p9), 20   ;;  %s4353_s11 = smov (!%p169_p9), 24  }
  0x11   : > { %s4354_s14 = smov (!%p169_p9), 28   ;;  %s4355_s29 = smov (!%p169_p9), 32  }
  0x12   : > { %s4357_s30 = smov (!%p169_p9), [#allocation4]  }
  0x13   : > { %vm209_vm0 = vcmask 31744   ;;  %vm212_vm1 = vcmask 25600   ;;  %v4347_v0 = vmov 0.0   ;;  %s4489_s27 = scalar_select %p198_p10, %s4404_s19, 1  ;;  %vm490_vm2 = vcmask 27648  }
  0x14   : > { %210 = vst.msk [vmem:[#allocation2] sm:$0xff] %vm209_vm0, %v4347_v0  ;;  %211 = vst.msk [vmem:[#allocation2 + $0x8] sm:$0xff] %vm209_vm0, %v4347_v0  ;;  %vm2768_vm3 = vcmask 1041408   ;;  %vm747_vm4 = vcmask 60448   ;;  %vm1004_vm5 = vcmask 93248   ;;  %vm1261_vm6 = vcmask 126048  }
  0x15   : > { %214 = vst.msk [vmem:[#allocation2 + $0x18] sm:$0xff] %vm209_vm0, %v4347_v0  ;;  %215 = vst.msk [vmem:[#allocation2 + $0x20] sm:$0xff] %vm209_vm0, %v4347_v0  ;;  %s3828_s28 = sshll.u32 %s4489_s27, 8  ;;  %vm1518_vm7 = vcmask 158848   ;;  %vm1775_vm8 = vcmask 191648   ;;  %vm2033_vm9 = vcmask 224448  }
  0x16   : > { %217 = vst.msk [vmem:[#allocation2 + $0x30] sm:$0xff] %vm209_vm0, %v4347_v0  ;;  %218 = vst.msk [vmem:[#allocation2 + $0x38] sm:$0xff] %vm209_vm0, %v4347_v0  ;;  %s4495_s5 = scalar_lea.vmem %s5786_s0, %s3828_s28  ;;  %vm2290_vm10 = vcmask 257248   ;;  %vm2547_vm11 = vcmask 290048   ;;  %vm2719_vm12 = vcmask 293888   ;;  %s3829_s12 = sshll.u32 %s4489_s27, 7 }
  0x17   : > { %220 = vst.msk [vmem:[#allocation2 + $0x48] sm:$0xff] %vm209_vm0, %v4347_v0  ;;  %221 = vst.msk [vmem:[#allocation2 + $0x50] sm:$0xff] %vm209_vm0, %v4347_v0  ;;  %v265_v1 = vld [vmem:[%s4495_s5] sm:$0xff]  ;;  %v267_v2 = vld [vmem:[%s4495_s5 + $0x10] sm:$0xff]  ;;  %s5218_s22 = scalar_lea.vmem %s5789_s3, %s3829_s12  ;;  %vm3061_vm13 = vcmask 60416   ;;  %s4356_s27 = smov 124  }
  0x18   : > { %223 = vst.msk [vmem:[#allocation2 + $0x60] sm:$0xff] %vm209_vm0, %v4347_v0  ;;  %224 = vst.msk [vmem:[#allocation2 + $0x68] sm:$0xff] %vm209_vm0, %v4347_v0  ;;  %v266_v3 = vld [vmem:[%s4495_s5 + $0x8] sm:$0xff]  ;;  %v269_v4 = vld [vmem:[%s4495_s5 + $0x20] sm:$0xff] }
  0x19   : > { %226 = vst.msk [vmem:[#allocation2 + $0x78] sm:$0xff] %vm209_vm0, %v4347_v0  ;;  %227 = vst.msk [vmem:[#allocation2 + $0x80] sm:$0xff] %vm209_vm0, %v4347_v0  ;;  %v268_v5 = vld [vmem:[%s4495_s5 + $0x18] sm:$0xff]  ;;  %v271_v6 = vld [vmem:[%s4495_s5 + $0x30] sm:$0xff] }
  0x1a   : > { %229 = vst.msk [vmem:[#allocation2 + $0x90] sm:$0xff] %vm209_vm0, %v4347_v0  ;;  %230 = vst.msk [vmem:[#allocation2 + $0x98] sm:$0xff] %vm209_vm0, %v4347_v0  ;;  %v270_v9 = vld [vmem:[%s4495_s5 + $0x28] sm:$0xff]  ;;  %v273_v11 = vld [vmem:[%s4495_s5 + $0x40] sm:$0xff] }
  0x1b   : > { %232 = vst.msk [vmem:[#allocation2 + $0xa8] sm:$0xff] %vm209_vm0, %v4347_v0  ;;  %233 = vst.msk [vmem:[#allocation2 + $0xb0] sm:$0xff] %vm209_vm0, %v4347_v0  ;;  %v523_v7 = vld [vmem:[#allocation2 + $0x1] sm:$0xff]  ;;  %v272_v12 = vld [vmem:[%s4495_s5 + $0x38] sm:$0xff] }
  0x1c   : > { %235 = vst.msk [vmem:[#allocation2 + $0xc0] sm:$0xff] %vm209_vm0, %v4347_v0  ;;  %236 = vst.msk [vmem:[#allocation2 + $0xc8] sm:$0xff] %vm209_vm0, %v4347_v0  ;;  %v3862_v10 = vpack.c.bf16 %v523_v7, %v523_v7  ;;  %v275_v13 = vld [vmem:[%s4495_s5 + $0x50] sm:$0xff]  ;;  %v274_v14 = vld [vmem:[%s4495_s5 + $0x48] sm:$0xff] }
  0x1d   : > { %238 = vst.msk [vmem:[#allocation2 + $0xd8] sm:$0xff] %vm209_vm0, %v4347_v0  ;;  %239 = vst.msk [vmem:[#allocation2 + $0xe0] sm:$0xff] %vm209_vm0, %v4347_v0  ;;  %v277_v15 = vld [vmem:[%s4495_s5 + $0x60] sm:$0xff]  ;;  %v276_v16 = vld [vmem:[%s4495_s5 + $0x58] sm:$0xff] }
  0x1e   : > { %241 = vst.msk [vmem:[#allocation2 + $0xf0] sm:$0xff] %vm209_vm0, %v4347_v0  ;;  %242 = vst.msk [vmem:[#allocation2 + $0xf8] sm:$0xff] %vm209_vm0, %v4347_v0  ;;  %651 = vrot.lane.b32.xlu0 %v3862_v10, %s4348_s6  ;;  %v279_v18 = vld [vmem:[%s4495_s5 + $0x70] sm:$0xff]  ;;  %v278_v19 = vld [vmem:[%s4495_s5 + $0x68] sm:$0xff] }
  0x1f   : > { %244 = vst.msk [vmem:[#allocation2 + $0x108] sm:$0xff] %vm209_vm0, %v4347_v0  ;;  %245 = vst.msk [vmem:[#allocation2 + $0x110] sm:$0xff] %vm209_vm0, %v4347_v0  ;;  %v281_v20 = vld [vmem:[%s4495_s5 + $0x80] sm:$0xff]  ;;  %v280_v21 = vld [vmem:[%s4495_s5 + $0x78] sm:$0xff] }
  0x20   : > { %247 = vst.msk [vmem:[#allocation2 + $0x120] sm:$0xff] %vm209_vm0, %v4347_v0  ;;  %248 = vst.msk [vmem:[#allocation2 + $0x128] sm:$0xff] %vm209_vm0, %v4347_v0  ;;  %v283_v22 = vld [vmem:[%s4495_s5 + $0x90] sm:$0xff]  ;;  %v282_v23 = vld [vmem:[%s4495_s5 + $0x88] sm:$0xff] }
  0x21   : > { %250 = vst.msk [vmem:[#allocation2 + $0x138] sm:$0xff] %vm209_vm0, %v4347_v0  ;;  %251 = vst.msk [vmem:[#allocation2 + $0x140] sm:$0xff] %vm209_vm0, %v4347_v0  ;;  %v285_v24 = vld [vmem:[%s4495_s5 + $0xa0] sm:$0xff]  ;;  %v284_v25 = vld [vmem:[%s4495_s5 + $0x98] sm:$0xff] }
  0x22   : > { %253 = vst.msk [vmem:[#allocation2 + $0x150] sm:$0xff] %vm209_vm0, %v4347_v0  ;;  %254 = vst.msk [vmem:[#allocation2 + $0x158] sm:$0xff] %vm209_vm0, %v4347_v0  ;;  %v287_v26 = vld [vmem:[%s4495_s5 + $0xb0] sm:$0xff]  ;;  %v286_v33 = vld [vmem:[%s4495_s5 + $0xa8] sm:$0xff] }
  0x23   : > { %256 = vst.msk [vmem:[#allocation2 + $0x168] sm:$0xff] %vm209_vm0, %v4347_v0  ;;  %257 = vst.msk [vmem:[#allocation2 + $0x170] sm:$0xff] %vm209_vm0, %v4347_v0  ;;  %v289_v34 = vld [vmem:[%s4495_s5 + $0xc0] sm:$0xff]  ;;  %v288_v41 = vld [vmem:[%s4495_s5 + $0xb8] sm:$0xff] }
  0x24   : > { %259 = vst.msk [vmem:[#allocation2 + $0x180] sm:$0xff] %vm209_vm0, %v4347_v0  ;;  %260 = vst.msk [vmem:[#allocation2 + $0x188] sm:$0xff] %vm209_vm0, %v4347_v0  ;;  %v291_v42 = vld [vmem:[%s4495_s5 + $0xd0] sm:$0xff]  ;;  %v290_v43 = vld [vmem:[%s4495_s5 + $0xc8] sm:$0xff] }
  0x25   : > { %262 = vst.msk [vmem:[#allocation2 + $0x198] sm:$0xff] %vm209_vm0, %v4347_v0  ;;  %263 = vst.msk [vmem:[#allocation2 + $0x1a0] sm:$0xff] %vm209_vm0, %v4347_v0  ;;  %v330_v62 = vld [vmem:[#allocation2] sm:$0xff]  ;;  %v331_v63 = vld [vmem:[#allocation2 + $0x8] sm:$0xff] }
  0x26   : > { %213 = vst.msk [vmem:[#allocation2 + $0x10] sm:$0x3] %vm212_vm1, %v4347_v0  ;;  %216 = vst.msk [vmem:[#allocation2 + $0x28] sm:$0x3] %vm212_vm1, %v4347_v0 }
  0x27   : > { %219 = vst.msk [vmem:[#allocation2 + $0x40] sm:$0x3] %vm212_vm1, %v4347_v0  ;;  %222 = vst.msk [vmem:[#allocation2 + $0x58] sm:$0x3] %vm212_vm1, %v4347_v0 }
  0x28   : > { %225 = vst.msk [vmem:[#allocation2 + $0x70] sm:$0x3] %vm212_vm1, %v4347_v0  ;;  %228 = vst.msk [vmem:[#allocation2 + $0x88] sm:$0x3] %vm212_vm1, %v4347_v0 }
  0x29   : > { %231 = vst.msk [vmem:[#allocation2 + $0xa0] sm:$0x3] %vm212_vm1, %v4347_v0  ;;  %234 = vst.msk [vmem:[#allocation2 + $0xb8] sm:$0x3] %vm212_vm1, %v4347_v0 }
  0x2a   : > { %237 = vst.msk [vmem:[#allocation2 + $0xd0] sm:$0x3] %vm212_vm1, %v4347_v0  ;;  %240 = vst.msk [vmem:[#allocation2 + $0xe8] sm:$0x3] %vm212_vm1, %v4347_v0 }
  0x2b   : > { %243 = vst.msk [vmem:[#allocation2 + $0x100] sm:$0x3] %vm212_vm1, %v4347_v0  ;;  %246 = vst.msk [vmem:[#allocation2 + $0x118] sm:$0x3] %vm212_vm1, %v4347_v0 }
  0x2c   : > { %249 = vst.msk [vmem:[#allocation2 + $0x130] sm:$0x3] %vm212_vm1, %v4347_v0  ;;  %252 = vst.msk [vmem:[#allocation2 + $0x148] sm:$0x3] %vm212_vm1, %v4347_v0 }
  0x2d   : > { %255 = vst.msk [vmem:[#allocation2 + $0x160] sm:$0x3] %vm212_vm1, %v4347_v0  ;;  %258 = vst.msk [vmem:[#allocation2 + $0x178] sm:$0x3] %vm212_vm1, %v4347_v0  ;;  %v524_v8 = vld [vmem:[#allocation2 + $0x9] sm:$0xff] }
  0x2e   : > { %261 = vst.msk [vmem:[#allocation2 + $0x190] sm:$0x3] %vm212_vm1, %v4347_v0  ;;  %264 = vst.msk [vmem:[#allocation2 + $0x1a8] sm:$0x3] %vm212_vm1, %v4347_v0  ;;  %v3863_v17 = vpack.c.bf16 %v524_v8, %v524_v8 }
  0x2f   : > { %298 = vst.msk [vmem:[#allocation2 + $0x19] sm:$0xff] %vm209_vm0, %v265_v1  ;;  %300 = vst.msk [vmem:[#allocation2 + $0x31] sm:$0xff] %vm209_vm0, %v267_v2  ;;  %v3830_v1 = vpack.c.bf16 %v330_v62, %v330_v62  ;;  %v3831_v2 = vpack.c.bf16 %v331_v63, %v331_v63 }
  0x30   : > { %299 = vst.msk [vmem:[#allocation2 + $0x21] sm:$0xff] %vm209_vm0, %v266_v3  ;;  %302 = vst.msk [vmem:[#allocation2 + $0x49] sm:$0xff] %vm209_vm0, %v269_v4  ;;  %653 = vrot.lane.b32.xlu0 %v3863_v17, %s4348_s6 }
  0x31   : > { %301 = vst.msk [vmem:[#allocation2 + $0x39] sm:$0xff] %vm209_vm0, %v268_v5  ;;  %304 = vst.msk [vmem:[#allocation2 + $0x61] sm:$0xff] %vm209_vm0, %v271_v6 }
  0x32   : > { %303 = vst.msk [vmem:[#allocation2 + $0x51] sm:$0xff] %vm209_vm0, %v270_v9  ;;  %306 = vst.msk [vmem:[#allocation2 + $0x79] sm:$0xff] %vm209_vm0, %v273_v11 }
  0x33   : > { %305 = vst.msk [vmem:[#allocation2 + $0x69] sm:$0xff] %vm209_vm0, %v272_v12  ;;  %308 = vst.msk [vmem:[#allocation2 + $0x91] sm:$0xff] %vm209_vm0, %v275_v13 }
  0x34   : > { %307 = vst.msk [vmem:[#allocation2 + $0x81] sm:$0xff] %vm209_vm0, %v274_v14  ;;  %310 = vst.msk [vmem:[#allocation2 + $0xa9] sm:$0xff] %vm209_vm0, %v277_v15 }
  0x35   : > { %309 = vst.msk [vmem:[#allocation2 + $0x99] sm:$0xff] %vm209_vm0, %v276_v16  ;;  %312 = vst.msk [vmem:[#allocation2 + $0xc1] sm:$0xff] %vm209_vm0, %v279_v18 }
  0x36   : > { %311 = vst.msk [vmem:[#allocation2 + $0xb1] sm:$0xff] %vm209_vm0, %v278_v19  ;;  %314 = vst.msk [vmem:[#allocation2 + $0xd9] sm:$0xff] %vm209_vm0, %v281_v20  ;;  %v525_v27 = vld [vmem:[#allocation2 + $0x19] sm:$0xff]  ;;  %v527_v28 = vld [vmem:[#allocation2 + $0x31] sm:$0xff] }
  0x37   : > { %313 = vst.msk [vmem:[#allocation2 + $0xc9] sm:$0xff] %vm209_vm0, %v280_v21  ;;  %316 = vst.msk [vmem:[#allocation2 + $0xf1] sm:$0xff] %vm209_vm0, %v283_v22  ;;  %v526_v29 = vld [vmem:[#allocation2 + $0x21] sm:$0xff]  ;;  %v4543_v30 = vpack.c.bf16 %v525_v27, %v525_v27  ;;  %v4545_v31 = vpack.c.bf16 %v527_v28, %v527_v28  ;;  %v529_v32 = vld [vmem:[#allocation2 + $0x49] sm:$0xff] }
  0x38   : > { %315 = vst.msk [vmem:[#allocation2 + $0xe1] sm:$0xff] %vm209_vm0, %v282_v23  ;;  %318 = vst.msk [vmem:[#allocation2 + $0x109] sm:$0xff] %vm209_vm0, %v285_v24  ;;  %v4551_v35 = vpack.c.bf16 %v526_v29, %v526_v29  ;;  %v528_v36 = vld [vmem:[#allocation2 + $0x39] sm:$0xff]  ;;  %v4557_v37 = vpack.c.bf16 %v529_v32, %v529_v32  ;;  %v531_v38 = vld [vmem:[#allocation2 + $0x61] sm:$0xff] }
  0x39   : > { %317 = vst.msk [vmem:[#allocation2 + $0xf9] sm:$0xff] %vm209_vm0, %v284_v25  ;;  %320 = vst.msk [vmem:[#allocation2 + $0x121] sm:$0xff] %vm209_vm0, %v287_v26  ;;  %655 = vrot.lane.b32.xlu1 %v4543_v30, %s4348_s6  ;;  %659 = vrot.lane.b32.xlu0 %v4545_v31, %s4348_s6  ;;  %v4561_v39 = vpack.c.bf16 %v528_v36, %v528_v36  ;;  %v530_v40 = vld [vmem:[#allocation2 + $0x51] sm:$0xff]  ;;  %v4568_v44 = vpack.c.bf16 %v531_v38, %v531_v38  ;;  %v533_v45 = vld [vmem:[#allocation2 + $0x79] sm:$0xff] }
  0x3a   : > { %319 = vst.msk [vmem:[#allocation2 + $0x111] sm:$0xff] %vm209_vm0, %v286_v33  ;;  %322 = vst.msk [vmem:[#allocation2 + $0x139] sm:$0xff] %vm209_vm0, %v289_v34  ;;  %v4575_v46 = vpack.c.bf16 %v530_v40, %v530_v40  ;;  %v1038_v47 = vld [vmem:[#allocation2 + $0x20] sm:$0xff]  ;;  %v1037_v48 = vld [vmem:[#allocation2 + $0x18] sm:$0xff]  ;;  %v4585_v55 = vpack.c.bf16 %v533_v45, %v533_v45 }
  0x3b   : > { %321 = vst.msk [vmem:[#allocation2 + $0x129] sm:$0xff] %vm209_vm0, %v288_v41  ;;  %324 = vst.msk [vmem:[#allocation2 + $0x151] sm:$0xff] %vm209_vm0, %v291_v42  ;;  %v1040_v49 = vld [vmem:[#allocation2 + $0x38] sm:$0xff]  ;;  %v532_v50 = vld [vmem:[#allocation2 + $0x69] sm:$0xff]  ;;  %v4577_v51 = vpack.c.bf16 %v1038_v47, %v1038_v47  ;;  %v4579_v52 = vpack.c.bf16 %v1037_v48, %v1037_v48 }
  0x3c   : > { %323 = vst.msk [vmem:[#allocation2 + $0x141] sm:$0xff] %vm209_vm0, %v290_v43  ;;  %v4581_v53 = vpack.c.bf16 %v1040_v49, %v1040_v49  ;;  %v1039_v54 = vld [vmem:[#allocation2 + $0x30] sm:$0xff]  ;;  %v1811_v58 = vld [vmem:[#allocation2 + $0x48] sm:$0xff]  ;;  %v4601_v0 = vpack.c.bf16 %v532_v50, %v532_v50  ;;  %v338_v4 = vld [vmem:[#allocation2 + $0x60] sm:$0xff] }
  0x3d   : > { %657 = vrot.lane.b32.xlu1 %v4551_v35, %s4348_s6  ;;  %663 = vrot.lane.b32.xlu0 %v4557_v37, %s4348_s6  ;;  %v4587_v56 = vpack.c.bf16 %v1039_v54, %v1039_v54  ;;  %v1812_v57 = vld [vmem:[#allocation2 + $0x50] sm:$0xff]  ;;  %v4591_v61 = vpack.c.bf16 %v1811_v58, %v1811_v58  ;;  %493 = vst.msk [vmem:[#allocation3 + $0x8] sm:$0xf] %vm490_vm2, %v4579_v52  ;;  %494 = vst.msk [vmem:[#allocation3 + $0xc] sm:$0xf] %vm490_vm2, %v4577_v51  ;;  %v1044_v3 = vld [vmem:[#allocation2 + $0x68] sm:$0xff] }
  0x3e   : > { %v535_v59 = vld [vmem:[#allocation2 + $0x91] sm:$0xff]  ;;  %v4589_v60 = vpack.c.bf16 %v1812_v57, %v1812_v57  ;;  %496 = vst.msk [vmem:[#allocation3 + $0x14] sm:$0xf] %vm490_vm2, %v4581_v53  ;;  %v534_v6 = vld [vmem:[#allocation2 + $0x81] sm:$0xff]  ;;  %v4607_v7 = vpack.c.bf16 %v1044_v3, %v1044_v3  ;;  %v4609_v8 = vpack.c.bf16 %v338_v4, %v338_v4  ;;  %491 = vst.msk [vmem:[#allocation3] sm:$0xf] %vm490_vm2, %v3830_v1 }
  0x3f   : > { %495 = vst.msk [vmem:[#allocation3 + $0x10] sm:$0xf] %vm490_vm2, %v4587_v56  ;;  %v340_v5 = vld [vmem:[#allocation2 + $0x78] sm:$0xff]  ;;  %497 = vst.msk [vmem:[#allocation3 + $0x18] sm:$0xf] %vm490_vm2, %v4591_v61  ;;  %v4617_v10 = vpack.c.bf16 %v535_v59, %v535_v59  ;;  %v342_v11 = vld [vmem:[#allocation2 + $0x90] sm:$0xff]  ;;  %v4635_v20 = vpack.c.bf16 %v534_v6, %v534_v6 }
  0x40   : > { %498 = vst.msk [vmem:[#allocation3 + $0x1c] sm:$0xf] %vm490_vm2, %v4589_v60  ;;  %v4613_v9 = vpack.c.bf16 %v340_v5, %v340_v5  ;;  %492 = vst.msk [vmem:[#allocation3 + $0x4] sm:$0xf] %vm490_vm2, %v3831_v2  ;;  %v341_v12 = vld [vmem:[#allocation2 + $0x80] sm:$0xff]  ;;  %v344_v13 = vld [vmem:[#allocation2 + $0xa8] sm:$0xff]  ;;  %v4627_v15 = vpack.c.bf16 %v342_v11, %v342_v11 }
  0x41   : > { %661 = vrot.lane.b32.xlu1 %v4561_v39, %s4348_s6  ;;  %667 = vrot.lane.b32.xlu0 %v4568_v44, %s4348_s6  ;;  %v537_v14 = vld [vmem:[#allocation2 + $0xa9] sm:$0xff]  ;;  %499 = vst.msk [vmem:[#allocation3 + $0x20] sm:$0xf] %vm490_vm2, %v4609_v8  ;;  %500 = vst.msk [vmem:[#allocation3 + $0x24] sm:$0xf] %vm490_vm2, %v4607_v7  ;;  %v4629_v16 = vpack.c.bf16 %v341_v12, %v341_v12  ;;  %v4631_v17 = vpack.c.bf16 %v344_v13, %v344_v13  ;;  %v343_v18 = vld [vmem:[#allocation2 + $0x98] sm:$0xff] }
  0x42   : > { %501 = vst.msk [vmem:[#allocation3 + $0x28] sm:$0xf] %vm490_vm2, %v4613_v9  ;;  %v346_v19 = vld [vmem:[#allocation2 + $0xc0] sm:$0xff]  ;;  %v4637_v21 = vpack.c.bf16 %v343_v18, %v343_v18  ;;  %v345_v23 = vld [vmem:[#allocation2 + $0xb0] sm:$0xff]  ;;  %v348_v24 = vld [vmem:[#allocation2 + $0xd8] sm:$0xff]  ;;  %v3876_v29 = vpack.c.bf16 %v537_v14, %v537_v14 }
  0x43   : > { %v4639_v22 = vpack.c.bf16 %v346_v19, %v346_v19  ;;  %v536_v25 = vld [vmem:[#allocation2 + $0x99] sm:$0xff]  ;;  %503 = vst.msk [vmem:[#allocation3 + $0x30] sm:$0xf] %vm490_vm2, %v4627_v15  ;;  %502 = vst.msk [vmem:[#allocation3 + $0x2c] sm:$0xf] %vm490_vm2, %v4629_v16  ;;  %v4647_v26 = vpack.c.bf16 %v345_v23, %v345_v23  ;;  %v4649_v27 = vpack.c.bf16 %v348_v24, %v348_v24  ;;  %v347_v28 = vld [vmem:[#allocation2 + $0xc8] sm:$0xff] }
  0x44   : > { %505 = vst.msk [vmem:[#allocation3 + $0x38] sm:$0xf] %vm490_vm2, %v4631_v17  ;;  %504 = vst.msk [vmem:[#allocation3 + $0x34] sm:$0xf] %vm490_vm2, %v4637_v21  ;;  %v4657_v32 = vpack.c.bf16 %v347_v28, %v347_v28  ;;  %v539_v33 = vld [vmem:[#allocation2 + $0xc1] sm:$0xff]  ;;  %v350_v34 = vld [vmem:[#allocation2 + $0xf0] sm:$0xff]  ;;  %v4665_v38 = vpack.c.bf16 %v536_v25, %v536_v25 }
  0x45   : > { %665 = vrot.lane.b32.xlu1 %v4575_v46, %s4348_s6  ;;  %671 = vrot.lane.b32.xlu0 %v4585_v55, %s4348_s6  ;;  %507 = vst.msk [vmem:[#allocation3 + $0x40] sm:$0xf] %vm490_vm2, %v4639_v22  ;;  %506 = vst.msk [vmem:[#allocation3 + $0x3c] sm:$0xf] %vm490_vm2, %v4647_v26  ;;  %v349_v36 = vld [vmem:[#allocation2 + $0xe0] sm:$0xff]  ;;  %v4669_v40 = vpack.c.bf16 %v350_v34, %v350_v34  ;;  %v538_v42 = vld [vmem:[#allocation2 + $0xb1] sm:$0xff]  ;;  %v3878_v43 = vpack.c.bf16 %v539_v33, %v539_v33 }
  0x46   : > { %509 = vst.msk [vmem:[#allocation3 + $0x48] sm:$0xf] %vm490_vm2, %v4649_v27  ;;  %508 = vst.msk [vmem:[#allocation3 + $0x44] sm:$0xf] %vm490_vm2, %v4657_v32  ;;  %v4671_v41 = vpack.c.bf16 %v349_v36, %v349_v36  ;;  %v541_v45 = vld [vmem:[#allocation2 + $0xd9] sm:$0xff]  ;;  %v352_v47 = vld [vmem:[#allocation2 + $0x108] sm:$0xff]  ;;  %v4680_v49 = vpack.c.bf16 %v538_v42, %v538_v42 }
  0x47   : > { %511 = vst.msk [vmem:[#allocation3 + $0x50] sm:$0xf] %vm490_vm2, %v4669_v40  ;;  %v351_v48 = vld [vmem:[#allocation2 + $0xf8] sm:$0xff]  ;;  %v4682_v50 = vpack.c.bf16 %v352_v47, %v352_v47  ;;  %v540_v57 = vld [vmem:[#allocation2 + $0xc9] sm:$0xff]  ;;  %v3880_v58 = vpack.c.bf16 %v541_v45, %v541_v45  ;;  %v354_v62 = vld [vmem:[#allocation2 + $0x120] sm:$0xff] }
  0x48   : > { %510 = vst.msk [vmem:[#allocation3 + $0x4c] sm:$0xf] %vm490_vm2, %v4671_v41  ;;  %v4684_v54 = vpack.c.bf16 %v351_v48, %v351_v48  ;;  %v543_v59 = vld [vmem:[#allocation2 + $0xf1] sm:$0xff]  ;;  %v3879_v1 = vpack.c.bf16 %v540_v57, %v540_v57  ;;  %v3854_v2 = vpack.c.bf16 %v354_v62, %v354_v62  ;;  %v542_v4 = vld [vmem:[#allocation2 + $0xe1] sm:$0xff]  ;;  %v545_v6 = vld [vmem:[#allocation2 + $0x109] sm:$0xff] }
  0x49   : > { %669 = vrot.lane.b32.xlu1 %v4601_v0, %s4348_s6  ;;  %675 = vrot.lane.b32.xlu0 %v4617_v10, %s4348_s6  ;;  %513 = vst.msk [vmem:[#allocation3 + $0x58] sm:$0xf] %vm490_vm2, %v4682_v50  ;;  %v353_v63 = vld [vmem:[#allocation2 + $0x110] sm:$0xff]  ;;  %v3882_v5 = vpack.c.bf16 %v543_v59, %v543_v59  ;;  %v356_v11 = vld [vmem:[#allocation2 + $0x138] sm:$0xff]  ;;  %v355_v12 = vld [vmem:[#allocation2 + $0x128] sm:$0xff]  ;;  %v3881_v13 = vpack.c.bf16 %v542_v4, %v542_v4 }
  0x4a   : > { %512 = vst.msk [vmem:[#allocation3 + $0x54] sm:$0xf] %vm490_vm2, %v4684_v54  ;;  %v4693_v3 = vpack.c.bf16 %v353_v63, %v353_v63  ;;  %515 = vst.msk [vmem:[#allocation3 + $0x60] sm:$0xf] %vm490_vm2, %v3854_v2  ;;  %v3856_v14 = vpack.c.bf16 %v356_v11, %v356_v11  ;;  %v3855_v18 = vpack.c.bf16 %v355_v12, %v355_v12  ;;  %v544_v19 = vld [vmem:[#allocation2 + $0xf9] sm:$0xff]  ;;  %v547_v24 = vld [vmem:[#allocation2 + $0x121] sm:$0xff] }
  0x4b   : > { %v3884_v23 = vpack.c.bf16 %v545_v6, %v545_v6  ;;  %v358_v25 = vld [vmem:[#allocation2 + $0x150] sm:$0xff]  ;;  %v357_v28 = vld [vmem:[#allocation2 + $0x140] sm:$0xff]  ;;  %v3886_v42 = vpack.c.bf16 %v547_v24, %v547_v24 }
  0x4c   : > { %514 = vst.msk [vmem:[#allocation3 + $0x5c] sm:$0xf] %vm490_vm2, %v4693_v3  ;;  %517 = vst.msk [vmem:[#allocation3 + $0x68] sm:$0xf] %vm490_vm2, %v3856_v14  ;;  %v3858_v33 = vpack.c.bf16 %v358_v25, %v358_v25  ;;  %v3857_v34 = vpack.c.bf16 %v357_v28, %v357_v28  ;;  %v546_v36 = vld [vmem:[#allocation2 + $0x111] sm:$0xff]  ;;  %v548_v47 = vld [vmem:[#allocation2 + $0x129] sm:$0xff] }
  0x4d   : > { %673 = vrot.lane.b32.xlu1 %v4635_v20, %s4348_s6  ;;  %679 = vrot.lane.b32.xlu0 %v3876_v29, %s4348_s6  ;;  %516 = vst.msk [vmem:[#allocation3 + $0x64] sm:$0xf] %vm490_vm2, %v3855_v18  ;;  %v3883_v29 = vpack.c.bf16 %v544_v19, %v544_v19  ;;  %v3885_v45 = vpack.c.bf16 %v546_v36, %v546_v36  ;;  %v551_v57 = vld [vmem:[#allocation2 + $0x151] sm:$0xff]  ;;  %v550_v59 = vld [vmem:[#allocation2 + $0x141] sm:$0xff] }
  0x4e   : > { %519 = vst.msk [vmem:[#allocation3 + $0x70] sm:$0xf] %vm490_vm2, %v3858_v33  ;;  %518 = vst.msk [vmem:[#allocation3 + $0x6c] sm:$0xf] %vm490_vm2, %v3857_v34  ;;  %v3890_v62 = vpack.c.bf16 %v551_v57, %v551_v57  ;;  %v781_v63 = vld [vmem:[#allocation2 + $0xa] sm:$0xff]  ;;  %v780_v2 = vld [vmem:[#allocation2 + $0x2] sm:$0xff] }
  0x4f   : > { %v3895_v4 = vpack.c.bf16 %v781_v63, %v781_v63  ;;  %v3894_v6 = vpack.c.bf16 %v780_v2, %v780_v2  ;;  %v782_v11 = vld [vmem:[#allocation2 + $0x1a] sm:$0xff]  ;;  %v2325_v19 = vld [vmem:[#allocation2 + $0x4a] sm:$0xff] }
  0x51   : > { %677 = vrot.lane.b32.xlu1 %v4665_v38, %s4348_s6  ;;  %683 = vrot.lane.b32.xlu0 %v3878_v43, %s4348_s6  ;;  %v549_v43 = vld [vmem:[#allocation2 + $0x139] sm:$0xff] }
  0x52   : > { %v3888_v48 = vpack.c.bf16 %v549_v43, %v549_v43 }
  0x55   : > { %681 = vrot.lane.b32.xlu1 %v4680_v49, %s4348_s6  ;;  %687 = vrot.lane.b32.xlu0 %v3880_v58, %s4348_s6  ;;  %v3887_v58 = vpack.c.bf16 %v548_v47, %v548_v47 }
  0x59   : > { %685 = vrot.lane.b32.xlu1 %v3879_v1, %s4348_s6  ;;  %691 = vrot.lane.b32.xlu0 %v3882_v5, %s4348_s6  ;;  %v3889_v1 = vpack.c.bf16 %v550_v59, %v550_v59  ;;  %v783_v5 = vld [vmem:[#allocation2 + $0x22] sm:$0xff] }
  0x5a   : > { %v3897_v12 = vpack.c.bf16 %v783_v5, %v783_v5 }
  0x5d   : > { %689 = vrot.lane.b32.xlu1 %v3881_v13, %s4348_s6  ;;  %695 = vrot.lane.b32.xlu0 %v3884_v23, %s4348_s6  ;;  %v3896_v13 = vpack.c.bf16 %v782_v11, %v782_v11  ;;  %v4088_v23 = vpack.c.bf16 %v2325_v19, %v2325_v19 }
  0x61   : > { %693 = vrot.lane.b32.xlu1 %v3883_v29, %s4348_s6  ;;  %699 = vrot.lane.b32.xlu0 %v3886_v42, %s4348_s6 }
  0x65   : > { %697 = vrot.lane.b32.xlu1 %v3885_v45, %s4348_s6  ;;  %703 = vrot.lane.b32.xlu0 %v3888_v48, %s4348_s6  ;;  %v1558_v45 = vld [vmem:[#allocation2 + $0x6a] sm:$0xff] }
  0x69   : > { %701 = vrot.lane.b32.xlu1 %v3887_v58, %s4348_s6  ;;  %707 = vrot.lane.b32.xlu0 %v3890_v62, %s4348_s6 }
  0x6d   : > { %705 = vrot.lane.b32.xlu1 %v3889_v1, %s4348_s6  ;;  %910 = vrot.lane.b32.xlu0 %v3895_v4, %s4349_s7 }
  0x71   : > { %908 = vrot.lane.b32.xlu1 %v3894_v6, %s4349_s7  ;;  %914 = vrot.lane.b32.xlu0 %v3897_v12, %s4349_s7  ;;  %v2330_v6 = vld [vmem:[#allocation2 + $0x82] sm:$0xff] }
  0x75   : > { %912 = vrot.lane.b32.xlu1 %v3896_v13, %s4349_s7  ;;  %1167 = vrot.lane.b32.xlu0 %v4577_v51, %s4350_s8  ;;  %v1554_v51 = vld [vmem:[#allocation2 + $0x3a] sm:$0xff] }
  0x76   : > { %v3993_v14 = vpack.c.bf16 %v1554_v51, %v1554_v51 }
  0x79   : > { %1165 = vrot.lane.b32.xlu1 %v4579_v52, %s4350_s8  ;;  %1171 = vrot.lane.b32.xlu0 %v4581_v53, %s4350_s8  ;;  %v1553_v52 = vld [vmem:[#allocation2 + $0x32] sm:$0xff] }
  0x7a   : > { %v3992_v18 = vpack.c.bf16 %v1553_v52, %v1553_v52 }
  0x7d   : > { %1169 = vrot.lane.b32.xlu1 %v4587_v56, %s4350_s8  ;;  %1424 = vrot.lane.b32.xlu0 %v4551_v35, %s4351_s9 }
  0x81   : > { %1422 = vrot.lane.b32.xlu1 %v4543_v30, %s4351_s9  ;;  %1428 = vrot.lane.b32.xlu0 %v4561_v39, %s4351_s9  ;;  %v4266_v30 = vld [vmem:[%s5787_s1 + $0x10] ss:$0 sps:$4 sm:$0x33]  }
  0x82   : > { %4213 = vmatprep.subr.msk.bf16.mxu0 %vm2768_vm3, %v4266_v30  ;;  %v2770_v35 = vsel %vm2768_vm3, %v4266_v30, 0  ;;  %4214 = vmatprep.subr.msk.bf16.mxu1 %vm2768_vm3, %v4266_v30 }
  0x83   : > { %4170 = vmatpush3.bf16.msra.mxu0 %v2770_v35  ;;  %4210 = vmatpush3.bf16.msra.mxu1 %v2770_v35 }
  0x85   : > { %1426 = vrot.lane.b32.xlu1 %v4545_v31, %s4351_s9  ;;  %1681 = vrot.lane.b32.xlu0 %v3897_v12, %s4352_s10 }
  0x89   : > { %1679 = vrot.lane.b32.xlu1 %v3896_v13, %s4352_s10  ;;  %1685 = vrot.lane.b32.xlu0 %v3993_v14, %s4352_s10 }
  0x8d   : > { %1683 = vrot.lane.b32.xlu1 %v3992_v18, %s4352_s10  ;;  %1939 = vrot.lane.b32.xlu0 %v4581_v53, %s4353_s11  ;;  %v4267_v53 = vld [vmem:[%s5787_s1 + $0x8] sm:$0xff]  }
  0x8e   : > { %4171 = vmatprep.subr.bf16.mxu0 %v4267_v53  ;;  %4208 = vmatprep.subr.bf16.mxu1 %v4267_v53 }
  0x8f   : > { %4172 = vmatpush3.bf16.msra.mxu0 %v4267_v53  ;;  %4211 = vmatpush3.bf16.msra.mxu1 %v4267_v53 }
  0x90   : > { %v652_v24 = vpop.permute.xlu0 %651 }
  0x91   : > { %1937 = vrot.lane.b32.xlu1 %v4587_v56, %s4353_s11  ;;  %1943 = vrot.lane.b32.xlu0 %v4589_v60, %s4353_s11  ;;  %v4268_v56 = vld [vmem:[%s5787_s1] sm:$0xff]   ;;  %748 = vst.msk [vmem:[#allocation3] sm:$0xf] %vm747_vm4, %v652_v24 }
  0x92   : > { %4173 = vmatprep.subr.bf16.mxu0 %v4268_v56  ;;  %4209 = vmatprep.subr.bf16.mxu1 %v4268_v56  ;;  %v1562_v24 = vld [vmem:[#allocation2 + $0x9a] sm:$0xff] }
  0x93   : > { %4174 = vmatpush3.bf16.msra.mxu0 %v4268_v56  ;;  %4212 = vmatpush3.bf16.msra.mxu1 %v4268_v56 }
  0x95   : > { %1941 = vrot.lane.b32.xlu1 %v4591_v61, %s4353_s11  ;;  %2196 = vrot.lane.b32.xlu0 %v4561_v39, %s4354_s14  ;;  %v2326_v39 = vld [vmem:[#allocation2 + $0x52] sm:$0xff] }
  0x99   : > { %2194 = vrot.lane.b32.xlu1 %v4545_v31, %s4354_s14  ;;  %2200 = vrot.lane.b32.xlu0 %v4575_v46, %s4354_s14  ;;  %v4089_v31 = vpack.c.bf16 %v2326_v39, %v2326_v39 }
  0x9d   : > { %2198 = vrot.lane.b32.xlu1 %v4557_v37, %s4354_s14  ;;  %2453 = vrot.lane.b32.xlu0 %v3993_v14, %s4355_s29 }
  0xa1   : > { %2451 = vrot.lane.b32.xlu1 %v3992_v18, %s4355_s29  ;;  %2457 = vrot.lane.b32.xlu0 %v4089_v31, %s4355_s29 }
  0xa2   : > { %v654_v25 = vpop.permute.xlu0 %653 }
  0xa3   : > { %749 = vst.msk [vmem:[#allocation3 + $0x4] sm:$0xf] %vm747_vm4, %v654_v25 }
  0xa5   : > { %2455 = vrot.lane.b32.xlu1 %v4088_v23, %s4355_s29  ;;  %918 = vrot.lane.b32.xlu0 %v3993_v14, %s4349_s7 }
  0xa9   : > { %916 = vrot.lane.b32.xlu1 %v3992_v18, %s4349_s7  ;;  %922 = vrot.lane.b32.xlu0 %v4089_v31, %s4349_s7 }
  0xab   : > { %v656_v28 = vpop.permute.xlu1 %655  ;;  %v660_v29 = vpop.permute.xlu0 %659 }
  0xac   : > { %750 = vst.msk [vmem:[#allocation3 + $0x8] sm:$0xf] %vm747_vm4, %v656_v28  ;;  %752 = vst.msk [vmem:[#allocation3 + $0x10] sm:$0xf] %vm747_vm4, %v660_v29 }
  0xad   : > { %920 = vrot.lane.b32.xlu1 %v4088_v23, %s4349_s7  ;;  %1175 = vrot.lane.b32.xlu0 %v4589_v60, %s4350_s8 }
  0xaf   : > { %v658_v33 = vpop.permute.xlu1 %657  ;;  %v664_v34 = vpop.permute.xlu0 %663 }
  0xb0   : > { %751 = vst.msk [vmem:[#allocation3 + $0xc] sm:$0xf] %vm747_vm4, %v658_v33  ;;  %754 = vst.msk [vmem:[#allocation3 + $0x18] sm:$0xf] %vm747_vm4, %v664_v34 }
  0xb1   : > { %1173 = vrot.lane.b32.xlu1 %v4591_v61, %s4350_s8  ;;  %1179 = vrot.lane.b32.xlu0 %v4607_v7, %s4350_s8 }
  0xb3   : > { %v662_v36 = vpop.permute.xlu1 %661  ;;  %v668_v42 = vpop.permute.xlu0 %667 }
  0xb4   : > { %753 = vst.msk [vmem:[#allocation3 + $0x14] sm:$0xf] %vm747_vm4, %v662_v36  ;;  %756 = vst.msk [vmem:[#allocation3 + $0x20] sm:$0xf] %vm747_vm4, %v668_v42 }
  0xb5   : > { %1177 = vrot.lane.b32.xlu1 %v4609_v8, %s4350_s8  ;;  %1432 = vrot.lane.b32.xlu0 %v4575_v46, %s4351_s9  ;;  %v1557_v46 = vld [vmem:[#allocation2 + $0x62] sm:$0xff] }
  0xb6   : > { %v3996_v58 = vpack.c.bf16 %v1557_v46, %v1557_v46 }
  0xb7   : > { %v666_v60 = vpop.permute.xlu1 %665  ;;  %v672_v61 = vpop.permute.xlu0 %671 }
  0xb8   : > { %755 = vst.msk [vmem:[#allocation3 + $0x1c] sm:$0xf] %vm747_vm4, %v666_v60  ;;  %758 = vst.msk [vmem:[#allocation3 + $0x28] sm:$0xf] %vm747_vm4, %v672_v61  ;;  %v2074_v60 = vld [vmem:[#allocation2 + $0x91] sm:$0xff] }
  0xb9   : > { %1430 = vrot.lane.b32.xlu1 %v4557_v37, %s4351_s9  ;;  %1436 = vrot.lane.b32.xlu0 %v4601_v0, %s4351_s9  ;;  %v3997_v37 = vpack.c.bf16 %v1558_v45, %v1558_v45  ;;  %v2076_v45 = vld [vmem:[#allocation2 + $0xa9] sm:$0xff] }
  0xba   : > { %v4064_v46 = vpack.c.bf16 %v2076_v45, %v2076_v45 }
  0xbb   : > { %v670_v43 = vpop.permute.xlu1 %669  ;;  %v676_v47 = vpop.permute.xlu0 %675 }
  0xbc   : > { %757 = vst.msk [vmem:[#allocation3 + $0x24] sm:$0xf] %vm747_vm4, %v670_v43  ;;  %760 = vst.msk [vmem:[#allocation3 + $0x30] sm:$0xf] %vm747_vm4, %v676_v47 }
  0xbd   : > { %1434 = vrot.lane.b32.xlu1 %v4568_v44, %s4351_s9  ;;  %1689 = vrot.lane.b32.xlu0 %v4089_v31, %s4352_s10 }
  0xbf   : > { %v674_v48 = vpop.permute.xlu1 %673  ;;  %v680_v57 = vpop.permute.xlu0 %679 }
  0xc0   : > { %759 = vst.msk [vmem:[#allocation3 + $0x2c] sm:$0xf] %vm747_vm4, %v674_v48  ;;  %762 = vst.msk [vmem:[#allocation3 + $0x38] sm:$0xf] %vm747_vm4, %v680_v57 }
  0xc1   : > { %1687 = vrot.lane.b32.xlu1 %v4088_v23, %s4352_s10  ;;  %1693 = vrot.lane.b32.xlu0 %v3997_v37, %s4352_s10 }
  0xc3   : > { %v678_v59 = vpop.permute.xlu1 %677  ;;  %v684_v62 = vpop.permute.xlu0 %683 }
  0xc4   : > { %761 = vst.msk [vmem:[#allocation3 + $0x34] sm:$0xf] %vm747_vm4, %v678_v59  ;;  %764 = vst.msk [vmem:[#allocation3 + $0x40] sm:$0xf] %vm747_vm4, %v684_v62 }
  0xc5   : > { %1691 = vrot.lane.b32.xlu1 %v3996_v58, %s4352_s10  ;;  %1947 = vrot.lane.b32.xlu0 %v4607_v7, %s4353_s11 }
  0xc7   : > { %v682_v63 = vpop.permute.xlu1 %681  ;;  %v688_v1 = vpop.permute.xlu0 %687 }
  0xc8   : > { %763 = vst.msk [vmem:[#allocation3 + $0x3c] sm:$0xf] %vm747_vm4, %v682_v63  ;;  %766 = vst.msk [vmem:[#allocation3 + $0x48] sm:$0xf] %vm747_vm4, %v688_v1 }
  0xc9   : > { %1945 = vrot.lane.b32.xlu1 %v4609_v8, %s4353_s11  ;;  %1951 = vrot.lane.b32.xlu0 %v4629_v16, %s4353_s11 }
  0xcb   : > { %v686_v2 = vpop.permute.xlu1 %685  ;;  %v692_v4 = vpop.permute.xlu0 %691 }
  0xcc   : > { %765 = vst.msk [vmem:[#allocation3 + $0x44] sm:$0xf] %vm747_vm4, %v686_v2  ;;  %768 = vst.msk [vmem:[#allocation3 + $0x50] sm:$0xf] %vm747_vm4, %v692_v4 }
  0xcd   : > { %1949 = vrot.lane.b32.xlu1 %v4613_v9, %s4353_s11  ;;  %2204 = vrot.lane.b32.xlu0 %v4601_v0, %s4354_s14  ;;  %v2329_v0 = vld [vmem:[#allocation2 + $0x7a] sm:$0xff] }
  0xce   : > { %v4092_v51 = vpack.c.bf16 %v2329_v0, %v2329_v0  ;;  %v1307_v0 = vld [vmem:[#allocation2 + $0xb1] sm:$0xff] }
  0xcf   : > { %v690_v7 = vpop.permute.xlu1 %689  ;;  %v696_v8 = vpop.permute.xlu0 %695 }
  0xd0   : > { %767 = vst.msk [vmem:[#allocation3 + $0x4c] sm:$0xf] %vm747_vm4, %v690_v7  ;;  %770 = vst.msk [vmem:[#allocation3 + $0x58] sm:$0xf] %vm747_vm4, %v696_v8 }
  0xd1   : > { %2202 = vrot.lane.b32.xlu1 %v4568_v44, %s4354_s14  ;;  %2208 = vrot.lane.b32.xlu0 %v4635_v20, %s4354_s14  ;;  %v4093_v44 = vpack.c.bf16 %v2330_v6, %v2330_v6 }
  0xd3   : > { %v694_v5 = vpop.permute.xlu1 %693  ;;  %v700_v11 = vpop.permute.xlu0 %699 }
  0xd4   : > { %769 = vst.msk [vmem:[#allocation3 + $0x54] sm:$0xf] %vm747_vm4, %v694_v5  ;;  %772 = vst.msk [vmem:[#allocation3 + $0x60] sm:$0xf] %vm747_vm4, %v700_v11 }
  0xd5   : > { %2206 = vrot.lane.b32.xlu1 %v4585_v55, %s4354_s14  ;;  %2461 = vrot.lane.b32.xlu0 %v3997_v37, %s4355_s29 }
  0xd7   : > { %v698_v12 = vpop.permute.xlu1 %697  ;;  %v704_v13 = vpop.permute.xlu0 %703 }
  0xd8   : > { %771 = vst.msk [vmem:[#allocation3 + $0x5c] sm:$0xf] %vm747_vm4, %v698_v12  ;;  %774 = vst.msk [vmem:[#allocation3 + $0x68] sm:$0xf] %vm747_vm4, %v704_v13  ;;  %v3971_v13 = vpack.c.bf16 %v1307_v0, %v1307_v0 }
  0xd9   : > { %2459 = vrot.lane.b32.xlu1 %v3996_v58, %s4355_s29  ;;  %2465 = vrot.lane.b32.xlu0 %v4093_v44, %s4355_s29 }
  0xdb   : > { %v702_v52 = vpop.permute.xlu1 %701  ;;  %v708_v14 = vpop.permute.xlu0 %707 }
  0xdc   : > { %773 = vst.msk [vmem:[#allocation3 + $0x64] sm:$0xf] %vm747_vm4, %v702_v52  ;;  %776 = vst.msk [vmem:[#allocation3 + $0x70] sm:$0xf] %vm747_vm4, %v708_v14  ;;  %v1308_v52 = vld [vmem:[#allocation2 + $0xc1] sm:$0xff] }
  0xdd   : > { %2463 = vrot.lane.b32.xlu1 %v4092_v51, %s4355_s29  ;;  %926 = vrot.lane.b32.xlu0 %v3997_v37, %s4349_s7  ;;  %v2334_v37 = vld [vmem:[#allocation2 + $0xb2] sm:$0xff] }
  0xde   : > { %v4097_v59 = vpack.c.bf16 %v2334_v37, %v2334_v37 }
  0xdf   : > { %v706_v18 = vpop.permute.xlu1 %705  ;;  %v911_v30 = vpop.permute.xlu0 %910 }
  0xe0   : > { %775 = vst.msk [vmem:[#allocation3 + $0x6c] sm:$0xf] %vm747_vm4, %v706_v18 }
  0xe1   : > { %924 = vrot.lane.b32.xlu1 %v3996_v58, %s4349_s7  ;;  %1006 = vst.msk [vmem:[#allocation3 + $0x4] sm:$0xf] %vm1004_vm5, %v911_v30  ;;  %930 = vrot.lane.b32.xlu0 %v4093_v44, %s4349_s7  ;;  %v3972_v30 = vpack.c.bf16 %v1308_v52, %v1308_v52 }
  0xe3   : > { %v909_v35 = vpop.permute.xlu1 %908  ;;  %v915_v53 = vpop.permute.xlu0 %914 }
  0xe4   : > { %1005 = vst.msk [vmem:[#allocation3] sm:$0xf] %vm1004_vm5, %v909_v35  ;;  %1008 = vst.msk [vmem:[#allocation3 + $0xc] sm:$0xf] %vm1004_vm5, %v915_v53  ;;  %v1566_v53 = vld [vmem:[#allocation2 + $0xca] sm:$0xff] }
  0xe5   : > { %928 = vrot.lane.b32.xlu1 %v4092_v51, %s4349_s7  ;;  %1183 = vrot.lane.b32.xlu0 %v4629_v16, %s4350_s8 }
  0xe7   : > { %v913_v56 = vpop.permute.xlu1 %912  ;;  %v1168_v39 = vpop.permute.xlu0 %1167 }
  0xe8   : > { %1007 = vst.msk [vmem:[#allocation3 + $0x8] sm:$0xf] %vm1004_vm5, %v913_v56 }
  0xe9   : > { %1181 = vrot.lane.b32.xlu1 %v4613_v9, %s4350_s8  ;;  %1263 = vst.msk [vmem:[#allocation3 + $0x4] sm:$0xf] %vm1261_vm6, %v1168_v39  ;;  %1187 = vrot.lane.b32.xlu0 %v4637_v21, %s4350_s8  ;;  %v1565_v39 = vld [vmem:[#allocation2 + $0xc2] sm:$0xff] }
  0xeb   : > { %v1166_v19 = vpop.permute.xlu1 %1165  ;;  %v1172_v31 = vpop.permute.xlu0 %1171 }
  0xec   : > { %1262 = vst.msk [vmem:[#allocation3] sm:$0xf] %vm1261_vm6, %v1166_v19  ;;  %1265 = vst.msk [vmem:[#allocation3 + $0xc] sm:$0xf] %vm1261_vm6, %v1172_v31  ;;  %v4005_v31 = vpack.c.bf16 %v1566_v53, %v1566_v53 }
  0xed   : > { %1185 = vrot.lane.b32.xlu1 %v4627_v15, %s4350_s8  ;;  %1440 = vrot.lane.b32.xlu0 %v4635_v20, %s4351_s9  ;;  %v1561_v20 = vld [vmem:[#allocation2 + $0x92] sm:$0xff] }
  0xee   : > { %v4000_v33 = vpack.c.bf16 %v1561_v20, %v1561_v20 }
  0xef   : > { %v1170_v16 = vpop.permute.xlu1 %1169  ;;  %v1425_v9 = vpop.permute.xlu0 %1424 }
  0xf0   : > { %1264 = vst.msk [vmem:[#allocation3 + $0x8] sm:$0xf] %vm1261_vm6, %v1170_v16 }
  0xf1   : > { %1438 = vrot.lane.b32.xlu1 %v4585_v55, %s4351_s9  ;;  %1520 = vst.msk [vmem:[#allocation3 + $0x4] sm:$0xf] %vm1518_vm7, %v1425_v9  ;;  %1444 = vrot.lane.b32.xlu0 %v4665_v38, %s4351_s9  ;;  %v4001_v55 = vpack.c.bf16 %v1562_v24, %v1562_v24  ;;  %v4004_v9 = vpack.c.bf16 %v1565_v39, %v1565_v39 }
  0xf3   : > { %v1423_v23 = vpop.permute.xlu1 %1422  ;;  %v1429_v25 = vpop.permute.xlu0 %1428 }
  0xf4   : > { %1519 = vst.msk [vmem:[#allocation3] sm:$0xf] %vm1518_vm7, %v1423_v23  ;;  %1522 = vst.msk [vmem:[#allocation3 + $0xc] sm:$0xf] %vm1518_vm7, %v1429_v25 }
  0xf5   : > { %1442 = vrot.lane.b32.xlu1 %v4617_v10, %s4351_s9  ;;  %1697 = vrot.lane.b32.xlu0 %v4093_v44, %s4352_s10 }
  0xf7   : > { %v1427_v28 = vpop.permute.xlu1 %1426  ;;  %v1682_v29 = vpop.permute.xlu0 %1681 }
  0xf8   : > { %1521 = vst.msk [vmem:[#allocation3 + $0x8] sm:$0xf] %vm1518_vm7, %v1427_v28 }
  0xf9   : > { %1695 = vrot.lane.b32.xlu1 %v4092_v51, %s4352_s10  ;;  %1777 = vst.msk [vmem:[#allocation3 + $0x4] sm:$0xf] %vm1775_vm8, %v1682_v29  ;;  %1701 = vrot.lane.b32.xlu0 %v4001_v55, %s4352_s10 }
  0xfb   : > { %v1680_v34 = vpop.permute.xlu1 %1679  ;;  %v1686_v10 = vpop.permute.xlu0 %1685 }
  0xfc   : > { %1776 = vst.msk [vmem:[#allocation3] sm:$0xf] %vm1775_vm8, %v1680_v34  ;;  %1779 = vst.msk [vmem:[#allocation3 + $0xc] sm:$0xf] %vm1775_vm8, %v1686_v10  ;;  %v292_v34 = vld [vmem:[%s4495_s5 + $0xd8] sm:$0xff] }
  0xfd   : > { %1699 = vrot.lane.b32.xlu1 %v4000_v33, %s4352_s10  ;;  %1955 = vrot.lane.b32.xlu0 %v4637_v21, %s4353_s11  ;;  %v4062_v21 = vpack.c.bf16 %v2074_v60, %v2074_v60  ;;  %325 = vst.msk [vmem:[#allocation2 + $0x159] sm:$0xff] %vm209_vm0, %v292_v34  ;;  %v2338_v60 = vld [vmem:[#allocation2 + $0xe2] sm:$0xff] }
  0xfe   : > { %v4976_v45 = vpack.c.bf16 %v2338_v60, %v2338_v60 }
  0xff   : > { %v1684_v36 = vpop.permute.xlu1 %1683  ;;  %v1940_v42 = vpop.permute.xlu0 %1939 }
 0x100   : > { %1778 = vst.msk [vmem:[#allocation3 + $0x8] sm:$0xf] %vm1775_vm8, %v1684_v36 }
 0x101   : > { %1953 = vrot.lane.b32.xlu1 %v4627_v15, %s4353_s11  ;;  %2035 = vst.msk [vmem:[#allocation3 + $0x4] sm:$0xf] %vm2033_vm9, %v1940_v42  ;;  %1959 = vrot.lane.b32.xlu0 %v4647_v26, %s4353_s11 }
 0x103   : > { %v1938_v61 = vpop.permute.xlu1 %1937  ;;  %v1944_v43 = vpop.permute.xlu0 %1943 }
 0x104   : > { %2034 = vst.msk [vmem:[#allocation3] sm:$0xf] %vm2033_vm9, %v1938_v61  ;;  %2037 = vst.msk [vmem:[#allocation3 + $0xc] sm:$0xf] %vm2033_vm9, %v1944_v43  ;;  %v2337_v43 = vld [vmem:[#allocation2 + $0xda] sm:$0xff] }
 0x105   : > { %1957 = vrot.lane.b32.xlu1 %v4631_v17, %s4353_s11  ;;  %2212 = vrot.lane.b32.xlu0 %v4665_v38, %s4354_s14  ;;  %v2333_v38 = vld [vmem:[#allocation2 + $0xaa] sm:$0xff] }
 0x107   : > { %v1942_v15 = vpop.permute.xlu1 %1941  ;;  %v2197_v47 = vpop.permute.xlu0 %2196 }
 0x108   : > { %2036 = vst.msk [vmem:[#allocation3 + $0x8] sm:$0xf] %vm2033_vm9, %v1942_v15  ;;  %v1064_v15 = vld [vmem:[#allocation2 + $0x158] sm:$0xff] }
 0x109   : > { %2210 = vrot.lane.b32.xlu1 %v4062_v21, %s4354_s14  ;;  %2292 = vst.msk [vmem:[#allocation3 + $0x4] sm:$0xf] %vm2290_vm10, %v2197_v47  ;;  %2216 = vrot.lane.b32.xlu0 %v4680_v49, %s4354_s14  ;;  %v4096_v49 = vpack.c.bf16 %v2333_v38, %v2333_v38 }
 0x10b   : > { %v2195_v48 = vpop.permute.xlu1 %2194  ;;  %v2201_v57 = vpop.permute.xlu0 %2200 }
 0x10c   : > { %2291 = vst.msk [vmem:[#allocation3] sm:$0xf] %vm2290_vm10, %v2195_v48  ;;  %2294 = vst.msk [vmem:[#allocation3 + $0xc] sm:$0xf] %vm2290_vm10, %v2201_v57  ;;  %v4982_v48 = vpack.c.bf16 %v1064_v15, %v1064_v15 }
 0x10d   : > { %2214 = vrot.lane.b32.xlu1 %v4064_v46, %s4354_s14  ;;  %2469 = vrot.lane.b32.xlu0 %v4001_v55, %s4355_s29 }
 0x10e   : > { %520 = vst.msk [vmem:[#allocation3 + $0x74] sm:$0xf] %vm490_vm2, %v4982_v48 }
 0x10f   : > { %v2199_v58 = vpop.permute.xlu1 %2198  ;;  %v2454_v62 = vpop.permute.xlu0 %2453 }
 0x110   : > { %2293 = vst.msk [vmem:[#allocation3 + $0x8] sm:$0xf] %vm2290_vm10, %v2199_v58 }
 0x111   : > { %2467 = vrot.lane.b32.xlu1 %v4000_v33, %s4355_s29  ;;  %2549 = vst.msk [vmem:[#allocation3 + $0x4] sm:$0xf] %vm2547_vm11, %v2454_v62  ;;  %2473 = vrot.lane.b32.xlu0 %v4097_v59, %s4355_s29 }
 0x113   : > { %v2452_v63 = vpop.permute.xlu1 %2451  ;;  %v2458_v1 = vpop.permute.xlu0 %2457 }
 0x114   : > { %2548 = vst.msk [vmem:[#allocation3] sm:$0xf] %vm2547_vm11, %v2452_v63  ;;  %2551 = vst.msk [vmem:[#allocation3 + $0xc] sm:$0xf] %vm2547_vm11, %v2458_v1 }
 0x115   : > { %2471 = vrot.lane.b32.xlu1 %v4096_v49, %s4355_s29  ;;  %934 = vrot.lane.b32.xlu0 %v4001_v55, %s4349_s7  ;;  %v2081_v55 = vld [vmem:[#allocation2 + $0xe1] sm:$0xff] }
 0x117   : > { %v2456_v2 = vpop.permute.xlu1 %2455  ;;  %v919_v4 = vpop.permute.xlu0 %918 }
 0x118   : > { %2550 = vst.msk [vmem:[#allocation3 + $0x8] sm:$0xf] %vm2547_vm11, %v2456_v2  ;;  %v293_v2 = vld [vmem:[%s4495_s5 + $0xe0] sm:$0xff] }
 0x119   : > { %932 = vrot.lane.b32.xlu1 %v4000_v33, %s4349_s7  ;;  %1010 = vst.msk [vmem:[#allocation3 + $0x14] sm:$0xf] %vm1004_vm5, %v919_v4  ;;  %938 = vrot.lane.b32.xlu0 %v4097_v59, %s4349_s7  ;;  %v294_v4 = vld [vmem:[%s4495_s5 + $0xe8] sm:$0xff] }
 0x11a   : > { %326 = vst.msk [vmem:[#allocation2 + $0x169] sm:$0xff] %vm209_vm0, %v293_v2  ;;  %327 = vst.msk [vmem:[#allocation2 + $0x171] sm:$0xff] %vm209_vm0, %v294_v4  ;;  %v1317_v4 = vld [vmem:[#allocation2 + $0x129] sm:$0xff] }
 0x11b   : > { %v917_v7 = vpop.permute.xlu1 %916  ;;  %v4269_v8 = vld [vmem:[#allocation3] sm:$0xff]   ;;  %v923_v5 = vpop.permute.xlu0 %922 }
 0x11c   : > { %1009 = vst.msk [vmem:[#allocation3 + $0x10] sm:$0xf] %vm1004_vm5, %v917_v7  ;;  %4175 = vmatprep.mubr.msk.bf16.mxu0 %vm2719_vm12, %v4269_v8  ;;  %1012 = vst.msk [vmem:[#allocation3 + $0x1c] sm:$0xf] %vm1004_vm5, %v923_v5  ;;  %v1313_v8 = vld [vmem:[#allocation2 + $0xf9] sm:$0xff] }
 0x11d   : > { %936 = vrot.lane.b32.xlu1 %v4096_v49, %s4349_s7  ;;  %1191 = vrot.lane.b32.xlu0 %v4647_v26, %s4350_s8  ;;  %v1309_v26 = vld [vmem:[#allocation2 + $0xc9] sm:$0xff] }
 0x11e   : > { %v3973_v14 = vpack.c.bf16 %v1309_v26, %v1309_v26 }
 0x11f   : > { %v921_v6 = vpop.permute.xlu1 %920  ;;  %v4270_v11 = vld [vmem:[#allocation3 + $0x8] sm:$0xff]   ;;  %v1176_v12 = vpop.permute.xlu0 %1175 }
 0x120   : > { %1011 = vst.msk [vmem:[#allocation3 + $0x18] sm:$0xf] %vm1004_vm5, %v921_v6  ;;  %4176 = vmatmul.mubr.msk.bf16.vlgmr.msra.gmra.mxu0 %vm2719_vm12, %v4270_v11  ;;  %v3977_v11 = vpack.c.bf16 %v1313_v8, %v1313_v8 }
 0x121   : > { %1189 = vrot.lane.b32.xlu1 %v4631_v17, %s4350_s8  ;;  %1267 = vst.msk [vmem:[#allocation3 + $0x14] sm:$0xf] %vm1261_vm6, %v1176_v12  ;;  %1195 = vrot.lane.b32.xlu0 %v4657_v32, %s4350_s8  ;;  %v1836_v0 = vld [vmem:[#allocation2 + $0x170] sm:$0xff]  ;;  %v1835_v26 = vld [vmem:[#allocation2 + $0x168] sm:$0xff] }
 0x122   : > { %v5030_v52 = vpack.c.bf16 %v1835_v26, %v1835_v26 }
 0x123   : > { %v1174_v44 = vpop.permute.xlu1 %1173  ;;  %v1180_v51 = vpop.permute.xlu0 %1179 }
 0x124   : > { %1266 = vst.msk [vmem:[#allocation3 + $0x10] sm:$0xf] %vm1261_vm6, %v1174_v44  ;;  %1269 = vst.msk [vmem:[#allocation3 + $0x1c] sm:$0xf] %vm1261_vm6, %v1180_v51 }
 0x125   : > { %1193 = vrot.lane.b32.xlu1 %v4639_v22, %s4350_s8  ;;  %1448 = vrot.lane.b32.xlu0 %v3971_v13, %s4351_s9  ;;  %v5026_v13 = vpack.c.bf16 %v1836_v0, %v1836_v0  ;;  %521 = vst.msk [vmem:[#allocation3 + $0x78] sm:$0xf] %vm490_vm2, %v5030_v52  ;;  %v1574_v0 = vld [vmem:[#allocation2 + $0x12a] sm:$0xff] }
 0x127   : > { %v1178_v17 = vpop.permute.xlu1 %1177  ;;  %v1433_v18 = vpop.permute.xlu0 %1432  ;;  %522 = vst.msk [vmem:[#allocation3 + $0x7c] sm:$0xf] %vm490_vm2, %v5026_v13 }
 0x128   : > { %1268 = vst.msk [vmem:[#allocation3 + $0x18] sm:$0xf] %vm1261_vm6, %v1178_v17  ;;  %v1570_v17 = vld [vmem:[#allocation2 + $0xfa] sm:$0xff] }
 0x129   : > { %1446 = vrot.lane.b32.xlu1 %v4064_v46, %s4351_s9  ;;  %1524 = vst.msk [vmem:[#allocation3 + $0x14] sm:$0xf] %vm1518_vm7, %v1433_v18  ;;  %1452 = vrot.lane.b32.xlu0 %v3973_v14, %s4351_s9  ;;  %v4980_v46 = vpack.c.bf16 %v2337_v43, %v2337_v43  ;;  %v1569_v18 = vld [vmem:[#allocation2 + $0xf2] sm:$0xff] }
 0x12a   : > { %v1058_v43 = vld [vmem:[#allocation2 + $0x110] sm:$0xff] }
 0x12b   : > { %v1431_v35 = vpop.permute.xlu1 %1430  ;;  %v1437_v56 = vpop.permute.xlu0 %1436 }
 0x12c   : > { %1523 = vst.msk [vmem:[#allocation3 + $0x10] sm:$0xf] %vm1518_vm7, %v1431_v35  ;;  %1526 = vst.msk [vmem:[#allocation3 + $0x1c] sm:$0xf] %vm1518_vm7, %v1437_v56  ;;  %v4009_v35 = vpack.c.bf16 %v1570_v17, %v1570_v17  ;;  %v4008_v56 = vpack.c.bf16 %v1569_v18, %v1569_v18 }
 0x12d   : > { %1450 = vrot.lane.b32.xlu1 %v3972_v30, %s4351_s9  ;;  %1705 = vrot.lane.b32.xlu0 %v4097_v59, %s4352_s10 }
 0x12f   : > { %v1435_v19 = vpop.permute.xlu1 %1434  ;;  %v1690_v16 = vpop.permute.xlu0 %1689 }
 0x130   : > { %1525 = vst.msk [vmem:[#allocation3 + $0x18] sm:$0xf] %vm1518_vm7, %v1435_v19 }
 0x131   : > { %1703 = vrot.lane.b32.xlu1 %v4096_v49, %s4352_s10  ;;  %1781 = vst.msk [vmem:[#allocation3 + $0x14] sm:$0xf] %vm1775_vm8, %v1690_v16  ;;  %1709 = vrot.lane.b32.xlu0 %v4005_v31, %s4352_s10 }
 0x133   : > { %v1688_v23 = vpop.permute.xlu1 %1687  ;;  %v1694_v24 = vpop.permute.xlu0 %1693 }
 0x134   : > { %1780 = vst.msk [vmem:[#allocation3 + $0x10] sm:$0xf] %vm1775_vm8, %v1688_v23  ;;  %1783 = vst.msk [vmem:[#allocation3 + $0x1c] sm:$0xf] %vm1775_vm8, %v1694_v24  ;;  %v2085_v23 = vld [vmem:[#allocation2 + $0x111] sm:$0xff] }
 0x135   : > { %1707 = vrot.lane.b32.xlu1 %v4004_v9, %s4352_s10  ;;  %1963 = vrot.lane.b32.xlu0 %v4657_v32, %s4353_s11  ;;  %v2080_v32 = vld [vmem:[#allocation2 + $0xd9] sm:$0xff] }
 0x136   : > { %v4965_v36 = vpack.c.bf16 %v2080_v32, %v2080_v32  ;;  %v2341_v32 = vld [vmem:[#allocation2 + $0x10a] sm:$0xff] }
 0x137   : > { %v1692_v25 = vpop.permute.xlu1 %1691  ;;  %v1948_v20 = vpop.permute.xlu0 %1947 }
 0x138   : > { %1782 = vst.msk [vmem:[#allocation3 + $0x18] sm:$0xf] %vm1775_vm8, %v1692_v25  ;;  %v5062_v25 = vpack.c.bf16 %v2085_v23, %v2085_v23 }
 0x139   : > { %1961 = vrot.lane.b32.xlu1 %v4639_v22, %s4353_s11  ;;  %2039 = vst.msk [vmem:[#allocation3 + $0x14] sm:$0xf] %vm2033_vm9, %v1948_v20  ;;  %1967 = vrot.lane.b32.xlu0 %v4671_v41, %s4353_s11  ;;  %v4960_v22 = vpack.c.bf16 %v2081_v55, %v2081_v55  ;;  %v295_v55 = vld [vmem:[%s4495_s5 + $0xf0] sm:$0xff] }
 0x13a   : > { %328 = vst.msk [vmem:[#allocation2 + $0x181] sm:$0xff] %vm209_vm0, %v295_v55  ;;  %v2345_v55 = vld [vmem:[#allocation2 + $0x13a] sm:$0xff] }
 0x13b   : > { %v1946_v28 = vpop.permute.xlu1 %1945  ;;  %v1952_v29 = vpop.permute.xlu0 %1951 }
 0x13c   : > { %2038 = vst.msk [vmem:[#allocation3 + $0x10] sm:$0xf] %vm2033_vm9, %v1946_v28  ;;  %2041 = vst.msk [vmem:[#allocation3 + $0x1c] sm:$0xf] %vm2033_vm9, %v1952_v29  ;;  %v2342_v28 = vld [vmem:[#allocation2 + $0x112] sm:$0xff] }
 0x13d   : > { %1965 = vrot.lane.b32.xlu1 %v4649_v27, %s4353_s11  ;;  %2220 = vrot.lane.b32.xlu0 %v3973_v14, %s4354_s14 }
 0x13f   : > { %v1950_v33 = vpop.permute.xlu1 %1949  ;;  %v2205_v10 = vpop.permute.xlu0 %2204 }
 0x140   : > { %2040 = vst.msk [vmem:[#allocation3 + $0x18] sm:$0xf] %vm2033_vm9, %v1950_v33 }
 0x141   : > { %2218 = vrot.lane.b32.xlu1 %v3972_v30, %s4354_s14  ;;  %2296 = vst.msk [vmem:[#allocation3 + $0x14] sm:$0xf] %vm2290_vm10, %v2205_v10  ;;  %2224 = vrot.lane.b32.xlu0 %v4960_v22, %s4354_s14  ;;  %v5082_v10 = vpack.c.bf16 %v2341_v32, %v2341_v32 }
 0x143   : > { %v2203_v42 = vpop.permute.xlu1 %2202  ;;  %v2209_v61 = vpop.permute.xlu0 %2208 }
 0x144   : > { %2295 = vst.msk [vmem:[#allocation3 + $0x10] sm:$0xf] %vm2290_vm10, %v2203_v42  ;;  %2298 = vst.msk [vmem:[#allocation3 + $0x1c] sm:$0xf] %vm2290_vm10, %v2209_v61 }
 0x145   : > { %2222 = vrot.lane.b32.xlu1 %v4965_v36, %s4354_s14  ;;  %2477 = vrot.lane.b32.xlu0 %v4005_v31, %s4355_s29 }
 0x147   : > { %v2207_v21 = vpop.permute.xlu1 %2206  ;;  %v2462_v47 = vpop.permute.xlu0 %2461 }
 0x148   : > { %2297 = vst.msk [vmem:[#allocation3 + $0x18] sm:$0xf] %vm2290_vm10, %v2207_v21 }
 0x149   : > { %2475 = vrot.lane.b32.xlu1 %v4004_v9, %s4355_s29  ;;  %2553 = vst.msk [vmem:[#allocation3 + $0x14] sm:$0xf] %vm2547_vm11, %v2462_v47  ;;  %2481 = vrot.lane.b32.xlu0 %v4976_v45, %s4355_s29 }
 0x14b   : > { %v2460_v37 = vpop.permute.xlu1 %2459  ;;  %v2466_v57 = vpop.permute.xlu0 %2465 }
 0x14c   : > { %2552 = vst.msk [vmem:[#allocation3 + $0x10] sm:$0xf] %vm2547_vm11, %v2460_v37  ;;  %2555 = vst.msk [vmem:[#allocation3 + $0x1c] sm:$0xf] %vm2547_vm11, %v2466_v57  ;;  %v1060_v37 = vld [vmem:[#allocation2 + $0x128] sm:$0xff] }
 0x14d   : > { %2479 = vrot.lane.b32.xlu1 %v4980_v46, %s4355_s29  ;;  %942 = vrot.lane.b32.xlu0 %v4005_v31, %s4349_s7 }
 0x14f   : > { %v2464_v38 = vpop.permute.xlu1 %2463  ;;  %v927_v58 = vpop.permute.xlu0 %926 }
 0x150   : > { %2554 = vst.msk [vmem:[#allocation3 + $0x18] sm:$0xf] %vm2547_vm11, %v2464_v38 }
 0x151   : > { %940 = vrot.lane.b32.xlu1 %v4004_v9, %s4349_s7  ;;  %1014 = vst.msk [vmem:[#allocation3 + $0x24] sm:$0xf] %vm1004_vm5, %v927_v58  ;;  %946 = vrot.lane.b32.xlu0 %v4976_v45, %s4349_s7  ;;  %v1059_v58 = vld [vmem:[#allocation2 + $0x120] sm:$0xff] }
 0x153   : > { %v925_v59 = vpop.permute.xlu1 %924  ;;  %v4271_v62 = vld [vmem:[#allocation3 + $0x10] sm:$0xff]   ;;  %v931_v49 = vpop.permute.xlu0 %930 }
 0x154   : > { %1013 = vst.msk [vmem:[#allocation3 + $0x20] sm:$0xf] %vm1004_vm5, %v925_v59  ;;  %4179 = vmatprep.mubr.msk.bf16.mxu0 %vm2719_vm12, %v4271_v62  ;;  %1016 = vst.msk [vmem:[#allocation3 + $0x2c] sm:$0xf] %vm1004_vm5, %v931_v49  ;;  %v3949_v49 = vpack.c.bf16 %v1060_v37, %v1060_v37 }
 0x155   : > { %944 = vrot.lane.b32.xlu1 %v4980_v46, %s4349_s7  ;;  %1199 = vrot.lane.b32.xlu0 %v4671_v41, %s4350_s8 }
 0x157   : > { %v929_v63 = vpop.permute.xlu1 %928  ;;  %v4272_v1 = vld [vmem:[#allocation3 + $0x18] sm:$0xff]   ;;  %v1184_v7 = vpop.permute.xlu0 %1183 }
 0x158   : > { %1015 = vst.msk [vmem:[#allocation3 + $0x28] sm:$0xf] %vm1004_vm5, %v929_v63  ;;  %4180 = vmatmul.mubr.msk.bf16.gmra.mxu0 %vm2719_vm12, %v4272_v1  ;;  %v3948_v1 = vpack.c.bf16 %v1059_v58, %v1059_v58  ;;  %v1320_v58 = vld [vmem:[#allocation2 + $0x151] sm:$0xff] }
 0x159   : > { %1197 = vrot.lane.b32.xlu1 %v4649_v27, %s4350_s8  ;;  %1271 = vst.msk [vmem:[#allocation3 + $0x24] sm:$0xf] %vm1261_vm6, %v1184_v7  ;;  %1203 = vrot.lane.b32.xlu0 %v4684_v54, %s4350_s8  ;;  %v1312_v27 = vld [vmem:[#allocation2 + $0xf1] sm:$0xff] }
 0x15a   : > { %v3976_v44 = vpack.c.bf16 %v1312_v27, %v1312_v27 }
 0x15b   : > { %v1182_v41 = vpop.permute.xlu1 %1181  ;;  %v1188_v5 = vpop.permute.xlu0 %1187 }
 0x15c   : > { %1270 = vst.msk [vmem:[#allocation3 + $0x20] sm:$0xf] %vm1261_vm6, %v1182_v41  ;;  %1273 = vst.msk [vmem:[#allocation3 + $0x2c] sm:$0xf] %vm1261_vm6, %v1188_v5  ;;  %v1316_v41 = vld [vmem:[#allocation2 + $0x121] sm:$0xff]  ;;  %v3981_v5 = vpack.c.bf16 %v1317_v4, %v1317_v4 }
 0x15d   : > { %1201 = vrot.lane.b32.xlu1 %v4669_v40, %s4350_s8  ;;  %1456 = vrot.lane.b32.xlu0 %v4960_v22, %s4351_s9  ;;  %v5078_v22 = vpack.c.bf16 %v2342_v28, %v2342_v28 }
 0x15f   : > { %v1186_v6 = vpop.permute.xlu1 %1185  ;;  %v1441_v12 = vpop.permute.xlu0 %1440 }
 0x160   : > { %1272 = vst.msk [vmem:[#allocation3 + $0x28] sm:$0xf] %vm1261_vm6, %v1186_v6  ;;  %v3980_v6 = vpack.c.bf16 %v1316_v41, %v1316_v41 }
 0x161   : > { %1454 = vrot.lane.b32.xlu1 %v4965_v36, %s4351_s9  ;;  %1528 = vst.msk [vmem:[#allocation3 + $0x24] sm:$0xf] %vm1518_vm7, %v1441_v12  ;;  %1460 = vrot.lane.b32.xlu0 %v3977_v11, %s4351_s9  ;;  %v296_v36 = vld [vmem:[%s4495_s5 + $0xf8] sm:$0xff] }
 0x162   : > { %329 = vst.msk [vmem:[#allocation2 + $0x189] sm:$0xff] %vm209_vm0, %v296_v36 }
 0x163   : > { %v1439_v51 = vpop.permute.xlu1 %1438  ;;  %v1445_v14 = vpop.permute.xlu0 %1444 }
 0x164   : > { %1527 = vst.msk [vmem:[#allocation3 + $0x20] sm:$0xf] %vm1518_vm7, %v1439_v51  ;;  %1530 = vst.msk [vmem:[#allocation3 + $0x2c] sm:$0xf] %vm1518_vm7, %v1445_v14  ;;  %v4013_v51 = vpack.c.bf16 %v1574_v0, %v1574_v0 }
 0x165   : > { %1458 = vrot.lane.b32.xlu1 %v3976_v44, %s4351_s9  ;;  %1713 = vrot.lane.b32.xlu0 %v4976_v45, %s4352_s10  ;;  %v1057_v45 = vld [vmem:[#allocation2 + $0x108] sm:$0xff] }
 0x166   : > { %v3946_v38 = vpack.c.bf16 %v1057_v45, %v1057_v45 }
 0x167   : > { %v1443_v30 = vpop.permute.xlu1 %1442  ;;  %v1698_v53 = vpop.permute.xlu0 %1697 }
 0x168   : > { %1529 = vst.msk [vmem:[#allocation3 + $0x28] sm:$0xf] %vm1518_vm7, %v1443_v30  ;;  %v1832_v30 = vld [vmem:[#allocation2 + $0x140] sm:$0xff] }
 0x169   : > { %1711 = vrot.lane.b32.xlu1 %v4980_v46, %s4352_s10  ;;  %1785 = vst.msk [vmem:[#allocation3 + $0x24] sm:$0xf] %vm1775_vm8, %v1698_v53  ;;  %1717 = vrot.lane.b32.xlu0 %v4009_v35, %s4352_s10  ;;  %v3947_v46 = vpack.c.bf16 %v1058_v43, %v1058_v43  ;;  %v1831_v53 = vld [vmem:[#allocation2 + $0x138] sm:$0xff] }
 0x16b   : > { %v1696_v39 = vpop.permute.xlu1 %1695  ;;  %v1702_v19 = vpop.permute.xlu0 %1701 }
 0x16c   : > { %1784 = vst.msk [vmem:[#allocation3 + $0x20] sm:$0xf] %vm1775_vm8, %v1696_v39  ;;  %1787 = vst.msk [vmem:[#allocation3 + $0x2c] sm:$0xf] %vm1775_vm8, %v1702_v19  ;;  %v4045_v39 = vpack.c.bf16 %v1832_v30, %v1832_v30  ;;  %v2093_v30 = vld [vmem:[#allocation2 + $0x171] sm:$0xff] }
 0x16d   : > { %1715 = vrot.lane.b32.xlu1 %v4008_v56, %s4352_s10  ;;  %1971 = vrot.lane.b32.xlu0 %v4684_v54, %s4353_s11  ;;  %v2084_v54 = vld [vmem:[#allocation2 + $0x109] sm:$0xff] }
 0x16e   : > { %v5066_v20 = vpack.c.bf16 %v2084_v54, %v2084_v54 }
 0x16f   : > { %v1700_v31 = vpop.permute.xlu1 %1699  ;;  %v1956_v16 = vpop.permute.xlu0 %1955 }
 0x170   : > { %1786 = vst.msk [vmem:[#allocation3 + $0x28] sm:$0xf] %vm1775_vm8, %v1700_v31  ;;  %v4044_v31 = vpack.c.bf16 %v1831_v53, %v1831_v53 }
 0x171   : > { %1969 = vrot.lane.b32.xlu1 %v4669_v40, %s4353_s11  ;;  %2043 = vst.msk [vmem:[#allocation3 + $0x24] sm:$0xf] %vm2033_vm9, %v1956_v16  ;;  %1975 = vrot.lane.b32.xlu0 %v4693_v3, %s4353_s11 }
 0x173   : > { %v1954_v9 = vpop.permute.xlu1 %1953  ;;  %v1960_v24 = vpop.permute.xlu0 %1959 }
 0x174   : > { %2042 = vst.msk [vmem:[#allocation3 + $0x20] sm:$0xf] %vm2033_vm9, %v1954_v9  ;;  %2045 = vst.msk [vmem:[#allocation3 + $0x2c] sm:$0xf] %vm2033_vm9, %v1960_v24  ;;  %v2089_v9 = vld [vmem:[#allocation2 + $0x141] sm:$0xff]  ;;  %v2088_v24 = vld [vmem:[#allocation2 + $0x139] sm:$0xff] }
 0x175   : > { %1973 = vrot.lane.b32.xlu1 %v4682_v50, %s4353_s11  ;;  %2228 = vrot.lane.b32.xlu0 %v3977_v11, %s4354_s14 }
 0x177   : > { %v1958_v40 = vpop.permute.xlu1 %1957  ;;  %v2213_v3 = vpop.permute.xlu0 %2212 }
 0x178   : > { %2044 = vst.msk [vmem:[#allocation3 + $0x28] sm:$0xf] %vm2033_vm9, %v1958_v40  ;;  %v4077_v40 = vpack.c.bf16 %v2089_v9, %v2089_v9  ;;  %v5240_v9 = vpack.c.bf16 %v2093_v30, %v2093_v30 }
 0x179   : > { %2226 = vrot.lane.b32.xlu1 %v3976_v44, %s4354_s14  ;;  %2300 = vst.msk [vmem:[#allocation3 + $0x24] sm:$0xf] %vm2290_vm10, %v2213_v3  ;;  %2232 = vrot.lane.b32.xlu0 %v5062_v25, %s4354_s14  ;;  %v1573_v44 = vld [vmem:[#allocation2 + $0x122] sm:$0xff]  ;;  %v4076_v3 = vpack.c.bf16 %v2088_v24, %v2088_v24 }
 0x17a   : > { %v4012_v14 = vpack.c.bf16 %v1573_v44, %v1573_v44 }
 0x17b   : > { %v2211_v50 = vpop.permute.xlu1 %2210  ;;  %v2217_v29 = vpop.permute.xlu0 %2216 }
 0x17c   : > { %2299 = vst.msk [vmem:[#allocation3 + $0x20] sm:$0xf] %vm2290_vm10, %v2211_v50  ;;  %2302 = vst.msk [vmem:[#allocation3 + $0x2c] sm:$0xf] %vm2290_vm10, %v2217_v29  ;;  %v2346_v50 = vld [vmem:[#allocation2 + $0x142] sm:$0xff] }
 0x17d   : > { %2230 = vrot.lane.b32.xlu1 %v5066_v20, %s4354_s14  ;;  %2485 = vrot.lane.b32.xlu0 %v4009_v35, %s4355_s29  ;;  %v4109_v32 = vpack.c.bf16 %v2346_v50, %v2346_v50 }
 0x17f   : > { %v2215_v33 = vpop.permute.xlu1 %2214  ;;  %v2470_v34 = vpop.permute.xlu0 %2469 }
 0x180   : > { %2301 = vst.msk [vmem:[#allocation3 + $0x28] sm:$0xf] %vm2290_vm10, %v2215_v33 }
 0x181   : > { %2483 = vrot.lane.b32.xlu1 %v4008_v56, %s4355_s29  ;;  %2557 = vst.msk [vmem:[#allocation3 + $0x24] sm:$0xf] %vm2547_vm11, %v2470_v34  ;;  %2489 = vrot.lane.b32.xlu0 %v5078_v22, %s4355_s29 }
 0x183   : > { %v2468_v42 = vpop.permute.xlu1 %2467  ;;  %v2474_v60 = vpop.permute.xlu0 %2473 }
 0x184   : > { %2556 = vst.msk [vmem:[#allocation3 + $0x20] sm:$0xf] %vm2547_vm11, %v2468_v42  ;;  %2559 = vst.msk [vmem:[#allocation3 + $0x2c] sm:$0xf] %vm2547_vm11, %v2474_v60 }
 0x185   : > { %2487 = vrot.lane.b32.xlu1 %v5082_v10, %s4355_s29  ;;  %950 = vrot.lane.b32.xlu0 %v4009_v35, %s4349_s7 }
 0x187   : > { %v2472_v61 = vpop.permute.xlu1 %2471  ;;  %v935_v21 = vpop.permute.xlu0 %934 }
 0x188   : > { %2558 = vst.msk [vmem:[#allocation3 + $0x28] sm:$0xf] %vm2547_vm11, %v2472_v61 }
 0x189   : > { %948 = vrot.lane.b32.xlu1 %v4008_v56, %s4349_s7  ;;  %1018 = vst.msk [vmem:[#allocation3 + $0x34] sm:$0xf] %vm1004_vm5, %v935_v21  ;;  %954 = vrot.lane.b32.xlu0 %v5078_v22, %s4349_s7  ;;  %v1063_v21 = vld [vmem:[#allocation2 + $0x150] sm:$0xff] }
 0x18b   : > { %v933_v15 = vpop.permute.xlu1 %932  ;;  %v4273_v47 = vld [vmem:[#allocation3 + $0x20] sm:$0xff]   ;;  %v939_v57 = vpop.permute.xlu0 %938 }
 0x18c   : > { %1017 = vst.msk [vmem:[#allocation3 + $0x30] sm:$0xf] %vm1004_vm5, %v933_v15  ;;  %4183 = vmatprep.mubr.msk.bf16.mxu0 %vm2719_vm12, %v4273_v47  ;;  %1020 = vst.msk [vmem:[#allocation3 + $0x3c] sm:$0xf] %vm1004_vm5, %v939_v57  ;;  %v1321_v57 = vld [vmem:[#allocation2 + $0x159] sm:$0xff] }
 0x18d   : > { %952 = vrot.lane.b32.xlu1 %v5082_v10, %s4349_s7  ;;  %1207 = vrot.lane.b32.xlu0 %v3947_v46, %s4350_s8  ;;  %v3952_v46 = vpack.c.bf16 %v1063_v21, %v1063_v21 }
 0x18f   : > { %v937_v59 = vpop.permute.xlu1 %936  ;;  %v4274_v62 = vld [vmem:[#allocation3 + $0x28] sm:$0xff]   ;;  %v1192_v63 = vpop.permute.xlu0 %1191 }
 0x190   : > { %1019 = vst.msk [vmem:[#allocation3 + $0x38] sm:$0xf] %vm1004_vm5, %v937_v59  ;;  %4184 = vmatmul.mubr.msk.bf16.gmra.mxu0 %vm2719_vm12, %v4274_v62  ;;  %v5177_v62 = vpack.c.bf16 %v1321_v57, %v1321_v57  ;;  %v1068_v57 = vld [vmem:[#allocation2 + $0x188] sm:$0xff] }
 0x191   : > { %1205 = vrot.lane.b32.xlu1 %v3946_v38, %s4350_s8  ;;  %1275 = vst.msk [vmem:[#allocation3 + $0x34] sm:$0xf] %vm1261_vm6, %v1192_v63  ;;  %1211 = vrot.lane.b32.xlu0 %v3949_v49, %s4350_s8  ;;  %v3984_v63 = vpack.c.bf16 %v1320_v58, %v1320_v58  ;;  %v1324_v58 = vld [vmem:[#allocation2 + $0x181] sm:$0xff] }
 0x193   : > { %v1190_v2 = vpop.permute.xlu1 %1189  ;;  %v1196_v7 = vpop.permute.xlu0 %1195 }
 0x194   : > { %1274 = vst.msk [vmem:[#allocation3 + $0x30] sm:$0xf] %vm1261_vm6, %v1190_v2  ;;  %1277 = vst.msk [vmem:[#allocation3 + $0x3c] sm:$0xf] %vm1261_vm6, %v1196_v7  ;;  %v1578_v2 = vld [vmem:[#allocation2 + $0x15a] sm:$0xff]  ;;  %v1577_v7 = vld [vmem:[#allocation2 + $0x152] sm:$0xff] }
 0x195   : > { %1209 = vrot.lane.b32.xlu1 %v3948_v1, %s4350_s8  ;;  %1464 = vrot.lane.b32.xlu0 %v5062_v25, %s4351_s9 }
 0x197   : > { %v1194_v8 = vpop.permute.xlu1 %1193  ;;  %v1449_v27 = vpop.permute.xlu0 %1448 }
 0x198   : > { %1276 = vst.msk [vmem:[#allocation3 + $0x38] sm:$0xf] %vm1261_vm6, %v1194_v8  ;;  %v5188_v8 = vpack.c.bf16 %v1578_v2, %v1578_v2 }
 0x199   : > { %1462 = vrot.lane.b32.xlu1 %v5066_v20, %s4351_s9  ;;  %1532 = vst.msk [vmem:[#allocation3 + $0x34] sm:$0xf] %vm1518_vm7, %v1449_v27  ;;  %1468 = vrot.lane.b32.xlu0 %v3981_v5, %s4351_s9  ;;  %v5192_v27 = vpack.c.bf16 %v1577_v7, %v1577_v7 }
 0x19b   : > { %v1447_v11 = vpop.permute.xlu1 %1446  ;;  %v1453_v12 = vpop.permute.xlu0 %1452 }
 0x19c   : > { %1531 = vst.msk [vmem:[#allocation3 + $0x30] sm:$0xf] %vm1518_vm7, %v1447_v11  ;;  %1534 = vst.msk [vmem:[#allocation3 + $0x3c] sm:$0xf] %vm1518_vm7, %v1453_v12  ;;  %v5206_v12 = vld [vmem:[%s5788_s2] ss:$0 sm:$0xff] }
 0x19d   : > { %1466 = vrot.lane.b32.xlu1 %v3980_v6, %s4351_s9  ;;  %1721 = vrot.lane.b32.xlu0 %v5078_v22, %s4352_s10  ;;  %v4108_v22 = vpack.c.bf16 %v2345_v55, %v2345_v55 }
 0x19f   : > { %v1451_v26 = vpop.permute.xlu1 %1450  ;;  %v1706_v17 = vpop.permute.xlu0 %1705 }
 0x1a0   : > { %1533 = vst.msk [vmem:[#allocation3 + $0x38] sm:$0xf] %vm1518_vm7, %v1451_v26 }
 0x1a1   : > { %1719 = vrot.lane.b32.xlu1 %v5082_v10, %s4352_s10  ;;  %1789 = vst.msk [vmem:[#allocation3 + $0x34] sm:$0xf] %vm1775_vm8, %v1706_v17  ;;  %1725 = vrot.lane.b32.xlu0 %v4013_v51, %s4352_s10 }
 0x1a3   : > { %v1704_v18 = vpop.permute.xlu1 %1703  ;;  %v1710_v35 = vpop.permute.xlu0 %1709 }
 0x1a4   : > { %1788 = vst.msk [vmem:[#allocation3 + $0x30] sm:$0xf] %vm1775_vm8, %v1704_v18  ;;  %1791 = vst.msk [vmem:[#allocation3 + $0x3c] sm:$0xf] %vm1775_vm8, %v1710_v35 }
 0x1a5   : > { %1723 = vrot.lane.b32.xlu1 %v4012_v14, %s4352_s10  ;;  %1979 = vrot.lane.b32.xlu0 %v3949_v49, %s4353_s11 }
 0x1a7   : > { %v1708_v56 = vpop.permute.xlu1 %1707  ;;  %v1964_v19 = vpop.permute.xlu0 %1963 }
 0x1a8   : > { %1790 = vst.msk [vmem:[#allocation3 + $0x38] sm:$0xf] %vm1775_vm8, %v1708_v56 }
 0x1a9   : > { %1977 = vrot.lane.b32.xlu1 %v3948_v1, %s4353_s11  ;;  %2047 = vst.msk [vmem:[#allocation3 + $0x34] sm:$0xf] %vm2033_vm9, %v1964_v19  ;;  %1983 = vrot.lane.b32.xlu0 %v4045_v39, %s4353_s11  ;;  %v2092_v19 = vld [vmem:[#allocation2 + $0x169] sm:$0xff] }
 0x1ab   : > { %v1962_v16 = vpop.permute.xlu1 %1961  ;;  %v1968_v23 = vpop.permute.xlu0 %1967 }
 0x1ac   : > { %2046 = vst.msk [vmem:[#allocation3 + $0x30] sm:$0xf] %vm2033_vm9, %v1962_v16  ;;  %2049 = vst.msk [vmem:[#allocation3 + $0x3c] sm:$0xf] %vm2033_vm9, %v1968_v23 }
 0x1ad   : > { %1981 = vrot.lane.b32.xlu1 %v4044_v31, %s4353_s11  ;;  %2236 = vrot.lane.b32.xlu0 %v3981_v5, %s4354_s14 }
 0x1af   : > { %v1966_v54 = vpop.permute.xlu1 %1965  ;;  %v2221_v25 = vpop.permute.xlu0 %2220 }
 0x1b0   : > { %2048 = vst.msk [vmem:[#allocation3 + $0x38] sm:$0xf] %vm2033_vm9, %v1966_v54 }
 0x1b1   : > { %2234 = vrot.lane.b32.xlu1 %v3980_v6, %s4354_s14  ;;  %2304 = vst.msk [vmem:[#allocation3 + $0x34] sm:$0xf] %vm2290_vm10, %v2221_v25  ;;  %2240 = vrot.lane.b32.xlu0 %v4077_v40, %s4354_s14 }
 0x1b3   : > { %v2219_v20 = vpop.permute.xlu1 %2218  ;;  %v2225_v28 = vpop.permute.xlu0 %2224 }
 0x1b4   : > { %2303 = vst.msk [vmem:[#allocation3 + $0x30] sm:$0xf] %vm2290_vm10, %v2219_v20  ;;  %2306 = vst.msk [vmem:[#allocation3 + $0x3c] sm:$0xf] %vm2290_vm10, %v2225_v28  ;;  %v2349_v20 = vld [vmem:[#allocation2 + $0x16a] sm:$0xff] }
 0x1b5   : > { %2238 = vrot.lane.b32.xlu1 %v4076_v3, %s4354_s14  ;;  %2493 = vrot.lane.b32.xlu0 %v4013_v51, %s4355_s29  ;;  %v5268_v55 = vpack.c.bf16 %v2349_v20, %v2349_v20 }
 0x1b7   : > { %v2223_v29 = vpop.permute.xlu1 %2222  ;;  %v2478_v33 = vpop.permute.xlu0 %2477 }
 0x1b8   : > { %2305 = vst.msk [vmem:[#allocation3 + $0x38] sm:$0xf] %vm2290_vm10, %v2223_v29 }
 0x1b9   : > { %2491 = vrot.lane.b32.xlu1 %v4012_v14, %s4355_s29  ;;  %2561 = vst.msk [vmem:[#allocation3 + $0x34] sm:$0xf] %vm2547_vm11, %v2478_v33  ;;  %2497 = vrot.lane.b32.xlu0 %v4109_v32, %s4355_s29 }
 0x1bb   : > { %v2476_v34 = vpop.permute.xlu1 %2475  ;;  %v2482_v10 = vpop.permute.xlu0 %2481 }
 0x1bc   : > { %2560 = vst.msk [vmem:[#allocation3 + $0x30] sm:$0xf] %vm2547_vm11, %v2476_v34  ;;  %2563 = vst.msk [vmem:[#allocation3 + $0x3c] sm:$0xf] %vm2547_vm11, %v2482_v10 }
 0x1bd   : > { %2495 = vrot.lane.b32.xlu1 %v4108_v22, %s4355_s29  ;;  %958 = vrot.lane.b32.xlu0 %v4013_v51, %s4349_s7 }
 0x1bf   : > { %v2480_v36 = vpop.permute.xlu1 %2479  ;;  %v943_v42 = vpop.permute.xlu0 %942 }
 0x1c0   : > { %2562 = vst.msk [vmem:[#allocation3 + $0x38] sm:$0xf] %vm2547_vm11, %v2480_v36 }
 0x1c1   : > { %956 = vrot.lane.b32.xlu1 %v4012_v14, %s4349_s7  ;;  %1022 = vst.msk [vmem:[#allocation3 + $0x44] sm:$0xf] %vm1004_vm5, %v943_v42  ;;  %962 = vrot.lane.b32.xlu0 %v4109_v32, %s4349_s7 }
 0x1c3   : > { %v941_v60 = vpop.permute.xlu1 %940  ;;  %v4275_v61 = vld [vmem:[#allocation3 + $0x30] sm:$0xff]   ;;  %v947_v43 = vpop.permute.xlu0 %946 }
 0x1c4   : > { %1021 = vst.msk [vmem:[#allocation3 + $0x40] sm:$0xf] %vm1004_vm5, %v941_v60  ;;  %4187 = vmatprep.mubr.msk.bf16.mxu0 %vm2719_vm12, %v4275_v61  ;;  %1024 = vst.msk [vmem:[#allocation3 + $0x4c] sm:$0xf] %vm1004_vm5, %v947_v43 }
 0x1c5   : > { %960 = vrot.lane.b32.xlu1 %v4108_v22, %s4349_s7  ;;  %1215 = vrot.lane.b32.xlu0 %v4045_v39, %s4350_s8 }
 0x1c7   : > { %v945_v45 = vpop.permute.xlu1 %944  ;;  %v4276_v15 = vld [vmem:[#allocation3 + $0x38] sm:$0xff]   ;;  %v1200_v47 = vpop.permute.xlu0 %1199 }
 0x1c8   : > { %1023 = vst.msk [vmem:[#allocation3 + $0x48] sm:$0xf] %vm1004_vm5, %v945_v45  ;;  %4188 = vmatmul.mubr.msk.bf16.gmra.mxu0 %vm2719_vm12, %v4276_v15  ;;  %v1067_v45 = vld [vmem:[#allocation2 + $0x180] sm:$0xff] }
 0x1c9   : > { %1213 = vrot.lane.b32.xlu1 %v4044_v31, %s4350_s8  ;;  %1279 = vst.msk [vmem:[#allocation3 + $0x44] sm:$0xf] %vm1261_vm6, %v1200_v47  ;;  %1219 = vrot.lane.b32.xlu0 %v4982_v48, %s4350_s8 }
 0x1cb   : > { %v1198_v37 = vpop.permute.xlu1 %1197  ;;  %v1204_v38 = vpop.permute.xlu0 %1203 }
 0x1cc   : > { %1278 = vst.msk [vmem:[#allocation3 + $0x40] sm:$0xf] %vm1261_vm6, %v1198_v37  ;;  %1281 = vst.msk [vmem:[#allocation3 + $0x4c] sm:$0xf] %vm1261_vm6, %v1204_v38 }
 0x1cd   : > { %1217 = vrot.lane.b32.xlu1 %v3952_v46, %s4350_s8  ;;  %1472 = vrot.lane.b32.xlu0 %v4077_v40, %s4351_s9  ;;  %v5251_v40 = vpack.c.bf16 %v2092_v19, %v2092_v19 }
 0x1cf   : > { %v1202_v59 = vpop.permute.xlu1 %1201  ;;  %v1457_v49 = vpop.permute.xlu0 %1456 }
 0x1d0   : > { %1280 = vst.msk [vmem:[#allocation3 + $0x48] sm:$0xf] %vm1261_vm6, %v1202_v59 }
 0x1d1   : > { %1470 = vrot.lane.b32.xlu1 %v4076_v3, %s4351_s9  ;;  %1536 = vst.msk [vmem:[#allocation3 + $0x44] sm:$0xf] %vm1518_vm7, %v1457_v49  ;;  %1476 = vrot.lane.b32.xlu0 %v5177_v62, %s4351_s9  ;;  %v3988_v49 = vpack.c.bf16 %v1324_v58, %v1324_v58 }
 0x1d3   : > { %v1455_v1 = vpop.permute.xlu1 %1454  ;;  %v1461_v4 = vpop.permute.xlu0 %1460 }
 0x1d4   : > { %1535 = vst.msk [vmem:[#allocation3 + $0x40] sm:$0xf] %vm1518_vm7, %v1455_v1  ;;  %1538 = vst.msk [vmem:[#allocation3 + $0x4c] sm:$0xf] %vm1518_vm7, %v1461_v4  ;;  %v1325_v1 = vld [vmem:[#allocation2 + $0x189] sm:$0xff] }
 0x1d5   : > { %1474 = vrot.lane.b32.xlu1 %v3984_v63, %s4351_s9  ;;  %1729 = vrot.lane.b32.xlu0 %v4109_v32, %s4352_s10  ;;  %v2350_v32 = vld [vmem:[#allocation2 + $0x172] sm:$0xff]  ;;  %v3989_v7 = vpack.c.bf16 %v1325_v1, %v1325_v1 }
 0x1d6   : > { %v5279_v34 = vpack.c.bf16 %v2350_v32, %v2350_v32 }
 0x1d7   : > { %v1459_v41 = vpop.permute.xlu1 %1458  ;;  %v1714_v5 = vpop.permute.xlu0 %1713 }
 0x1d8   : > { %1537 = vst.msk [vmem:[#allocation3 + $0x48] sm:$0xf] %vm1518_vm7, %v1459_v41 }
 0x1d9   : > { %1727 = vrot.lane.b32.xlu1 %v4108_v22, %s4352_s10  ;;  %1793 = vst.msk [vmem:[#allocation3 + $0x44] sm:$0xf] %vm1775_vm8, %v1714_v5  ;;  %1733 = vrot.lane.b32.xlu0 %v5188_v8, %s4352_s10 }
 0x1db   : > { %v1712_v6 = vpop.permute.xlu1 %1711  ;;  %v1718_v11 = vpop.permute.xlu0 %1717 }
 0x1dc   : > { %1792 = vst.msk [vmem:[#allocation3 + $0x40] sm:$0xf] %vm1775_vm8, %v1712_v6  ;;  %1795 = vst.msk [vmem:[#allocation3 + $0x4c] sm:$0xf] %vm1775_vm8, %v1718_v11  ;;  %v1839_v11 = vld [vmem:[#allocation2 + $0x198] sm:$0xff] }
 0x1dd   : > { %1731 = vrot.lane.b32.xlu1 %v5192_v27, %s4352_s10  ;;  %1987 = vrot.lane.b32.xlu0 %v4982_v48, %s4353_s11  ;;  %v4052_v30 = vpack.c.bf16 %v1839_v11, %v1839_v11 }
 0x1df   : > { %v1716_v0 = vpop.permute.xlu1 %1715  ;;  %v1972_v44 = vpop.permute.xlu0 %1971 }
 0x1e0   : > { %1794 = vst.msk [vmem:[#allocation3 + $0x48] sm:$0xf] %vm1775_vm8, %v1716_v0  ;;  %v4177_v26 = vpop.f32.mrf.mxu0 }
 0x1e1   : > { %1985 = vrot.lane.b32.xlu1 %v3952_v46, %s4353_s11  ;;  %2051 = vst.msk [vmem:[#allocation3 + $0x44] sm:$0xf] %vm2033_vm9, %v1972_v44  ;;  %v5213_v51 = vadd.f32 %v4177_v26, %v5206_v12  ;;  %1991 = vrot.lane.b32.xlu0 %v5026_v13, %s4353_s11  ;;  %v3956_v46 = vpack.c.bf16 %v1067_v45, %v1067_v45 }
 0x1e2   : > { %v2806_v17 = vpop.f32.mrf.mxu0 }
 0x1e3   : > { %v1970_v48 = vpop.permute.xlu1 %1969  ;;  %v4120_v14 = vpack.c.bf16 %v5213_v51, %v5213_v51  ;;  %v5226_v18 = vadd.f32 %v5206_v12, %v2806_v17  ;;  %v1976_v35 = vpop.permute.xlu0 %1975 }
 0x1e4   : > { %2050 = vst.msk [vmem:[#allocation3 + $0x40] sm:$0xf] %vm2033_vm9, %v1970_v48  ;;  %v4178_v53 = vpop.f32.mrf.mxu0  ;;  %2053 = vst.msk [vmem:[#allocation3 + $0x4c] sm:$0xf] %vm2033_vm9, %v1976_v35 }
 0x1e5   : > { %1989 = vrot.lane.b32.xlu1 %v5030_v52, %s4353_s11  ;;  %3064 = vst.msk [vmem:[%s5218_s22 + $0x8] sm:$0xf] %vm3061_vm13, %v4120_v14  ;;  %v4118_v56 = vpack.c.bf16 %v5226_v18, %v5226_v18  ;;  %v5236_v39 = vadd.f32 %v4178_v53, %v5206_v12  ;;  %2244 = vrot.lane.b32.xlu0 %v5177_v62, %s4354_s14 }
 0x1e6   : > { %v2809_v16 = vpop.f32.mrf.mxu0 }
 0x1e7   : > { %v1974_v31 = vpop.permute.xlu1 %1973  ;;  %3062 = vst.msk [vmem:[%s5218_s22] sm:$0xf] %vm3061_vm13, %v4118_v56  ;;  %v4121_v23 = vpack.c.bf16 %v5236_v39, %v5236_v39  ;;  %v5248_v24 = vadd.f32 %v5206_v12, %v2809_v16  ;;  %v2229_v54 = vpop.permute.xlu0 %2228 }
 0x1e8   : > { %2052 = vst.msk [vmem:[#allocation3 + $0x48] sm:$0xf] %vm2033_vm9, %v1974_v31 }
 0x1e9   : > { %2242 = vrot.lane.b32.xlu1 %v3984_v63, %s4354_s14  ;;  %3065 = vst.msk [vmem:[%s5218_s22 + $0xc] sm:$0xf] %vm3061_vm13, %v4121_v23  ;;  %v4119_v25 = vpack.c.bf16 %v5248_v24, %v5248_v24  ;;  %2248 = vrot.lane.b32.xlu0 %v5240_v9, %s4354_s14 }
 0x1ea   : > { %2308 = vst.msk [vmem:[#allocation3 + $0x44] sm:$0xf] %vm2290_vm10, %v2229_v54 }
 0x1eb   : > { %v2227_v3 = vpop.permute.xlu1 %2226  ;;  %3063 = vst.msk [vmem:[%s5218_s22 + $0x4] sm:$0xf] %vm3061_vm13, %v4119_v25  ;;  %v2233_v50 = vpop.permute.xlu0 %2232 }
 0x1ec   : > { %2307 = vst.msk [vmem:[#allocation3 + $0x40] sm:$0xf] %vm2290_vm10, %v2227_v3  ;;  %2310 = vst.msk [vmem:[#allocation3 + $0x4c] sm:$0xf] %vm2290_vm10, %v2233_v50  ;;  %v2096_v3 = vld [vmem:[#allocation2 + $0x199] sm:$0xff] }
 0x1ed   : > { %2246 = vrot.lane.b32.xlu1 %v5251_v40, %s4354_s14  ;;  %2501 = vrot.lane.b32.xlu0 %v5188_v8, %s4355_s29 }
 0x1ef   : > { %v2231_v28 = vpop.permute.xlu1 %2230  ;;  %v2486_v29 = vpop.permute.xlu0 %2485 }
 0x1f0   : > { %2309 = vst.msk [vmem:[#allocation3 + $0x48] sm:$0xf] %vm2290_vm10, %v2231_v28 }
 0x1f1   : > { %2499 = vrot.lane.b32.xlu1 %v5192_v27, %s4355_s29  ;;  %2565 = vst.msk [vmem:[#allocation3 + $0x44] sm:$0xf] %vm2547_vm11, %v2486_v29  ;;  %2503 = vrot.lane.b32.xlu0 %v5268_v55, %s4355_s29  ;;  %v4084_v29 = vpack.c.bf16 %v2096_v3, %v2096_v3 }
 0x1f3   : > { %v2484_v33 = vpop.permute.xlu1 %2483  ;;  %v2490_v22 = vpop.permute.xlu0 %2489 }
 0x1f4   : > { %2564 = vst.msk [vmem:[#allocation3 + $0x40] sm:$0xf] %vm2547_vm11, %v2484_v33  ;;  %2567 = vst.msk [vmem:[#allocation3 + $0x4c] sm:$0xf] %vm2547_vm11, %v2490_v22  ;;  %v2097_v33 = vld [vmem:[#allocation2 + $0x1a1] sm:$0xff] }
 0x1f5   : > { %709 = vrot.lane.b32.xlu1 %v5177_v62, %s4348_s6  ;;  %711 = vrot.lane.b32.xlu0 %v5251_v40, %s4348_s6 }
 0x1f7   : > { %v2488_v10 = vpop.permute.xlu1 %2487  ;;  %v951_v36 = vpop.permute.xlu0 %950 }
 0x1f8   : > { %2566 = vst.msk [vmem:[#allocation3 + $0x48] sm:$0xf] %vm2547_vm11, %v2488_v10 }
 0x1f9   : > { %2505 = vrot.lane.b32.xlu1 %v5279_v34, %s4355_s29  ;;  %1026 = vst.msk [vmem:[#allocation3 + $0x54] sm:$0xf] %vm1004_vm5, %v951_v36  ;;  %964 = vrot.lane.b32.xlu0 %v5192_v27, %s4349_s7  ;;  %v1582_v27 = vld [vmem:[#allocation2 + $0x18a] sm:$0xff]  ;;  %v4085_v36 = vpack.c.bf16 %v2097_v33, %v2097_v33 }
 0x1fa   : > { %v4021_v26 = vpack.c.bf16 %v1582_v27, %v1582_v27 }
 0x1fb   : > { %v949_v42 = vpop.permute.xlu1 %948  ;;  %v4277_v60 = vld [vmem:[#allocation3 + $0x40] sm:$0xff]   ;;  %v955_v61 = vpop.permute.xlu0 %954 }
 0x1fc   : > { %1025 = vst.msk [vmem:[#allocation3 + $0x50] sm:$0xf] %vm1004_vm5, %v949_v42  ;;  %4191 = vmatprep.mubr.msk.bf16.mxu1 %vm2719_vm12, %v4277_v60  ;;  %1028 = vst.msk [vmem:[#allocation3 + $0x5c] sm:$0xf] %vm1004_vm5, %v955_v61 }
 0x1fd   : > { %713 = vrot.lane.b32.xlu1 %v5240_v9, %s4348_s6  ;;  %968 = vrot.lane.b32.xlu0 %v5268_v55, %s4349_s7  ;;  %s196_s6 = sand.u32 1, %s4337_s16  }
 0x1fe   : > { %s3366_s28 = scalar_lea.sflag [#allocation5], %s196_s6 }
 0x1ff   : > { %v953_v43 = vpop.permute.xlu1 %952  ;;  %v4278_v21 = vld [vmem:[#allocation3 + $0x48] sm:$0xff]   ;;  %v1208_v15 = vpop.permute.xlu0 %1207 }
 0x200   : > { %1027 = vst.msk [vmem:[#allocation3 + $0x58] sm:$0xf] %vm1004_vm5, %v953_v43  ;;  %4192 = vmatmul.mubr.msk.bf16.vlgmr.msra.gmra.mxu1 %vm2719_vm12, %v4278_v21  ;;  %v2354_v43 = vld [vmem:[#allocation2 + $0x1a2] sm:$0xff] }
 0x201   : > { %966 = vrot.lane.b32.xlu1 %v5188_v8, %s4349_s7  ;;  %1283 = vst.msk [vmem:[#allocation3 + $0x54] sm:$0xf] %vm1261_vm6, %v1208_v15  ;;  %1221 = vrot.lane.b32.xlu0 %v5030_v52, %s4350_s8  ;;  %v3957_v52 = vpack.c.bf16 %v1068_v57, %v1068_v57  ;;  %v4117_v15 = vpack.c.bf16 %v2354_v43, %v2354_v43 }
 0x203   : > { %v1206_v47 = vpop.permute.xlu1 %1205  ;;  %v1212_v37 = vpop.permute.xlu0 %1211 }
 0x204   : > { %1282 = vst.msk [vmem:[#allocation3 + $0x50] sm:$0xf] %vm1261_vm6, %v1206_v47  ;;  %1285 = vst.msk [vmem:[#allocation3 + $0x5c] sm:$0xf] %vm1261_vm6, %v1212_v37 }
 0x205   : > { %970 = vrot.lane.b32.xlu1 %v5279_v34, %s4349_s7  ;;  %1225 = vrot.lane.b32.xlu0 %v3956_v46, %s4350_s8  ;;  %s197_s7 = scalar_lea.vmem [#allocation4], %s196_s6 }
 0x207   : > { %v1210_v38 = vpop.permute.xlu1 %1209  ;;  %v1465_v59 = vpop.permute.xlu0 %1464 }
 0x208   : > { %1284 = vst.msk [vmem:[#allocation3 + $0x58] sm:$0xf] %vm1261_vm6, %v1210_v38 }
 0x209   : > { %1223 = vrot.lane.b32.xlu1 %v5026_v13, %s4350_s8  ;;  %1540 = vst.msk [vmem:[#allocation3 + $0x54] sm:$0xf] %vm1518_vm7, %v1465_v59  ;;  %1478 = vrot.lane.b32.xlu0 %v5251_v40, %s4351_s9  ;;  %v1581_v13 = vld [vmem:[#allocation2 + $0x182] sm:$0xff] }
 0x20a   : > { %v4020_v8 = vpack.c.bf16 %v1581_v13, %v1581_v13 }
 0x20b   : > { %v1463_v62 = vpop.permute.xlu1 %1462  ;;  %v1469_v63 = vpop.permute.xlu0 %1468 }
 0x20c   : > { %1539 = vst.msk [vmem:[#allocation3 + $0x50] sm:$0xf] %vm1518_vm7, %v1463_v62  ;;  %1542 = vst.msk [vmem:[#allocation3 + $0x5c] sm:$0xf] %vm1518_vm7, %v1469_v63 }
 0x20d   : > { %1227 = vrot.lane.b32.xlu1 %v3957_v52, %s4350_s8  ;;  %1482 = vrot.lane.b32.xlu0 %v3988_v49, %s4351_s9  ;;  %s3381_s8 = sshll.u32 %s197_s7, 4  ;;  %s5748_s8 = int_to_ptr.vmem [resolvable:$true] %s3381_s8 }
 0x20f   : > { %v1467_v2 = vpop.permute.xlu1 %1466  ;;  %v1722_v4 = vpop.permute.xlu0 %1721 }
 0x210   : > { %1541 = vst.msk [vmem:[#allocation3 + $0x58] sm:$0xf] %vm1518_vm7, %v1467_v2 }
 0x211   : > { %1480 = vrot.lane.b32.xlu1 %v5240_v9, %s4351_s9  ;;  %1797 = vst.msk [vmem:[#allocation3 + $0x54] sm:$0xf] %vm1775_vm8, %v1722_v4  ;;  %1735 = vrot.lane.b32.xlu0 %v5268_v55, %s4352_s10  ;;  %v1840_v9 = vld [vmem:[#allocation2 + $0x1a0] sm:$0xff] }
 0x212   : > { %v4053_v50 = vpack.c.bf16 %v1840_v9, %v1840_v9 }
 0x213   : > { %v1720_v41 = vpop.permute.xlu1 %1719  ;;  %v1726_v5 = vpop.permute.xlu0 %1725 }
 0x214   : > { %1796 = vst.msk [vmem:[#allocation3 + $0x50] sm:$0xf] %vm1775_vm8, %v1720_v41  ;;  %1799 = vst.msk [vmem:[#allocation3 + $0x5c] sm:$0xf] %vm1775_vm8, %v1726_v5 }
 0x215   : > { %1484 = vrot.lane.b32.xlu1 %v3989_v7, %s4351_s9  ;;  %1739 = vrot.lane.b32.xlu0 %v4020_v8, %s4352_s10  ;;  %s3825_s9 = sshll.u32 %s4404_s19, 4  ;;  %s4289_s19 = sshll.u32 %s4357_s30, 4  ;;  %s4290_s19 = int_to_ptr.vmem [resolvable:$false] %s4289_s19 }
 0x216   : > { %s3379_s23 = scalar_lea.hbm %s5790_s4, %s3825_s9  ;;  %s4291_s5 = scalar_lea.vmem %s4290_s19, 32 }
 0x217   : > { %v1724_v6 = vpop.permute.xlu1 %1723  ;;  %v1980_v0 = vpop.permute.xlu0 %1979  ;;  %p4292_p0 = scmp.lt.s32.totalorder %s5748_s8, %s4290_s19 }
 0x218   : > { %1798 = vst.msk [vmem:[#allocation3 + $0x58] sm:$0xf] %vm1775_vm8, %v1724_v6  ;;  %v4181_v44 = vpop.f32.mrf.mxu0 }
 0x219   : > { %1737 = vrot.lane.b32.xlu1 %v5279_v34, %s4352_s10  ;;  %2055 = vst.msk [vmem:[#allocation3 + $0x54] sm:$0xf] %vm2033_vm9, %v1980_v0  ;;  %v5334_v48 = vadd.f32 %v4181_v44, %v5206_v12  ;;  %1993 = vrot.lane.b32.xlu0 %v3956_v46, %s4353_s11  ;;  %v2353_v34 = vld [vmem:[#allocation2 + $0x19a] sm:$0xff] }
 0x21a   : > { %v2822_v14 = vpop.f32.mrf.mxu0  ;;  %v4116_v60 = vpack.c.bf16 %v2353_v34, %v2353_v34 }
 0x21b   : > { %v1978_v17 = vpop.permute.xlu1 %1977  ;;  %v4124_v35 = vpack.c.bf16 %v5334_v48, %v5334_v48  ;;  %v5341_v53 = vadd.f32 %v5206_v12, %v2822_v14  ;;  %v1984_v56 = vpop.permute.xlu0 %1983 }
 0x21c   : > { %2054 = vst.msk [vmem:[#allocation3 + $0x50] sm:$0xf] %vm2033_vm9, %v1978_v17  ;;  %v4182_v19 = vpop.f32.mrf.mxu0  ;;  %2057 = vst.msk [vmem:[#allocation3 + $0x5c] sm:$0xf] %vm2033_vm9, %v1984_v56 }
 0x21d   : > { %1741 = vrot.lane.b32.xlu1 %v4021_v26, %s4352_s10  ;;  %3068 = vst.msk [vmem:[%s5218_s22 + $0x18] sm:$0xf] %vm3061_vm13, %v4124_v35  ;;  %v4122_v31 = vpack.c.bf16 %v5341_v53, %v5341_v53  ;;  %v5350_v16 = vadd.f32 %v4182_v19, %v5206_v12  ;;  %1997 = vrot.lane.b32.xlu0 %v4052_v30, %s4353_s11 }
 0x21e   : > { %v2825_v54 = vpop.f32.mrf.mxu0 }
 0x21f   : > { %v1982_v23 = vpop.permute.xlu1 %1981  ;;  %3066 = vst.msk [vmem:[%s5218_s22 + $0x10] sm:$0xf] %vm3061_vm13, %v4122_v31  ;;  %v4125_v40 = vpack.c.bf16 %v5350_v16, %v5350_v16  ;;  %v5359_v25 = vadd.f32 %v5206_v12, %v2825_v54  ;;  %v2237_v20 = vpop.permute.xlu0 %2236 }
 0x220   : > { %2056 = vst.msk [vmem:[#allocation3 + $0x58] sm:$0xf] %vm2033_vm9, %v1982_v23 }
 0x221   : > { %1995 = vrot.lane.b32.xlu1 %v3957_v52, %s4353_s11  ;;  %3069 = vst.msk [vmem:[%s5218_s22 + $0x1c] sm:$0xf] %vm3061_vm13, %v4125_v40  ;;  %v4123_v28 = vpack.c.bf16 %v5359_v25, %v5359_v25  ;;  %2250 = vrot.lane.b32.xlu0 %v3988_v49, %s4354_s14 }
 0x222   : > { %2312 = vst.msk [vmem:[#allocation3 + $0x54] sm:$0xf] %vm2290_vm10, %v2237_v20 }
 0x223   : > { %v2235_v55 = vpop.permute.xlu1 %2234  ;;  %3067 = vst.msk [vmem:[%s5218_s22 + $0x14] sm:$0xf] %vm3061_vm13, %v4123_v28  ;;  %v2241_v32 = vpop.permute.xlu0 %2240 }
 0x224   : > { %2311 = vst.msk [vmem:[#allocation3 + $0x50] sm:$0xf] %vm2290_vm10, %v2235_v55  ;;  %2314 = vst.msk [vmem:[#allocation3 + $0x5c] sm:$0xf] %vm2290_vm10, %v2241_v32 }
 0x225   : > { %1999 = vrot.lane.b32.xlu1 %v4053_v50, %s4353_s11  ;;  %2254 = vrot.lane.b32.xlu0 %v4084_v29, %s4354_s14 }
 0x227   : > { %v2239_v22 = vpop.permute.xlu1 %2238  ;;  %v2494_v10 = vpop.permute.xlu0 %2493 }
 0x228   : > { %2313 = vst.msk [vmem:[#allocation3 + $0x58] sm:$0xf] %vm2290_vm10, %v2239_v22 }
 0x229   : > { %2252 = vrot.lane.b32.xlu1 %v3989_v7, %s4354_s14  ;;  %2569 = vst.msk [vmem:[#allocation3 + $0x54] sm:$0xf] %vm2547_vm11, %v2494_v10  ;;  %2507 = vrot.lane.b32.xlu0 %v4020_v8, %s4355_s29 }
 0x22b   : > { %v2492_v42 = vpop.permute.xlu1 %2491  ;;  %v2498_v61 = vpop.permute.xlu0 %2497 }
 0x22c   : > { %2568 = vst.msk [vmem:[#allocation3 + $0x50] sm:$0xf] %vm2547_vm11, %v2492_v42  ;;  %2571 = vst.msk [vmem:[#allocation3 + $0x5c] sm:$0xf] %vm2547_vm11, %v2498_v61 }
 0x22d   : > { %2256 = vrot.lane.b32.xlu1 %v4085_v36, %s4354_s14  ;;  %2511 = vrot.lane.b32.xlu0 %v4116_v60, %s4355_s29 }
 0x22f   : > { %v2496_v21 = vpop.permute.xlu1 %2495  ;;  %v959_v45 = vpop.permute.xlu0 %958 }
 0x230   : > { %2570 = vst.msk [vmem:[#allocation3 + $0x58] sm:$0xf] %vm2547_vm11, %v2496_v21 }
 0x231   : > { %2509 = vrot.lane.b32.xlu1 %v4021_v26, %s4355_s29  ;;  %1030 = vst.msk [vmem:[#allocation3 + $0x64] sm:$0xf] %vm1004_vm5, %v959_v45  ;;  %3126 = vrot.lane.b32.xlu0 %v5226_v18, %s4356_s27 }
 0x233   : > { %v957_v47 = vpop.permute.xlu1 %956  ;;  %v4279_v46 = vld [vmem:[#allocation3 + $0x50] sm:$0xff]   ;;  %v963_v37 = vpop.permute.xlu0 %962 }
 0x234   : > { %1029 = vst.msk [vmem:[#allocation3 + $0x60] sm:$0xf] %vm1004_vm5, %v957_v47  ;;  %4195 = vmatprep.mubr.msk.bf16.mxu1 %vm2719_vm12, %v4279_v46  ;;  %1032 = vst.msk [vmem:[#allocation3 + $0x6c] sm:$0xf] %vm1004_vm5, %v963_v37 }
 0x235   : > { %2513 = vrot.lane.b32.xlu1 %v4117_v15, %s4355_s29  ;;  %3130 = vrot.lane.b32.xlu0 %v5213_v51, %s4356_s27  ;;  %s4285_s29 = scalar_lea.vmem %s5748_s8, 16 }
 0x236   : > { %p4286_p11 = scmp.ne.s32.totalorder %s5748_s8, %s4285_s29  ;;  %p4293_p1 = scmp.lt.s32.totalorder %s4291_s5, %s4285_s29 }
 0x237   : > { %v961_v57 = vpop.permute.xlu1 %960  ;;  %v4280_v38 = vld [vmem:[#allocation3 + $0x58] sm:$0xff]   ;;  %v1216_v58 = vpop.permute.xlu0 %1215 }
 0x238   : > { %1031 = vst.msk [vmem:[#allocation3 + $0x68] sm:$0xf] %vm1004_vm5, %v961_v57  ;;  %4196 = vmatmul.mubr.msk.bf16.gmra.mxu1 %vm2719_vm12, %v4280_v38  ;;  %p4287_p12 = pnand %p4286_p11, %p4421_p5  ;;  %p4294_p2 = por %p4293_p1, %p4292_p0 }
 0x239   : > { %3128 = vrot.lane.b32.xlu1 %v5248_v24, %s4356_s27  ;;  %1287 = vst.msk [vmem:[#allocation3 + $0x64] sm:$0xf] %vm1261_vm6, %v1216_v58  ;;  %3134 = vrot.lane.b32.xlu0 %v5341_v53, %s4356_s27 }
 0x23a   : > { %p4288_p13 = pneg %p4287_p12 }
 0x23b   : > { %v1214_v59 = vpop.permute.xlu1 %1213  ;;  %v1220_v52 = vpop.permute.xlu0 %1219 }
 0x23c   : > { %1286 = vst.msk [vmem:[#allocation3 + $0x60] sm:$0xf] %vm1261_vm6, %v1214_v59  ;;  %1289 = vst.msk [vmem:[#allocation3 + $0x6c] sm:$0xf] %vm1261_vm6, %v1220_v52  ;;  %p4295_p3 = pnand %p4294_p2, %p4288_p13 }
 0x23d   : > { %3132 = vrot.lane.b32.xlu1 %v5236_v39, %s4356_s27  ;;  %3138 = vrot.lane.b32.xlu0 %v5334_v48, %s4356_s27 }
 0x23f   : > { %v1218_v62 = vpop.permute.xlu1 %1217  ;;  %v1473_v49 = vpop.permute.xlu0 %1472 }
 0x240   : > { %1288 = vst.msk [vmem:[#allocation3 + $0x68] sm:$0xf] %vm1261_vm6, %v1218_v62 }
 0x241   : > { %3136 = vrot.lane.b32.xlu1 %v5359_v25, %s4356_s27  ;;  %1544 = vst.msk [vmem:[#allocation3 + $0x64] sm:$0xf] %vm1518_vm7, %v1473_v49 }
 0x243   : > { %v1471_v63 = vpop.permute.xlu1 %1470  ;;  %v1477_v1 = vpop.permute.xlu0 %1476 }
 0x244   : > { %1543 = vst.msk [vmem:[#allocation3 + $0x60] sm:$0xf] %vm1518_vm7, %v1471_v63  ;;  %1546 = vst.msk [vmem:[#allocation3 + $0x6c] sm:$0xf] %vm1518_vm7, %v1477_v1 }
 0x245   : > { %3140 = vrot.lane.b32.xlu1 %v5350_v16, %s4356_s27 }
 0x247   : > { %v1475_v2 = vpop.permute.xlu1 %1474  ;;  %v1730_v13 = vpop.permute.xlu0 %1729 }
 0x248   : > { %1545 = vst.msk [vmem:[#allocation3 + $0x68] sm:$0xf] %vm1518_vm7, %v1475_v2 }
 0x249   : > { %1801 = vst.msk [vmem:[#allocation3 + $0x64] sm:$0xf] %vm1775_vm8, %v1730_v13 }
 0x24b   : > { %v1728_v4 = vpop.permute.xlu1 %1727  ;;  %v1734_v7 = vpop.permute.xlu0 %1733 }
 0x24c   : > { %1800 = vst.msk [vmem:[#allocation3 + $0x60] sm:$0xf] %vm1775_vm8, %v1728_v4  ;;  %1803 = vst.msk [vmem:[#allocation3 + $0x6c] sm:$0xf] %vm1775_vm8, %v1734_v7 }
 0x24f   : > { %v1732_v41 = vpop.permute.xlu1 %1731  ;;  %v1988_v8 = vpop.permute.xlu0 %1987 }
 0x250   : > { %1802 = vst.msk [vmem:[#allocation3 + $0x68] sm:$0xf] %vm1775_vm8, %v1732_v41  ;;  %v4185_v5 = vpop.f32.mrf.mxu0 }
 0x251   : > { %2059 = vst.msk [vmem:[#allocation3 + $0x64] sm:$0xf] %vm2033_vm9, %v1988_v8  ;;  %v5421_v27 = vadd.f32 %v4185_v5, %v5206_v12 }
 0x252   : > { %v2838_v11 = vpop.f32.mrf.mxu0 }
 0x253   : > { %v1986_v6 = vpop.permute.xlu1 %1985  ;;  %v4128_v0 = vpack.c.bf16 %v5421_v27, %v5421_v27  ;;  %v5427_v44 = vadd.f32 %v5206_v12, %v2838_v11  ;;  %v1992_v26 = vpop.permute.xlu0 %1991 }
 0x254   : > { %2058 = vst.msk [vmem:[#allocation3 + $0x60] sm:$0xf] %vm2033_vm9, %v1986_v6  ;;  %v4186_v17 = vpop.f32.mrf.mxu0  ;;  %2061 = vst.msk [vmem:[#allocation3 + $0x6c] sm:$0xf] %vm2033_vm9, %v1992_v26 }
 0x255   : > { %3072 = vst.msk [vmem:[%s5218_s22 + $0x28] sm:$0xf] %vm3061_vm13, %v4128_v0  ;;  %v4126_v14 = vpack.c.bf16 %v5427_v44, %v5427_v44  ;;  %v5435_v30 = vadd.f32 %v4186_v17, %v5206_v12  ;;  %3142 = vrot.lane.b32.xlu0 %v5427_v44, %s4356_s27 }
 0x256   : > { %v2841_v56 = vpop.f32.mrf.mxu0 }
 0x257   : > { %v1990_v35 = vpop.permute.xlu1 %1989  ;;  %3070 = vst.msk [vmem:[%s5218_s22 + $0x20] sm:$0xf] %vm3061_vm13, %v4126_v14  ;;  %v4129_v19 = vpack.c.bf16 %v5435_v30, %v5435_v30  ;;  %v5445_v31 = vadd.f32 %v5206_v12, %v2841_v56  ;;  %v2245_v9 = vpop.permute.xlu0 %2244 }
 0x258   : > { %2060 = vst.msk [vmem:[#allocation3 + $0x68] sm:$0xf] %vm2033_vm9, %v1990_v35 }
 0x259   : > { %3073 = vst.msk [vmem:[%s5218_s22 + $0x2c] sm:$0xf] %vm3061_vm13, %v4129_v19  ;;  %v4127_v23 = vpack.c.bf16 %v5445_v31, %v5445_v31  ;;  %3144 = vrot.lane.b32.xlu1 %v5445_v31, %s4356_s27  ;;  %3146 = vrot.lane.b32.xlu0 %v5421_v27, %s4356_s27 }
 0x25a   : > { %2316 = vst.msk [vmem:[#allocation3 + $0x64] sm:$0xf] %vm2290_vm10, %v2245_v9 }
 0x25b   : > { %v2243_v54 = vpop.permute.xlu1 %2242  ;;  %3071 = vst.msk [vmem:[%s5218_s22 + $0x24] sm:$0xf] %vm3061_vm13, %v4127_v23  ;;  %v2249_v40 = vpop.permute.xlu0 %2248 }
 0x25c   : > { %2315 = vst.msk [vmem:[#allocation3 + $0x60] sm:$0xf] %vm2290_vm10, %v2243_v54  ;;  %2318 = vst.msk [vmem:[#allocation3 + $0x6c] sm:$0xf] %vm2290_vm10, %v2249_v40 }
 0x25d   : > { %3148 = vrot.lane.b32.xlu1 %v5435_v30, %s4356_s27 }
 0x25f   : > { %v2247_v3 = vpop.permute.xlu1 %2246  ;;  %v2502_v20 = vpop.permute.xlu0 %2501 }
 0x260   : > { %2317 = vst.msk [vmem:[#allocation3 + $0x68] sm:$0xf] %vm2290_vm10, %v2247_v3 }
 0x261   : > { %2573 = vst.msk [vmem:[#allocation3 + $0x64] sm:$0xf] %vm2547_vm11, %v2502_v20 }
 0x263   : > { %v2500_v50 = vpop.permute.xlu1 %2499  ;;  %v2504_v28 = vpop.permute.xlu0 %2503 }
 0x264   : > { %2572 = vst.msk [vmem:[#allocation3 + $0x60] sm:$0xf] %vm2547_vm11, %v2500_v50  ;;  %2574 = vst.msk [vmem:[#allocation3 + $0x68] sm:$0xf] %vm2547_vm11, %v2504_v28 }
 0x267   : > { %v710_v55 = vpop.permute.xlu1 %709  ;;  %v712_v29 = vpop.permute.xlu0 %711 }
 0x268   : > { %777 = vst.msk [vmem:[#allocation3 + $0x74] sm:$0xf] %vm747_vm4, %v710_v55  ;;  %778 = vst.msk [vmem:[#allocation3 + $0x78] sm:$0xf] %vm747_vm4, %v712_v29 }
 0x26b   : > { %v2506_v32 = vpop.permute.xlu1 %2505  ;;  %v4281_v33 = vld [vmem:[#allocation3 + $0x60] sm:$0xff]   ;;  %v965_v22 = vpop.permute.xlu0 %964 }
 0x26c   : > { %2575 = vst.msk [vmem:[#allocation3 + $0x6c] sm:$0xf] %vm2547_vm11, %v2506_v32  ;;  %4199 = vmatprep.mubr.msk.bf16.mxu1 %vm2719_vm12, %v4281_v33 }
 0x26d   : > { %1033 = vst.msk [vmem:[#allocation3 + $0x70] sm:$0xf] %vm1004_vm5, %v965_v22 }
 0x26f   : > { %v714_v34 = vpop.permute.xlu1 %713  ;;  %v969_v10 = vpop.permute.xlu0 %968 }
 0x270   : > { %779 = vst.msk [vmem:[#allocation3 + $0x7c] sm:$0xf] %vm747_vm4, %v714_v34 }
 0x271   : > { %1035 = vst.msk [vmem:[#allocation3 + $0x78] sm:$0xf] %vm1004_vm5, %v969_v10 }
 0x273   : > { %v967_v36 = vpop.permute.xlu1 %966  ;;  %v4282_v42 = vld [vmem:[#allocation3 + $0x68] sm:$0xff]   ;;  %v1222_v60 = vpop.permute.xlu0 %1221 }
 0x274   : > { %1034 = vst.msk [vmem:[#allocation3 + $0x74] sm:$0xf] %vm1004_vm5, %v967_v36  ;;  %4200 = vmatmul.mubr.msk.bf16.gmra.mxu1 %vm2719_vm12, %v4282_v42 }
 0x275   : > { %1290 = vst.msk [vmem:[#allocation3 + $0x70] sm:$0xf] %vm1261_vm6, %v1222_v60 }
 0x277   : > { %v971_v61 = vpop.permute.xlu1 %970  ;;  %v1226_v43 = vpop.permute.xlu0 %1225 }
 0x278   : > { %1036 = vst.msk [vmem:[#allocation3 + $0x7c] sm:$0xf] %vm1004_vm5, %v971_v61 }
 0x279   : > { %1292 = vst.msk [vmem:[#allocation3 + $0x78] sm:$0xf] %vm1261_vm6, %v1226_v43 }
 0x27b   : > { %v1224_v21 = vpop.permute.xlu1 %1223  ;;  %v1479_v45 = vpop.permute.xlu0 %1478 }
 0x27c   : > { %1291 = vst.msk [vmem:[#allocation3 + $0x74] sm:$0xf] %vm1261_vm6, %v1224_v21 }
 0x27d   : > { %1547 = vst.msk [vmem:[#allocation3 + $0x70] sm:$0xf] %vm1518_vm7, %v1479_v45 }
 0x27f   : > { %v1228_v15 = vpop.permute.xlu1 %1227  ;;  %v1483_v47 = vpop.permute.xlu0 %1482 }
 0x280   : > { %1293 = vst.msk [vmem:[#allocation3 + $0x7c] sm:$0xf] %vm1261_vm6, %v1228_v15 }
 0x281   : > { %1549 = vst.msk [vmem:[#allocation3 + $0x78] sm:$0xf] %vm1518_vm7, %v1483_v47 }
 0x283   : > { %v1481_v46 = vpop.permute.xlu1 %1480  ;;  %v1736_v37 = vpop.permute.xlu0 %1735 }
 0x284   : > { %1548 = vst.msk [vmem:[#allocation3 + $0x74] sm:$0xf] %vm1518_vm7, %v1481_v46 }
 0x285   : > { %1804 = vst.msk [vmem:[#allocation3 + $0x70] sm:$0xf] %vm1775_vm8, %v1736_v37 }
 0x287   : > { %v1485_v57 = vpop.permute.xlu1 %1484  ;;  %v1740_v38 = vpop.permute.xlu0 %1739 }
 0x288   : > { %1550 = vst.msk [vmem:[#allocation3 + $0x7c] sm:$0xf] %vm1518_vm7, %v1485_v57  ;;  %v4189_v58 = vpop.f32.mrf.mxu0 }
 0x289   : > { %1806 = vst.msk [vmem:[#allocation3 + $0x78] sm:$0xf] %vm1775_vm8, %v1740_v38  ;;  %v5487_v59 = vadd.f32 %v4189_v58, %v5206_v12 }
 0x28a   : > { %v2854_v62 = vpop.f32.mrf.mxu0 }
 0x28b   : > { %v1738_v52 = vpop.permute.xlu1 %1737  ;;  %v4132_v49 = vpack.c.bf16 %v5487_v59, %v5487_v59  ;;  %v5493_v63 = vadd.f32 %v5206_v12, %v2854_v62  ;;  %v1994_v1 = vpop.permute.xlu0 %1993 }
 0x28c   : > { %1805 = vst.msk [vmem:[#allocation3 + $0x74] sm:$0xf] %vm1775_vm8, %v1738_v52  ;;  %v4190_v2 = vpop.f32.mrf.mxu0 }
 0x28d   : > { %3076 = vst.msk [vmem:[%s5218_s22 + $0x38] sm:$0xf] %vm3061_vm13, %v4132_v49  ;;  %v4130_v13 = vpack.c.bf16 %v5493_v63, %v5493_v63  ;;  %v5501_v4 = vadd.f32 %v4190_v2, %v5206_v12  ;;  %3150 = vrot.lane.b32.xlu0 %v5493_v63, %s4356_s27 }
 0x28e   : > { %2062 = vst.msk [vmem:[#allocation3 + $0x70] sm:$0xf] %vm2033_vm9, %v1994_v1  ;;  %v2857_v41 = vpop.f32.mrf.mxu0 }
 0x28f   : > { %v1742_v7 = vpop.permute.xlu1 %1741  ;;  %3074 = vst.msk [vmem:[%s5218_s22 + $0x30] sm:$0xf] %vm3061_vm13, %v4130_v13  ;;  %v4133_v8 = vpack.c.bf16 %v5501_v4, %v5501_v4  ;;  %v5511_v5 = vadd.f32 %v5206_v12, %v2857_v41  ;;  %v1998_v6 = vpop.permute.xlu0 %1997 }
 0x290   : > { %1807 = vst.msk [vmem:[#allocation3 + $0x7c] sm:$0xf] %vm1775_vm8, %v1742_v7 }
 0x291   : > { %3077 = vst.msk [vmem:[%s5218_s22 + $0x3c] sm:$0xf] %vm3061_vm13, %v4133_v8  ;;  %v4131_v11 = vpack.c.bf16 %v5511_v5, %v5511_v5  ;;  %3152 = vrot.lane.b32.xlu1 %v5511_v5, %s4356_s27  ;;  %3154 = vrot.lane.b32.xlu0 %v5487_v59, %s4356_s27 }
 0x292   : > { %2064 = vst.msk [vmem:[#allocation3 + $0x78] sm:$0xf] %vm2033_vm9, %v1998_v6 }
 0x293   : > { %v1996_v0 = vpop.permute.xlu1 %1995  ;;  %3075 = vst.msk [vmem:[%s5218_s22 + $0x34] sm:$0xf] %vm3061_vm13, %v4131_v11  ;;  %v2251_v26 = vpop.permute.xlu0 %2250 }
 0x294   : > { %2063 = vst.msk [vmem:[#allocation3 + $0x74] sm:$0xf] %vm2033_vm9, %v1996_v0 }
 0x295   : > { %2319 = vst.msk [vmem:[#allocation3 + $0x70] sm:$0xf] %vm2290_vm10, %v2251_v26  ;;  %3156 = vrot.lane.b32.xlu1 %v5501_v4, %s4356_s27 }
 0x297   : > { %v2000_v17 = vpop.permute.xlu1 %1999  ;;  %v2255_v14 = vpop.permute.xlu0 %2254 }
 0x298   : > { %2065 = vst.msk [vmem:[#allocation3 + $0x7c] sm:$0xf] %vm2033_vm9, %v2000_v17 }
 0x299   : > { %2321 = vst.msk [vmem:[#allocation3 + $0x78] sm:$0xf] %vm2290_vm10, %v2255_v14 }
 0x29b   : > { %v2253_v35 = vpop.permute.xlu1 %2252  ;;  %v2508_v56 = vpop.permute.xlu0 %2507 }
 0x29c   : > { %2320 = vst.msk [vmem:[#allocation3 + $0x74] sm:$0xf] %vm2290_vm10, %v2253_v35 }
 0x29d   : > { %2576 = vst.msk [vmem:[#allocation3 + $0x70] sm:$0xf] %vm2547_vm11, %v2508_v56 }
 0x29f   : > { %v2257_v19 = vpop.permute.xlu1 %2256  ;;  %v2512_v9 = vpop.permute.xlu0 %2511 }
 0x2a0   : > { %2322 = vst.msk [vmem:[#allocation3 + $0x7c] sm:$0xf] %vm2290_vm10, %v2257_v19 }
 0x2a1   : > { %2578 = vst.msk [vmem:[#allocation3 + $0x78] sm:$0xf] %vm2547_vm11, %v2512_v9 }
 0x2a3   : > { %v2510_v23 = vpop.permute.xlu1 %2509 }
 0x2a4   : > { %2577 = vst.msk [vmem:[#allocation3 + $0x74] sm:$0xf] %vm2547_vm11, %v2510_v23 }
 0x2a7   : > { %v2514_v54 = vpop.permute.xlu1 %2513 }
 0x2a8   : > { %2579 = vst.msk [vmem:[#allocation3 + $0x7c] sm:$0xf] %vm2547_vm11, %v2514_v54 }
 0x2ab   : > { %v4283_v40 = vld [vmem:[#allocation3 + $0x70] sm:$0xff]  }
 0x2ac   : > { %4203 = vmatprep.mubr.msk.bf16.mxu1 %vm2719_vm12, %v4283_v40 }
 0x2af   : > { %v4284_v3 = vld [vmem:[#allocation3 + $0x78] sm:$0xff]  }
 0x2b0   : > { %4204 = vmatmul.mubr.msk.bf16.gmra.mxu1 %vm2719_vm12, %v4284_v3 }
 0x2c0   : > { %v4193_v20 = vpop.f32.mrf.mxu1 }
 0x2c1   : > { %v5539_v50 = vadd.f32 %v4193_v20, %v5206_v12 }
 0x2c2   : > { %v2870_v28 = vpop.f32.mrf.mxu1 }
 0x2c3   : > { %v4136_v55 = vpack.c.bf16 %v5539_v50, %v5539_v50  ;;  %v5544_v29 = vadd.f32 %v5206_v12, %v2870_v28  ;;  %v3127_v28 = vpop.permute.xlu0 %3126 }
 0x2c4   : > { %v4194_v32 = vpop.f32.mrf.mxu1 }
 0x2c5   : > { %3080 = vst.msk [vmem:[%s5218_s22 + $0x48] sm:$0xf] %vm3061_vm13, %v4136_v55  ;;  %v4134_v33 = vpack.c.bf16 %v5544_v29, %v5544_v29  ;;  %v5551_v22 = vadd.f32 %v4194_v32, %v5206_v12  ;;  %3158 = vrot.lane.b32.xlu0 %v5544_v29, %s4356_s27  ;;  %v3129_v55 = vpop.permute.xlu1 %3128  ;;  %v3222_v32 = vsub.f32 %v5226_v18, %v3127_v28 }
 0x2c6   : > { %v2873_v34 = vpop.f32.mrf.mxu1 }
 0x2c7   : > { %3078 = vst.msk [vmem:[%s5218_s22 + $0x40] sm:$0xf] %vm3061_vm13, %v4134_v33  ;;  %v4137_v10 = vpack.c.bf16 %v5551_v22, %v5551_v22  ;;  %v5560_v36 = vadd.f32 %v5206_v12, %v2873_v34  ;;  %v3131_v33 = vpop.permute.xlu0 %3130 }
 0x2c9   : > { %3081 = vst.msk [vmem:[%s5218_s22 + $0x4c] sm:$0xf] %vm3061_vm13, %v4137_v10  ;;  %v4135_v42 = vpack.c.bf16 %v5560_v36, %v5560_v36  ;;  %3160 = vrot.lane.b32.xlu1 %v5560_v36, %s4356_s27  ;;  %3162 = vrot.lane.b32.xlu0 %v5539_v50, %s4356_s27  ;;  %v3133_v10 = vpop.permute.xlu1 %3132 }
 0x2cb   : > { %3079 = vst.msk [vmem:[%s5218_s22 + $0x44] sm:$0xf] %vm3061_vm13, %v4135_v42  ;;  %v3254_v42 = vmul.f32 %v3222_v32, %v3222_v32 }
 0x2cd   : > { %3164 = vrot.lane.b32.xlu1 %v5551_v22, %s4356_s27 }
 0x2f8   : > { %v4197_v60 = vpop.f32.mrf.mxu1 }
 0x2f9   : > { %v5575_v61 = vadd.f32 %v4197_v60, %v5206_v12  ;;  %v3224_v60 = vsub.f32 %v5213_v51, %v3131_v33 }
 0x2fa   : > { %v2886_v43 = vpop.f32.mrf.mxu1 }
 0x2fb   : > { %v4140_v21 = vpack.c.bf16 %v5575_v61, %v5575_v61  ;;  %v5580_v45 = vadd.f32 %v5206_v12, %v2886_v43 }
 0x2fc   : > { %v4198_v15 = vpop.f32.mrf.mxu1 }
 0x2fd   : > { %3084 = vst.msk [vmem:[%s5218_s22 + $0x58] sm:$0xf] %vm3061_vm13, %v4140_v21  ;;  %v4138_v47 = vpack.c.bf16 %v5580_v45, %v5580_v45  ;;  %v5587_v46 = vadd.f32 %v4198_v15, %v5206_v12  ;;  %3166 = vrot.lane.b32.xlu0 %v5580_v45, %s4356_s27  ;;  %v3225_v21 = vsub.f32 %v5236_v39, %v3133_v10  ;;  %v3286_v15 = vsel %vm209_vm0, %v3254_v42, 0.0 }
 0x2fe   : > { %v2889_v37 = vpop.f32.mrf.mxu1 }
 0x2ff   : > { %3082 = vst.msk [vmem:[%s5218_s22 + $0x50] sm:$0xf] %vm3061_vm13, %v4138_v47  ;;  %v4141_v57 = vpack.c.bf16 %v5587_v46, %v5587_v46  ;;  %v5596_v38 = vadd.f32 %v5206_v12, %v2889_v37  ;;  %v3256_v47 = vmul.f32 %v3224_v60, %v3224_v60 }
 0x301   : > { %3085 = vst.msk [vmem:[%s5218_s22 + $0x5c] sm:$0xf] %vm3061_vm13, %v4141_v57  ;;  %v4139_v58 = vpack.c.bf16 %v5596_v38, %v5596_v38  ;;  %3168 = vrot.lane.b32.xlu1 %v5596_v38, %s4356_s27  ;;  %3170 = vrot.lane.b32.xlu0 %v5575_v61, %s4356_s27  ;;  %v3135_v57 = vpop.permute.xlu0 %3134 }
 0x302   : > { %v3226_v18 = vsub.f32 %v5341_v53, %v3135_v57 }
 0x303   : > { %3083 = vst.msk [vmem:[%s5218_s22 + $0x54] sm:$0xf] %vm3061_vm13, %v4139_v58  ;;  %v3257_v58 = vmul.f32 %v3225_v21, %v3225_v21 }
 0x305   : > { %3172 = vrot.lane.b32.xlu1 %v5587_v46, %s4356_s27 }
 0x334   : > { %v4201_v52 = vpop.f32.mrf.mxu1 }
 0x335   : > { %v5611_v62 = vadd.f32 %v4201_v52, %v5206_v12  ;;  %v3137_v52 = vpop.permute.xlu1 %3136 }
 0x336   : > { %v2902_v49 = vpop.f32.mrf.mxu1  ;;  %v3227_v51 = vsub.f32 %v5359_v25, %v3137_v52 }
 0x337   : > { %v4144_v1 = vpack.c.bf16 %v5611_v62, %v5611_v62  ;;  %v5616_v2 = vadd.f32 %v5206_v12, %v2902_v49 }
 0x338   : > { %v4202_v13 = vpop.f32.mrf.mxu1  ;;  %v3259_v39 = vmul.f32 %v3227_v51, %v3227_v51 }
 0x339   : > { %3088 = vst.msk [vmem:[%s5218_s22 + $0x68] sm:$0xf] %vm3061_vm13, %v4144_v1  ;;  %v4142_v7 = vpack.c.bf16 %v5616_v2, %v5616_v2  ;;  %v5623_v41 = vadd.f32 %v4202_v13, %v5206_v12  ;;  %3174 = vrot.lane.b32.xlu0 %v5616_v2, %s4356_s27  ;;  %v3291_v1 = vsel %vm209_vm0, %v3257_v58, 0.0  ;;  %v3258_v13 = vmul.f32 %v3226_v18, %v3226_v18 }
 0x33a   : > { %v2905_v8 = vpop.f32.mrf.mxu1 }
 0x33b   : > { %3086 = vst.msk [vmem:[%s5218_s22 + $0x60] sm:$0xf] %vm3061_vm13, %v4142_v7  ;;  %v4145_v6 = vpack.c.bf16 %v5623_v41, %v5623_v41  ;;  %v5632_v11 = vadd.f32 %v5206_v12, %v2905_v8  ;;  %v3139_v8 = vpop.permute.xlu0 %3138 }
 0x33d   : > { %3089 = vst.msk [vmem:[%s5218_s22 + $0x6c] sm:$0xf] %vm3061_vm13, %v4145_v6  ;;  %v4143_v0 = vpack.c.bf16 %v5632_v11, %v5632_v11  ;;  %3176 = vrot.lane.b32.xlu1 %v5632_v11, %s4356_s27  ;;  %3178 = vrot.lane.b32.xlu0 %v5611_v62, %s4356_s27  ;;  %v3141_v6 = vpop.permute.xlu1 %3140 }
 0x33e   : > { %v3229_v53 = vsub.f32 %v5350_v16, %v3141_v6 }
 0x33f   : > { %3087 = vst.msk [vmem:[%s5218_s22 + $0x64] sm:$0xf] %vm3061_vm13, %v4143_v0  ;;  %v3293_v0 = vsel %vm209_vm0, %v3258_v13, 0.0 }
 0x341   : > { %3180 = vrot.lane.b32.xlu1 %v5623_v41, %s4356_s27 }
 0x370   : > { %v4205_v26 = vpop.f32.mrf.mxu1 }
 0x371   : > { %v5647_v17 = vadd.f32 %v4205_v26, %v5206_v12  ;;  %v3228_v26 = vsub.f32 %v5334_v48, %v3139_v8 }
 0x372   : > { %v2918_v14 = vpop.f32.mrf.mxu1 }
 0x373   : > { %v4148_v35 = vpack.c.bf16 %v5647_v17, %v5647_v17  ;;  %v5652_v56 = vadd.f32 %v5206_v12, %v2918_v14 }
 0x374   : > { %v4206_v19 = vpop.f32.mrf.mxu1 }
 0x375   : > { %3092 = vst.msk [vmem:[%s5218_s22 + $0x78] sm:$0xf] %vm3061_vm13, %v4148_v35  ;;  %v4146_v9 = vpack.c.bf16 %v5652_v56, %v5652_v56  ;;  %v5659_v23 = vadd.f32 %v4206_v19, %v5206_v12  ;;  %3182 = vrot.lane.b32.xlu0 %v5652_v56, %s4356_s27  ;;  %v3143_v35 = vpop.permute.xlu0 %3142  ;;  %v3295_v19 = vsel %vm209_vm0, %v3259_v39, 0.0 }
 0x376   : > { %v2921_v54 = vpop.f32.mrf.mxu1 }
 0x377   : > { %3090 = vst.msk [vmem:[%s5218_s22 + $0x70] sm:$0xf] %vm3061_vm13, %v4146_v9  ;;  %v4149_v40 = vpack.c.bf16 %v5659_v23, %v5659_v23  ;;  %v5668_v3 = vadd.f32 %v5206_v12, %v2921_v54  ;;  %v3223_v12 = vsub.f32 %v5248_v24, %v3129_v55  ;;  %v3289_v24 = vsel %vm209_vm0, %v3256_v47, 0.0  ;;  %v3145_v9 = vpop.permute.xlu1 %3144 }
 0x378   : > { %v3260_v54 = vmul.f32 %v3228_v26, %v3228_v26  ;;  %v3231_v28 = vsub.f32 %v5445_v31, %v3145_v9 }
 0x379   : > { %3093 = vst.msk [vmem:[%s5218_s22 + $0x7c] sm:$0xf] %vm3061_vm13, %v4149_v40  ;;  %v4147_v20 = vpack.c.bf16 %v5668_v3, %v5668_v3  ;;  %3184 = vrot.lane.b32.xlu1 %v5668_v3, %s4356_s27  ;;  %3186 = vrot.lane.b32.xlu0 %v5647_v17, %s4356_s27  ;;  %v3255_v34 = vmul.f32 %v3223_v12, %v3223_v12  ;;  %v3147_v33 = vpop.permute.xlu0 %3146 }
 0x37a   : > { %v3230_v40 = vsub.f32 %v5427_v44, %v3143_v35  ;;  %v3297_v55 = vsel %vm209_vm0, %v3260_v54, 0.0  ;;  %v3232_v16 = vsub.f32 %v5421_v27, %v3147_v33 }
 0x37b   : > { %3091 = vst.msk [vmem:[%s5218_s22 + $0x74] sm:$0xf] %vm3061_vm13, %v4147_v20  ;;  %v3287_v43 = vsel %vm209_vm0, %v3255_v34, 0.0  ;;  %v3261_v20 = vmul.f32 %v3229_v53, %v3229_v53  ;;  %v3263_v34 = vmul.f32 %v3231_v28, %v3231_v28  ;;  %v3149_v10 = vpop.permute.xlu1 %3148 }
 0x37c   : > { %v3288_v37 = vadd.f32 %v3287_v43, %v3286_v15  ;;  %v3262_v12 = vmul.f32 %v3230_v40, %v3230_v40  ;;  %v3233_v21 = vsub.f32 %v5435_v30, %v3149_v10  ;;  %v3264_v47 = vmul.f32 %v3232_v16, %v3232_v16 }
 0x37d   : > { %3188 = vrot.lane.b32.xlu1 %v5659_v23, %s4356_s27  ;;  %v3299_v48 = vsel %vm209_vm0, %v3261_v20, 0.0  ;;  %v3151_v43 = vpop.permute.xlu0 %3150  ;;  %v3303_v44 = vsel %vm209_vm0, %v3263_v34, 0.0 }
 0x37e   : > { %v3290_v49 = vadd.f32 %v3289_v24, %v3288_v37  ;;  %v3301_v42 = vsel %vm209_vm0, %v3262_v12, 0.0  ;;  %v3234_v37 = vsub.f32 %v5493_v63, %v3151_v43  ;;  %v3265_v58 = vmul.f32 %v3233_v21, %v3233_v21 }
 0x37f   : > { %v3153_v15 = vpop.permute.xlu1 %3152  ;;  %v3305_v24 = vsel %vm209_vm0, %v3264_v47, 0.0 }
 0x380   : > { %v3292_v7 = vadd.f32 %v3291_v1, %v3290_v49  ;;  %v3235_v52 = vsub.f32 %v5511_v5, %v3153_v15  ;;  %v3266_v18 = vmul.f32 %v3234_v37, %v3234_v37  ;;  %v3307_v1 = vsel %vm209_vm0, %v3265_v58, 0.0 }
 0x381   : > { %v3155_v27 = vpop.permute.xlu0 %3154 }
 0x382   : > { %v3294_v14 = vadd.f32 %v3293_v0, %v3292_v7  ;;  %v3267_v51 = vmul.f32 %v3235_v52, %v3235_v52  ;;  %v3309_v30 = vsel %vm209_vm0, %v3266_v18, 0.0  ;;  %v3236_v7 = vsub.f32 %v5487_v59, %v3155_v27 }
 0x383   : > { %v3157_v13 = vpop.permute.xlu1 %3156 }
 0x384   : > { %v3296_v25 = vadd.f32 %v3295_v19, %v3294_v14  ;;  %v3311_v63 = vsel %vm209_vm0, %v3267_v51, 0.0  ;;  %v3237_v6 = vsub.f32 %v5501_v4, %v3157_v13  ;;  %v3268_v26 = vmul.f32 %v3236_v7, %v3236_v7 }
 0x385   : > { %v3159_v39 = vpop.permute.xlu0 %3158 }
 0x386   : > { %v3298_v32 = vadd.f32 %v3297_v55, %v3296_v25  ;;  %v3238_v14 = vsub.f32 %v5544_v29, %v3159_v39  ;;  %v3269_v19 = vmul.f32 %v3237_v6, %v3237_v6  ;;  %v3313_v9 = vsel %vm209_vm0, %v3268_v26, 0.0 }
 0x387   : > { %v3161_v0 = vpop.permute.xlu1 %3160 }
 0x388   : > { %v3300_v60 = vadd.f32 %v3299_v48, %v3298_v32  ;;  %v3239_v53 = vsub.f32 %v5560_v36, %v3161_v0  ;;  %v3270_v54 = vmul.f32 %v3238_v14, %v3238_v14  ;;  %v3315_v25 = vsel %vm209_vm0, %v3269_v19, 0.0 }
 0x389   : > { %v3163_v59 = vpop.permute.xlu0 %3162 }
 0x38a   : > { %v3302_v31 = vadd.f32 %v3301_v42, %v3300_v60  ;;  %v3271_v20 = vmul.f32 %v3239_v53, %v3239_v53  ;;  %v3317_v4 = vsel %vm209_vm0, %v3270_v54, 0.0  ;;  %v3240_v55 = vsub.f32 %v5539_v50, %v3163_v59 }
 0x38b   : > { %v3165_v28 = vpop.permute.xlu1 %3164 }
 0x38c   : > { %v3304_v57 = vadd.f32 %v3303_v44, %v3302_v31  ;;  %v3319_v29 = vsel %vm209_vm0, %v3271_v20, 0.0  ;;  %v3241_v33 = vsub.f32 %v5551_v22, %v3165_v28  ;;  %v3272_v34 = vmul.f32 %v3240_v55, %v3240_v55 }
 0x38d   : > { %v3167_v32 = vpop.permute.xlu0 %3166 }
 0x38e   : > { %v3306_v49 = vadd.f32 %v3305_v24, %v3304_v57  ;;  %v3242_v10 = vsub.f32 %v5580_v45, %v3167_v32  ;;  %v3273_v16 = vmul.f32 %v3241_v33, %v3241_v33  ;;  %v3321_v43 = vsel %vm209_vm0, %v3272_v34, 0.0 }
 0x38f   : > { %v3169_v48 = vpop.permute.xlu1 %3168 }
 0x390   : > { %v3308_v8 = vadd.f32 %v3307_v1, %v3306_v49  ;;  %v3243_v60 = vsub.f32 %v5596_v38, %v3169_v48  ;;  %v3274_v44 = vmul.f32 %v3242_v10, %v3242_v10  ;;  %v3323_v31 = vsel %vm209_vm0, %v3273_v16, 0.0 }
 0x391   : > { %v3171_v50 = vpop.permute.xlu0 %3170 }
 0x392   : > { %v3310_v5 = vadd.f32 %v3309_v30, %v3308_v8  ;;  %v3275_v15 = vmul.f32 %v3243_v60, %v3243_v60  ;;  %v3325_v22 = vsel %vm209_vm0, %v3274_v44, 0.0  ;;  %v3244_v37 = vsub.f32 %v5575_v61, %v3171_v50 }
 0x393   : > { %v3173_v47 = vpop.permute.xlu1 %3172 }
 0x394   : > { %v3312_v35 = vadd.f32 %v3311_v63, %v3310_v5  ;;  %v3327_v45 = vsel %vm209_vm0, %v3275_v15, 0.0  ;;  %v3245_v52 = vsub.f32 %v5587_v46, %v3173_v47  ;;  %v3276_v18 = vmul.f32 %v3244_v37, %v3244_v37 }
 0x396   : > { %v3314_v40 = vadd.f32 %v3313_v9, %v3312_v35  ;;  %v3277_v1 = vmul.f32 %v3245_v52, %v3245_v52  ;;  %v3329_v13 = vsel %vm209_vm0, %v3276_v18, 0.0 }
 0x398   : > { %v3316_v12 = vadd.f32 %v3315_v25, %v3314_v40  ;;  %v3331_v8 = vsel %vm209_vm0, %v3277_v1, 0.0 }
 0x39a   : > { %v3318_v36 = vadd.f32 %v3317_v4, %v3316_v12 }
 0x39c   : > { %v3320_v42 = vadd.f32 %v3319_v29, %v3318_v36 }
 0x39e   : > { %v3322_v21 = vadd.f32 %v3321_v43, %v3320_v42 }
 0x3a0   : > { %v3324_v57 = vadd.f32 %v3323_v31, %v3322_v21 }
 0x3a2   : > { %v3326_v38 = vadd.f32 %v3325_v22, %v3324_v57 }
 0x3a4   : > { %v3328_v27 = vadd.f32 %v3327_v45, %v3326_v38 }
 0x3a6   : > { %v3330_v7 = vadd.f32 %v3329_v13, %v3328_v27 }
 0x3a8   : > { %v3332_v5 = vadd.f32 %v3331_v8, %v3330_v7 }
 0x3ab   : > { %v3175_v58 = vpop.permute.xlu0 %3174 }
 0x3ac   : > { %v3246_v49 = vsub.f32 %v5616_v2, %v3175_v58 }
 0x3ae   : > { %v3278_v30 = vmul.f32 %v3246_v49, %v3246_v49 }
 0x3af   : > { %v3177_v24 = vpop.permute.xlu1 %3176  ;;  %v3179_v61 = vpop.permute.xlu0 %3178 }
 0x3b0   : > { %v3247_v51 = vsub.f32 %v5632_v11, %v3177_v24  ;;  %v3333_v46 = vsel %vm209_vm0, %v3278_v30, 0.0  ;;  %v3248_v6 = vsub.f32 %v5611_v62, %v3179_v61 }
 0x3b1   : > { %v3334_v26 = vadd.f32 %v3333_v46, %v3332_v5 }
 0x3b2   : > { %v3279_v39 = vmul.f32 %v3247_v51, %v3247_v51  ;;  %v3280_v11 = vmul.f32 %v3248_v6, %v3248_v6 }
 0x3b3   : > { %v3181_v63 = vpop.permute.xlu1 %3180 }
 0x3b4   : > { %v3335_v2 = vsel %vm209_vm0, %v3279_v39, 0.0  ;;  %v3249_v0 = vsub.f32 %v5623_v41, %v3181_v63  ;;  %v3337_v53 = vsel %vm209_vm0, %v3280_v11, 0.0 }
 0x3b5   : > { %v3336_v14 = vadd.f32 %v3335_v2, %v3334_v26 }
 0x3b6   : > { %v3281_v35 = vmul.f32 %v3249_v0, %v3249_v0 }
 0x3b7   : > { %v3338_v54 = vadd.f32 %v3337_v53, %v3336_v14 }
 0x3b8   : > { %v3339_v40 = vsel %vm209_vm0, %v3281_v35, 0.0 }
 0x3b9   : > { %v3340_v4 = vadd.f32 %v3339_v40, %v3338_v54 }
 0x3e7   : > { %v3183_v19 = vpop.permute.xlu0 %3182 }
 0x3e8   : > { %v3250_v9 = vsub.f32 %v5652_v56, %v3183_v19 }
 0x3ea   : > { %v3282_v59 = vmul.f32 %v3250_v9, %v3250_v9 }
 0x3eb   : > { %v3185_v25 = vpop.permute.xlu1 %3184  ;;  %v3187_v62 = vpop.permute.xlu0 %3186 }
 0x3ec   : > { %v3341_v20 = vsel %vm209_vm0, %v3282_v59, 0.0  ;;  %v3251_v28 = vsub.f32 %v5668_v3, %v3185_v25  ;;  %v3252_v41 = vsub.f32 %v5647_v17, %v3187_v62 }
 0x3ed   : > { %v3342_v32 = vadd.f32 %v3341_v20, %v3340_v4 }
 0x3ee   : > { %v3283_v55 = vmul.f32 %v3251_v28, %v3251_v28  ;;  %v3284_v12 = vmul.f32 %v3252_v41, %v3252_v41 }
 0x3ef   : > { %v3189_v29 = vpop.permute.xlu1 %3188 }
 0x3f0   : > { %v3343_v33 = vsel %vm209_vm0, %v3283_v55, 0.0  ;;  %v3253_v56 = vsub.f32 %v5659_v23, %v3189_v29  ;;  %v3345_v48 = vsel %vm209_vm0, %v3284_v12, 0.0 }
 0x3f1   : > { %v3344_v36 = vadd.f32 %v3343_v33, %v3342_v32 }
 0x3f2   : > { %v3285_v34 = vmul.f32 %v3253_v56, %v3253_v56 }
 0x3f3   : > { %v3346_v10 = vadd.f32 %v3345_v48, %v3344_v36 }
 0x3f4   : > { %v3347_v3 = vsel %vm209_vm0, %v3285_v34, 0.0 }
 0x3f5   : > { %v3348_v42 = vadd.f32 %v3347_v3, %v3346_v10 }
 0x3f7   : > { %3349 = vadd.xlane.f32.xlu0 %v3348_v42 }
 0x480   : > { %v3350_v17 = vpop.xlane.xlu0 %3349 }
 0x481   : > { %v3351_v16 = vrot.slane %v3350_v17, 4 }
 0x483   : > { %v3352_v60 = vadd.f32 %v3351_v16, %v3350_v17 }
 0x485   : > { %v3353_v43 = vrot.slane %v3352_v60, 2 }
 0x487   : > { %v3354_v44 = vadd.f32 %v3353_v43, %v3352_v60 }
 0x489   : > { %v3355_v21 = vrot.slane %v3354_v44, 1 }
 0x48b   : > { %v3356_v50 = vadd.f32 %v3355_v21, %v3354_v44 }
 0x48d   : > { %4215 = vpush %v3356_v50 }
 0x4be   : > { %s4216_s10 = spop %4215 }
 0x4bf   : > { %v3358_v23 = vstv %s4216_s10 }
 0x4c0   : > { %3359 = vst [vmem:[%s197_s7] sm:$0x1] %v3358_v23 }
 0x4c1   : > { %4298 = shalt.err (!%p4295_p3)
}
 0x4c2   : > { %s4299_s12 = scalar_lea.hbm %s3379_s23, 16  ;;  %s4303_s22 = scalar_lea.hbm %s5790_s4, 32 }
 0x4c3   : > { %p4300_p4 = scmp.ne.s32.totalorder %s3379_s23, %s4299_s12  ;;  %p4304_p9 = scmp.lt.s32.totalorder %s3379_s23, %s5790_s4 }
 0x4c4   : > { %p4305_p10 = scmp.lt.s32.totalorder %s4303_s22, %s4299_s12 }
 0x4c5   : > { %p4301_p7 = pnand %p4300_p4, %p4421_p5 }
 0x4c6   : > { %p4306_p11 = por %p4305_p10, %p4304_p9 }
 0x4c7   : > { %p4302_p8 = pneg %p4301_p7 }
 0x4c9   : > { %p4307_p12 = pnand %p4306_p11, %p4302_p8 }
 0x4cb   : > { %4310 = shalt.err (!%p4307_p12)
}
 0x4cc   : > { %4217 = dma.vmem_to_hbm [thread:$0]  (%p4421_p5), %s5748_s8, 16, %s3379_s23, %s3366_s28  }
 0x4cd PF: > { %p4223_p13 = scmp.ge.s32.totalorder %s4345_s18, 2  ;;  %s3401_s7 = sand.u32 1, %s4333_s15  }
 0x4ce   : > { %s3402_s9 = scalar_lea.sflag [#allocation5], %s3401_s7 }
 0x4cf   : > { %p4220_p0 = pnand %p4223_p13, %p4425_p6 }
 0x4d1   : > { %p4221_p1 = pneg %p4220_p0 }
 0x4d3   : > { %4328 = dma.done.wait (%p4221_p1), %s3402_s9, 16  }
 0x4d4   : > { %4330 = vsyncadd (%p4221_p1), %s3402_s9, 4294967280  ;;  %p15_p2 = scmp.ge.s32.totalorder %s4408_s21, 4   ;;  %s5793_s15 = smov %s4337_s16 }
 0x4d5   : > { %s5794_s16 = smov %s4341_s17  ;;  %s5795_s17 = smov %s4419_s24 }
 0x4d6   : > { %s5796_s18 = smov %s4408_s21  ;;  %17 = sbr.rel (!%p15_p2) target bundleno = 3 (0x3), region = 81 }
 0x4db   :  { %3406 = vsyncpa [#allocation5], 1 }
 0x4dc   :  { %3408 = vsyncpa [#allocation5 + $0x1], 1 }

</bundles_post_ra>
